<compile_context>
chip_gen: v7x
topology: tpu7x:2x2x1
jax: 0.10.0
libtpu: 0.0.40
codegen_flags: <defaults>
</compile_context>

<pallas_src>
import numpy as np

import jax
import jax.numpy as jnp
from jax.experimental import pallas as pl
from jax.experimental.pallas import tpu as pltpu

# Full-precision f32 matmuls everywhere (kernels + reference). At production shapes you
# would instead feed bf16 operands and keep preferred_element_type=f32 accumulation.
jax.config.update("jax_default_matmul_precision", "highest")

_AMIN = 1e-10
_DB_SCALE = 10.0 / float(np.log(10.0))   # 10*log10(x) == _DB_SCALE * ln(x)


def _round_up(x: int, m: int) -> int:
    return (x + m - 1) // m * m


# -----------------------------------------------------------------------------
# One-time constant construction (torchaudio-equivalent math; never in hot path).
# -----------------------------------------------------------------------------
def _hann_periodic(n_fft: int) -> np.ndarray:
    n = np.arange(n_fft)
    return 0.5 * (1.0 - np.cos(2.0 * np.pi * n / n_fft))


def _windowed_dft_mats(n_fft: int, f_pad: int):
    """Real/imag DFT matrices with the Hann window folded in, zero-padded to f_pad lanes."""
    n_freq = n_fft // 2 + 1
    n = np.arange(n_fft, dtype=np.float64)[:, None]
    f = np.arange(n_freq, dtype=np.float64)[None, :]
    ang = 2.0 * np.pi * n * f / n_fft
    win = _hann_periodic(n_fft)[:, None]
    creal = np.zeros((n_fft, f_pad), np.float32)
    cimag = np.zeros((n_fft, f_pad), np.float32)
    creal[:, :n_freq] = (win * np.cos(ang)).astype(np.float32)
    cimag[:, :n_freq] = (win * np.sin(ang)).astype(np.float32)
    return creal, cimag


def _hz_to_mel(f):
    return 2595.0 * np.log10(1.0 + np.asarray(f, np.float64) / 700.0)


def _mel_to_hz(m):
    return 700.0 * (10.0 ** (np.asarray(m, np.float64) / 2595.0) - 1.0)


def _mel_filterbank(n_freq: int, n_mels: int, sr: int) -> np.ndarray:
    """torchaudio.functional.melscale_fbanks (htk, norm=None): (n_freq, n_mels)."""
    f_min, f_max = 0.0, sr / 2.0
    all_freqs = np.linspace(0.0, sr / 2.0, n_freq)
    m_pts = np.linspace(_hz_to_mel(f_min), _hz_to_mel(f_max), n_mels + 2)
    f_pts = _mel_to_hz(m_pts)
    f_diff = f_pts[1:] - f_pts[:-1]                       # (n_mels + 1,)
    slopes = f_pts[None, :] - all_freqs[:, None]          # (n_freq, n_mels + 2)
    down = -slopes[:, :-2] / f_diff[:-1]
    up = slopes[:, 2:] / f_diff[1:]
    return np.maximum(0.0, np.minimum(down, up)).astype(np.float32)


def _frame_audio(x: jax.Array, n_fft: int, hop_length: int) -> jax.Array:
    """Reflect-pad (center=True) and frame: (B, num_samples) -> (B, n_frames, n_fft)."""
    pad = n_fft // 2
    xp = jnp.pad(x, ((0, 0), (pad, pad)), mode="reflect")
    n_frames = 1 + (xp.shape[1] - n_fft) // hop_length
    idx = (jnp.arange(n_frames) * hop_length)[:, None] + jnp.arange(n_fft)[None, :]
    # TODO(synk): the strided framing gather stays in XLA; no clean Pallas equivalent
    # (pure layout op, not compute).
    return xp[:, idx]


# -----------------------------------------------------------------------------
# Pallas kernel 1: log-mel spectrogram (per batch element).
# -----------------------------------------------------------------------------
def _logmel_kernel(frames_ref, creal_ref, cimag_ref, melfb_ref, out_ref):
    frames = frames_ref[...]                                           # (T_pad, n_fft)
    re = jnp.dot(frames, creal_ref[...], preferred_element_type=jnp.float32)
    im = jnp.dot(frames, cimag_ref[...], preferred_element_type=jnp.float32)
    power = re * re + im * im                                          # (T_pad, F_pad)
    mel = jnp.dot(power, melfb_ref[...], preferred_element_type=jnp.float32)
    out_ref[...] = (_DB_SCALE * jnp.log(jnp.maximum(mel, _AMIN))).astype(out_ref.dtype)


def log_mel_spectrogram(frames, creal, cimag, melfb):
    b, t_pad, n_fft = frames.shape
    f_pad, n_mels = melfb.shape
    return pl.pallas_call(
        _logmel_kernel,
        out_shape=jax.ShapeDtypeStruct((b, t_pad, n_mels), jnp.float32),
        grid=(b,),
        in_specs=[
            pl.BlockSpec((None, t_pad, n_fft), lambda i: (i, 0, 0)),
            pl.BlockSpec((n_fft, f_pad), lambda i: (0, 0)),
            pl.BlockSpec((n_fft, f_pad), lambda i: (0, 0)),
            pl.BlockSpec((f_pad, n_mels), lambda i: (0, 0)),
        ],
        out_specs=pl.BlockSpec((None, t_pad, n_mels), lambda i: (i, 0, 0)),
        compiler_params=pltpu.CompilerParams(dimension_semantics=("parallel",)),
    )(frames, creal, cimag, melfb)


# -----------------------------------------------------------------------------
# Pallas kernel 2: tiled linear layer with K-reduction + fused bias epilogue.
# -----------------------------------------------------------------------------
def _linear_kernel(x_ref, w_ref, b_ref, o_ref, acc_ref):
    k = pl.program_id(2)

    @pl.when(k == 0)
    def _init():
        acc_ref[...] = jnp.zeros_like(acc_ref)

    acc_ref[...] += jnp.dot(x_ref[...], w_ref[...], preferred_element_type=jnp.float32)

    @pl.when(k == pl.num_programs(2) - 1)
    def _finalize():
        # Bias add rides free in the epilogue (VPU slack under MXU-bound work).
        o_ref[...] = (acc_ref[...] + b_ref[...]).astype(o_ref.dtype)


def linear_padded(x, w_t, bias2d, *, tm, tn, tk):
    """y = x @ w_t + bias for pre-padded, tile-aligned operands (w_t is (D_pad, C_pad))."""
    b_pad, d_pad = x.shape
    _, c_pad = w_t.shape
    grid = (b_pad // tm, c_pad // tn, d_pad // tk)
    return pl.pallas_call(
        _linear_kernel,
        out_shape=jax.ShapeDtypeStruct((b_pad, c_pad), x.dtype),
        grid=grid,
        in_specs=[
            pl.BlockSpec((tm, tk), lambda i, j, k: (i, k)),
            pl.BlockSpec((tk, tn), lambda i, j, k: (k, j)),
            pl.BlockSpec((1, tn), lambda i, j, k: (0, j)),
        ],
        out_specs=pl.BlockSpec((tm, tn), lambda i, j, k: (i, j)),
        scratch_shapes=[pltpu.VMEM((tm, tn), jnp.float32)],
        compiler_params=pltpu.CompilerParams(
            dimension_semantics=("parallel", "parallel", "arbitrary"),
        ),
    )(x, w_t, bias2d)


# -----------------------------------------------------------------------------
# Model init + forward.
# -----------------------------------------------------------------------------
def init_placeholder_model(key, *, sr, n_fft, hop_length, num_samples, output_dim,
                           n_mels=128):
    """One-time parameter/constant prep; nothing here runs in the per-call path."""
    n_freq = n_fft // 2 + 1
    f_pad = _round_up(n_freq, 128)
    n_frames = 1 + num_samples // hop_length
    t_pad = _round_up(n_frames, 8)
    in_dim = n_mels * n_frames                      # torch flatten of (n_mels, n_frames)

    # nn.Linear-style deterministic init, kept in PyTorch (C, in_dim) layout.
    kw, kb = jax.random.split(key)
    bound = 1.0 / float(np.sqrt(in_dim))
    weight = jax.random.uniform(kw, (output_dim, in_dim), jnp.float32, -bound, bound)
    bias = jax.random.uniform(kb, (output_dim,), jnp.float32, -bound, bound)

    creal, cimag = _windowed_dft_mats(n_fft, f_pad)
    fb = np.zeros((f_pad, n_mels), np.float32)
    fb[:n_freq, :] = _mel_filterbank(n_freq, n_mels, sr)

    # Tile sizes: lanes multiples of 128 (v5e), class tile capped at 256 (v6e MXU),
    # K tile capped at 512 so double-buffered weight blocks stay small on v7x (64 MiB VMEM).
    tk = min(512, _round_up(in_dim, 128))
    d_pad = _round_up(in_dim, tk)
    tn = min(256, _round_up(output_dim, 128))
    c_pad = _round_up(output_dim, tn)

    # Hoist ALL weight layout work out of the hot path:
    # (C, n_mels*n_frames) -> reorder flatten order to (n_frames, n_mels)
    # -> transpose to (in_dim, C) -> zero-pad to (d_pad, c_pad).
    w_reord = jnp.transpose(weight.reshape(output_dim, n_mels, n_frames),
                            (0, 2, 1)).reshape(output_dim, in_dim)
    w_t = jnp.zeros((d_pad, c_pad), jnp.float32).at[:in_dim, :output_dim].set(w_reord.T)
    b2d = jnp.zeros((1, c_pad), jnp.float32).at[0, :output_dim].set(bias)

    consts = dict(creal=jnp.asarray(creal), cimag=jnp.asarray(cimag),
                  melfb=jnp.asarray(fb), w_t=w_t, bias2d=b2d,
                  weight=weight, bias=bias)   # torch-layout params kept for reference only
    meta = dict(sr=sr, n_fft=n_fft, hop_length=hop_length, n_mels=n_mels,
                n_frames=n_frames, t_pad=t_pad, output_dim=output_dim,
                in_dim=in_dim, d_pad=d_pad, c_pad=c_pad, tn=tn, tk=tk)
    return consts, meta


def make_placeholder_forward(consts, meta):
    n_fft, hop = meta["n_fft"], meta["hop_length"]
    n_frames, t_pad = meta["n_frames"], meta["t_pad"]
    in_dim, d_pad = meta["in_dim"], meta["d_pad"]
    output_dim = meta["output_dim"]
    tn, tk = meta["tn"], meta["tk"]
    creal, cimag, melfb = consts["creal"], consts["cimag"], consts["melfb"]
    w_t, bias2d = consts["w_t"], consts["bias2d"]

    @jax.jit
    def forward(x):
        batch = x.shape[0]
        frames = _frame_audio(x, n_fft, hop)                        # (B, T, n_fft)
        if t_pad != n_frames:
            frames = jnp.pad(frames, ((0, 0), (0, t_pad - n_frames), (0, 0)))
        logmel = log_mel_spectrogram(frames, creal, cimag, melfb)   # (B, t_pad, n_mels)
        feats = logmel[:, :n_frames, :].reshape(batch, in_dim)      # time-major flatten

        tm = min(128, _round_up(batch, 8))
        b_pad = _round_up(batch, tm)
        feats = jnp.pad(feats, ((0, b_pad - batch), (0, d_pad - in_dim)))
        out = linear_padded(feats, w_t, bias2d, tm=tm, tn=tn, tk=tk)
        return out[:batch, :output_dim]

    return forward


def reference_forward(x, consts, meta):
    """Pure-JAX reference replicating the PyTorch module (FFT-based STFT)."""
    n_fft, hop, sr = meta["n_fft"], meta["hop_length"], meta["sr"]
    n_mels = meta["n_mels"]
    n_freq = n_fft // 2 + 1
    frames = _frame_audio(x, n_fft, hop)
    window = jnp.asarray(_hann_periodic(n_fft), jnp.float32)
    spec = jnp.fft.rfft(frames * window, axis=-1)
    power = jnp.abs(spec) ** 2                                      # (B, T, n_freq)
    fb = jnp.asarray(_mel_filterbank(n_freq, n_mels, sr))
    mel = jnp.einsum("btf,fm->btm", power, fb)
    logmel = 10.0 * jnp.log10(jnp.maximum(mel, _AMIN))
    # torch layout: (B, n_mels, T), flattened mel-major, then nn.Linear.
    feats = jnp.transpose(logmel, (0, 2, 1)).reshape(x.shape[0], -1)
    return feats @ consts["weight"].T + consts["bias"]


if __name__ == "__main__":
    # Small shapes consistent with the module: 16 kHz audio, n_fft=256, hop=128,
    # 1920 samples -> 16 frames x 128 mels -> Linear(2048, 10).
    sr, n_fft, hop_length = 16000, 256, 128
    batch, num_samples, output_dim = 2, 1920, 10

    key = jax.random.PRNGKey(0)
    kx, kp = jax.random.split(key)
    x = jax.random.normal(kx, (batch, num_samples), dtype=jnp.float32)

    consts, meta = init_placeholder_model(
        kp, sr=sr, n_fft=n_fft, hop_length=hop_length,
        num_samples=num_samples, output_dim=output_dim)
    forward = make_placeholder_forward(consts, meta)

    out = jax.block_until_ready(forward(x))
    assert out.shape == (batch, output_dim)

    ref = reference_forward(x, consts, meta)
    rel_err = float(jnp.linalg.norm(out - ref) / jnp.linalg.norm(ref))
    assert rel_err < 2e-2, f"relative error too large: {rel_err}"

    print("KERNEL_OK")
</pallas_src>

<mosaic_0001>
module attributes {stable_mosaic.version = 11 : i64} {
  func.func private @main(%arg0: i32) attributes {dimension_semantics = [#tpu.dimension_semantics<core_parallel>], iteration_bounds = array<i64: 2>, tpu.core_type = #tpu.core_type<sc_scalar_subcore>, window_params = []} {
    return
  }
}

module attributes {stable_mosaic.version = 11 : i64} {
  func.func private @main(%arg0: i32) attributes {dimension_semantics = [#tpu.dimension_semantics<core_parallel>], iteration_bounds = array<i64: 2>, tpu.core_type = #tpu.core_type<sc_scalar_subcore>, window_params = []} {
    return
  }
}

module attributes {stable_mosaic.version = 11 : i64} {
  func.func @_logmel_kernel(%arg0: i32, %arg1: memref<1x16x256xf32, #tpu.memory_space<vmem>>, %arg2: memref<256x256xf32, #tpu.memory_space<vmem>>, %arg3: memref<256x256xf32, #tpu.memory_space<vmem>>, %arg4: memref<256x128xf32, #tpu.memory_space<vmem>>, %arg5: memref<1x16x128xf32, #tpu.memory_space<vmem>>) attributes {dimension_semantics = [#tpu.dimension_semantics<parallel>], iteration_bounds = array<i64: 2>, scalar_prefetch = 0 : i64, scratch_operands = 0 : i64, tpu.core_type = #tpu.core_type<tc>, window_params = [{transform_indices = @transform_0, window_bounds = array<i64: 1, 16, 256>}, {pipeline_mode = #tpu.pipeline_mode<synchronous>, transform_indices = @transform_1, window_bounds = array<i64: 256, 256>}, {pipeline_mode = #tpu.pipeline_mode<synchronous>, transform_indices = @transform_2, window_bounds = array<i64: 256, 256>}, {pipeline_mode = #tpu.pipeline_mode<synchronous>, transform_indices = @transform_3, window_bounds = array<i64: 256, 128>}, {transform_indices = @transform_4, window_bounds = array<i64: 1, 16, 128>}]} {
    %c0 = arith.constant 0 : index
    %c0_0 = arith.constant 0 : index
    %c0_1 = arith.constant 0 : index
    %0 = vector.load %arg1[%c0, %c0_0, %c0_1] : memref<1x16x256xf32, #tpu.memory_space<vmem>>, vector<1x16x256xf32>
    %1 = vector.shape_cast %0 : vector<1x16x256xf32> to vector<16x256xf32>
    %c0_2 = arith.constant 0 : index
    %c0_3 = arith.constant 0 : index
    %2 = vector.load %arg2[%c0_2, %c0_3] : memref<256x256xf32, #tpu.memory_space<vmem>>, vector<256x256xf32>
    %cst = arith.constant dense<0.000000e+00> : vector<16x256xf32>
    %3 = tpu.matmul %1, %2, %cst {dimension_numbers = #tpu.dot_dimension_numbers<[1], [0], [0], [1], [0, 0, 1, 1], [], []>, precision = #tpu.contract_precision<fp32>} : vector<16x256xf32>, vector<256x256xf32>, vector<16x256xf32> -> vector<16x256xf32>
    %c0_4 = arith.constant 0 : index
    %c0_5 = arith.constant 0 : index
    %4 = vector.load %arg3[%c0_4, %c0_5] : memref<256x256xf32, #tpu.memory_space<vmem>>, vector<256x256xf32>
    %cst_6 = arith.constant dense<0.000000e+00> : vector<16x256xf32>
    %5 = tpu.matmul %1, %4, %cst_6 {dimension_numbers = #tpu.dot_dimension_numbers<[1], [0], [0], [1], [0, 0, 1, 1], [], []>, precision = #tpu.contract_precision<fp32>} : vector<16x256xf32>, vector<256x256xf32>, vector<16x256xf32> -> vector<16x256xf32>
    %6 = arith.mulf %3, %3 : vector<16x256xf32>
    %7 = arith.mulf %5, %5 : vector<16x256xf32>
    %8 = arith.addf %6, %7 : vector<16x256xf32>
    %c0_7 = arith.constant 0 : index
    %c0_8 = arith.constant 0 : index
    %9 = vector.load %arg4[%c0_7, %c0_8] : memref<256x128xf32, #tpu.memory_space<vmem>>, vector<256x128xf32>
    %cst_9 = arith.constant dense<0.000000e+00> : vector<16x128xf32>
    %10 = tpu.matmul %8, %9, %cst_9 {dimension_numbers = #tpu.dot_dimension_numbers<[1], [0], [0], [1], [0, 0, 1, 1], [], []>, precision = #tpu.contract_precision<fp32>} : vector<16x256xf32>, vector<256x128xf32>, vector<16x128xf32> -> vector<16x128xf32>
    %cst_10 = arith.constant 1.000000e-10 : f32
    %11 = vector.broadcast %cst_10 : f32 to vector<16x128xf32>
    %12 = arith.maximumf %10, %11 : vector<16x128xf32>
    %13 = math.log %12 : vector<16x128xf32>
    %cst_11 = arith.constant 4.34294462 : f32
    %14 = vector.broadcast %cst_11 : f32 to vector<16x128xf32>
    %15 = arith.mulf %14, %13 : vector<16x128xf32>
    %c0_12 = arith.constant 0 : index
    %c0_13 = arith.constant 0 : index
    %c0_14 = arith.constant 0 : index
    %16 = vector.load %arg5[%c0_12, %c0_13, %c0_14] : memref<1x16x128xf32, #tpu.memory_space<vmem>>, vector<1x16x128xf32>
    %17 = vector.shape_cast %16 : vector<1x16x128xf32> to vector<16x128xf32>
    %18 = vector.shape_cast %15 : vector<16x128xf32> to vector<1x16x128xf32>
    tpu.vector_store %arg5[%c0_12, %c0_13, %c0_14], %18 {strides = array<i32>} : memref<1x16x128xf32, #tpu.memory_space<vmem>>, vector<1x16x128xf32>,
    return
  }
  func.func @transform_0(%arg0: i32) -> (i32, i32, i32) {
    %c0_i32 = arith.constant 0 : i32
    %c0_i32_0 = arith.constant 0 : i32
    %c0_i32_1 = arith.constant 0 : i32
    return %arg0, %c0_i32, %c0_i32_0 : i32, i32, i32
  }
  func.func @transform_1(%arg0: i32) -> (i32, i32) {
    %c0_i32 = arith.constant 0 : i32
    %c0_i32_0 = arith.constant 0 : i32
    %c0_i32_1 = arith.constant 0 : i32
    return %c0_i32, %c0_i32_0 : i32, i32
  }
  func.func @transform_2(%arg0: i32) -> (i32, i32) {
    %c0_i32 = arith.constant 0 : i32
    %c0_i32_0 = arith.constant 0 : i32
    %c0_i32_1 = arith.constant 0 : i32
    return %c0_i32, %c0_i32_0 : i32, i32
  }
  func.func @transform_3(%arg0: i32) -> (i32, i32) {
    %c0_i32 = arith.constant 0 : i32
    %c0_i32_0 = arith.constant 0 : i32
    %c0_i32_1 = arith.constant 0 : i32
    return %c0_i32, %c0_i32_0 : i32, i32
  }
  func.func @transform_4(%arg0: i32) -> (i32, i32, i32) {
    %c0_i32 = arith.constant 0 : i32
    %c0_i32_0 = arith.constant 0 : i32
    %c0_i32_1 = arith.constant 0 : i32
    return %arg0, %c0_i32, %c0_i32_0 : i32, i32, i32
  }
}

module attributes {stable_mosaic.version = 11 : i64} {
  func.func @_linear_kernel(%arg0: i32, %arg1: i32, %arg2: i32, %arg3: memref<8x512xf32, #tpu.memory_space<vmem>>, %arg4: memref<512x128xf32, #tpu.memory_space<vmem>>, %arg5: memref<1x128xf32, #tpu.memory_space<vmem>>, %arg6: memref<8x128xf32, #tpu.memory_space<vmem>>, %arg7: memref<8x128xf32, #tpu.memory_space<vmem>>) attributes {dimension_semantics = [#tpu.dimension_semantics<parallel>, #tpu.dimension_semantics<parallel>, #tpu.dimension_semantics<arbitrary>], iteration_bounds = array<i64: 1, 1, 4>, scalar_prefetch = 0 : i64, scratch_operands = 1 : i64, tpu.core_type = #tpu.core_type<tc>, window_params = [{transform_indices = @transform_0, window_bounds = array<i64: 8, 512>}, {transform_indices = @transform_1, window_bounds = array<i64: 512, 128>}, {transform_indices = @transform_2, window_bounds = array<i64: 1, 128>}, {transform_indices = @transform_3, window_bounds = array<i64: 8, 128>}]} {
    %c0_i32 = arith.constant 0 : i32
    %0 = arith.cmpi eq, %arg2, %c0_i32 : i32
    %1 = arith.extui %0 : i1 to i32
    %c0_i32_0 = arith.constant 0 : i32
    %2 = arith.cmpi ne, %1, %c0_i32_0 : i32
    scf.if %2 {
      %cst_9 = arith.constant 0.000000e+00 : f32
      %12 = vector.broadcast %cst_9 : f32 to vector<8x128xf32>
      %c0_10 = arith.constant 0 : index
      %c0_11 = arith.constant 0 : index
      %13 = vector.load %arg7[%c0_10, %c0_11] : memref<8x128xf32, #tpu.memory_space<vmem>>, vector<8x128xf32>
      tpu.vector_store %arg7[%c0_10, %c0_11], %12 {strides = array<i32>} : memref<8x128xf32, #tpu.memory_space<vmem>>, vector<8x128xf32>,
    } else {
    }
    %c0 = arith.constant 0 : index
    %c0_1 = arith.constant 0 : index
    %3 = vector.load %arg7[%c0, %c0_1] : memref<8x128xf32, #tpu.memory_space<vmem>>, vector<8x128xf32>
    %c0_2 = arith.constant 0 : index
    %c0_3 = arith.constant 0 : index
    %4 = vector.load %arg3[%c0_2, %c0_3] : memref<8x512xf32, #tpu.memory_space<vmem>>, vector<8x512xf32>
    %c0_4 = arith.constant 0 : index
    %c0_5 = arith.constant 0 : index
    %5 = vector.load %arg4[%c0_4, %c0_5] : memref<512x128xf32, #tpu.memory_space<vmem>>, vector<512x128xf32>
    %cst = arith.constant dense<0.000000e+00> : vector<8x128xf32>
    %6 = tpu.matmul %4, %5, %cst {dimension_numbers = #tpu.dot_dimension_numbers<[1], [0], [0], [1], [0, 0, 1, 1], [], []>, precision = #tpu.contract_precision<fp32>} : vector<8x512xf32>, vector<512x128xf32>, vector<8x128xf32> -> vector<8x128xf32>
    %7 = arith.addf %3, %6 : vector<8x128xf32>
    %c0_6 = arith.constant 0 : index
    %c0_7 = arith.constant 0 : index
    %8 = vector.load %arg7[%c0_6, %c0_7] : memref<8x128xf32, #tpu.memory_space<vmem>>, vector<8x128xf32>
    tpu.vector_store %arg7[%c0_6, %c0_7], %7 {strides = array<i32>} : memref<8x128xf32, #tpu.memory_space<vmem>>, vector<8x128xf32>,
    %c3_i32 = arith.constant 3 : i32
    %9 = arith.cmpi eq, %arg2, %c3_i32 : i32
    %10 = arith.extui %9 : i1 to i32
    %c0_i32_8 = arith.constant 0 : i32
    %11 = arith.cmpi ne, %10, %c0_i32_8 : i32
    scf.if %11 {
      %c0_9 = arith.constant 0 : index
      %c0_10 = arith.constant 0 : index
      %12 = vector.load %arg7[%c0_9, %c0_10] : memref<8x128xf32, #tpu.memory_space<vmem>>, vector<8x128xf32>
      %c0_11 = arith.constant 0 : index
      %c0_12 = arith.constant 0 : index
      %13 = vector.load %arg5[%c0_11, %c0_12] : memref<1x128xf32, #tpu.memory_space<vmem>>, vector<1x128xf32>
      %14 = vector.broadcast %13 : vector<1x128xf32> to vector<8x128xf32>
      %15 = arith.addf %12, %14 : vector<8x128xf32>
      %c0_13 = arith.constant 0 : index
      %c0_14 = arith.constant 0 : index
      %16 = vector.load %arg6[%c0_13, %c0_14] : memref<8x128xf32, #tpu.memory_space<vmem>>, vector<8x128xf32>
      tpu.vector_store %arg6[%c0_13, %c0_14], %15 {strides = array<i32>} : memref<8x128xf32, #tpu.memory_space<vmem>>, vector<8x128xf32>,
    } else {
    }
    return
  }
  func.func @transform_0(%arg0: i32, %arg1: i32, %arg2: i32) -> (i32, i32) {
    %c0_i32 = arith.constant 0 : i32
    return %arg0, %arg2 : i32, i32
  }
  func.func @transform_1(%arg0: i32, %arg1: i32, %arg2: i32) -> (i32, i32) {
    %c0_i32 = arith.constant 0 : i32
    return %arg2, %arg1 : i32, i32
  }
  func.func @transform_2(%arg0: i32, %arg1: i32, %arg2: i32) -> (i32, i32) {
    %c0_i32 = arith.constant 0 : i32
    %c0_i32_0 = arith.constant 0 : i32
    return %c0_i32, %arg1 : i32, i32
  }
  func.func @transform_3(%arg0: i32, %arg1: i32, %arg2: i32) -> (i32, i32) {
    %c0_i32 = arith.constant 0 : i32
    return %arg0, %arg1 : i32, i32
  }
}

</mosaic_0001>

<bundles_post_ra>
// kernel: forward.3
= control target key start
LH: loop header
LB: loop body
LE: loop exit
PB: predicated region body
PF: predicated region fallthrough
CT: control target
= control target key end

     0   :  { %s3067_s12 = smov 0   ;;  %s3069_s13 = smov 0   ;;  %s4053_s0 = inlined_call_operand.vmem [shape: f32[8,2048], index: 0, kind: input, shape index: {}]   ;;  %s4054_s1 = inlined_call_operand.vmem [shape: f32[2048,128], index: 1, kind: input, shape index: {}]   ;;  %s4055_s2 = inlined_call_operand.vmem [shape: f32[1,128], index: 2, kind: input, shape index: {}]   ;;  %s4056_s3 = inlined_call_operand.vmem [shape: f32[8,128], index: 3, kind: output, shape index: {}]  }
   0x1   :  { %s3071_s14 = smov 0  }
   0x2 LB: > { %s25_s15 = sadd.s32 1, %s3040_s13  ;;  %p2182_p0 = scmp.ge.s32.totalorder %s3044_s14, 1  ;;  %s3044_s14 = sphi %s3071_s14, %s13_s14   ;;  %s3040_s13 = sphi %s3069_s13, %s4262_s13   ;;  %s3036_s12 = sphi %s3067_s12, %s4261_s12  }
   0x3   : > { %p26_p1 = scmp.ge.s32.totalorder %s25_s15, 4  ;;  %p189_p2 = scmp.lt.s32.totalorder %s3044_s14, 5 }
   0x5   : > { %s4264_s15 = smov (%p26_p1, %s25_s15), 0  ;;  %p190_p3 = pnand %p2182_p0, %p189_p2 }
   0x7   : > { %193 = sbr.rel (%p190_p3) target bundleno = 478 (0x1de), region = 32 }
   0xe   : > { %s2183_s16 = sshll.u32 %s3036_s12, 2  ;;  %s2185_s17 = sshll.u32 %s3036_s12, 6 }
   0xf   : > { %p233_p4 = scmp.lt.s32.totalorder %s2183_s16, 15  ;;  %p241_p5 = scmp.lt.s32.totalorder %s2185_s17, 255 }
  0x10   : > { %p2187_p6 = scmp.ne.s32.totalorder %s3036_s12, 0 }
  0x11   : > { %s4266_s16 = smov (!%p233_p4, %s2183_s16), 15  ;;  %s4268_s17 = smov (!%p241_p5, %s2185_s17), 255 }
  0x12   : > { %s2184_s18 = sshll.u32 %s4266_s16, 3  ;;  %s2186_s22 = sshll.u32 %s4268_s17, 3  ;;  %v3046_v0 = vmov (!%p2187_p6), 0.0  }
  0x13   : > { %s3092_s21 = scalar_lea.vmem %s4053_s0, %s2184_s18  ;;  %s3097_s25 = scalar_lea.vmem %s4054_s1, %s2186_s22  ;;  %263 = vst [vmem:[#allocation2] sm:$0xff] (!%p2187_p6), %v3046_v0 }
  0x14   : > { %262 = sbr.rel (%p2187_p6) target bundleno = 27 (0x1b), region = 36 }
  0x1b PF: > { %v285_v1 = vld [vmem:[%s3097_s25 + $0x80] sm:$0xff]  ;;  %v286_v2 = vld [vmem:[%s3097_s25 + $0x88] sm:$0xff]  ;;  %v287_v8 = vld [vmem:[%s3097_s25 + $0x90] sm:$0xff]  ;;  %p2188_p7 = scmp.ne.s32.totalorder %s3036_s12, 3 }
  0x1c   : > { %v269_v3 = vld [vmem:[%s3097_s25] sm:$0xff]  ;;  %v382_v4 = vand.u32 4294901760, %v285_v1  ;;  %v385_v5 = vand.u32 4294901760, %v286_v2  ;;  %v270_v6 = vld [vmem:[%s3097_s25 + $0x8] sm:$0xff]  ;;  %v288_v9 = vld [vmem:[%s3097_s25 + $0x98] sm:$0xff]  ;;  %v388_v11 = vand.u32 4294901760, %v287_v8 }
  0x1d   : > { %v334_v7 = vand.u32 4294901760, %v269_v3  ;;  %v337_v10 = vand.u32 4294901760, %v270_v6  ;;  %v391_v12 = vand.u32 4294901760, %v288_v9  ;;  %v271_v13 = vld [vmem:[%s3097_s25 + $0x10] sm:$0xff]  ;;  %v272_v14 = vld [vmem:[%s3097_s25 + $0x18] sm:$0xff]  ;;  %v289_v19 = vld [vmem:[%s3097_s25 + $0xa0] sm:$0xff] }
  0x1e   : > { %v3108_v15 = vpack.c.bf16 %v385_v5, %v382_v4  ;;  %v340_v17 = vand.u32 4294901760, %v271_v13  ;;  %v343_v18 = vand.u32 4294901760, %v272_v14  ;;  %v290_v20 = vld [vmem:[%s3097_s25 + $0xa8] sm:$0xff]  ;;  %v273_v24 = vld [vmem:[%s3097_s25 + $0x20] sm:$0xff]  ;;  %v3123_v26 = vsub.f32 %v287_v8, %v388_v11  ;;  %v291_v38 = vld [vmem:[%s3097_s25 + $0xb0] sm:$0xff] }
  0x1f   : > { %v3110_v16 = vsub.f32 %v269_v3, %v334_v7  ;;  %v3114_v21 = vpack.c.bf16 %v337_v10, %v334_v7  ;;  %v3116_v22 = vsub.f32 %v270_v6, %v337_v10  ;;  %v3118_v23 = vpack.c.bf16 %v391_v12, %v388_v11  ;;  %v274_v25 = vld [vmem:[%s3097_s25 + $0x28] sm:$0xff]  ;;  %v292_v43 = vld [vmem:[%s3097_s25 + $0xb8] sm:$0xff]  ;;  %v275_v56 = vld [vmem:[%s3097_s25 + $0x30] sm:$0xff] }
  0x20   : > { %2614 = vmatprep.subr.bf16.mxu0 %v3108_v15  ;;  %v3125_v27 = vsub.f32 %v288_v9, %v391_v12  ;;  %v3127_v28 = vpack.c.bf16 %v343_v18, %v340_v17  ;;  %v3129_v29 = vsub.f32 %v271_v13, %v340_v17  ;;  %v394_v30 = vand.u32 4294901760, %v289_v19  ;;  %v276_v57 = vld [vmem:[%s3097_s25 + $0x38] sm:$0xff]  ;;  %v293_v6 = vld [vmem:[%s3097_s25 + $0xc0] sm:$0xff]  ;;  %v294_v7 = vld [vmem:[%s3097_s25 + $0xc8] sm:$0xff] }
  0x21   : > { %2616 = vmatpush3.bf16.msra.mxu0 %v3114_v21  ;;  %v397_v31 = vand.u32 4294901760, %v290_v20  ;;  %v3132_v32 = vsub.f32 %v285_v1, %v382_v4  ;;  %v3134_v33 = vsub.f32 %v286_v2, %v385_v5  ;;  %v346_v34 = vand.u32 4294901760, %v273_v24  ;;  %v277_v12 = vld [vmem:[%s3097_s25 + $0x40] sm:$0xff] }
  0x22   : > { %2618 = vmatprep.subr.bf16.mxu0 %v3118_v23  ;;  %v349_v35 = vand.u32 4294901760, %v274_v25  ;;  %v4073_v36 = vand.u32 4294901760, %v3110_v16  ;;  %v4071_v37 = vand.u32 4294901760, %v3116_v22  ;;  %v3140_v39 = vsub.f32 %v272_v14, %v343_v18 }
  0x23   : > { %v3142_v40 = vpack.c.bf16 %v397_v31, %v394_v30  ;;  %v3144_v41 = vsub.f32 %v289_v19, %v394_v30  ;;  %v4076_v42 = vand.u32 4294901760, %v3132_v32  ;;  %v3148_v44 = vsub.f32 %v290_v20, %v397_v31  ;;  %v278_v30 = vld [vmem:[%s3097_s25 + $0x48] sm:$0xff] }
  0x24   : > { %v4075_v45 = vand.u32 4294901760, %v3134_v33  ;;  %v3151_v46 = vpack.c.bf16 %v349_v35, %v346_v34  ;;  %v3153_v47 = vsub.f32 %v273_v24, %v346_v34  ;;  %v449_v49 = vsub.f32 %v3110_v16, %v4073_v36 }
  0x25   : > { %2620 = vmatpush3.bf16.msra.mxu0 %v3127_v28  ;;  %v561_v48 = vsub.f32 %v3132_v32, %v4076_v42  ;;  %v456_v50 = vsub.f32 %v3116_v22, %v4071_v37  ;;  %v400_v51 = vand.u32 4294901760, %v291_v38  ;;  %v403_v53 = vand.u32 4294901760, %v292_v43  ;;  %v266_v42 = vld [vmem:[%s3092_s21 + $0x8] sm:$0xff] }
  0x26   : > { %2622 = vmatprep.subr.bf16.mxu0 %v3142_v40  ;;  %v568_v52 = vsub.f32 %v3134_v33, %v4075_v45  ;;  %v4069_v54 = vand.u32 4294901760, %v3123_v26  ;;  %v4068_v55 = vand.u32 4294901760, %v3125_v27  ;;  %v3173_v59 = vsub.f32 %v274_v25, %v349_v35 }
  0x27   : > { %v562_v58 = vand.u32 4294901760, %v561_v48  ;;  %v450_v60 = vand.u32 4294901760, %v449_v49  ;;  %v457_v61 = vand.u32 4294901760, %v456_v50  ;;  %v3175_v63 = vpack.c.bf16 %v403_v53, %v400_v51 }
  0x28   : > { %v569_v62 = vand.u32 4294901760, %v568_v52  ;;  %v3177_v0 = vsub.f32 %v291_v38, %v400_v51  ;;  %v575_v1 = vsub.f32 %v3123_v26, %v4069_v54  ;;  %v582_v3 = vsub.f32 %v3125_v27, %v4068_v55 }
  0x29   : > { %2624 = vmatpush3.bf16.msra.mxu0 %v3151_v46  ;;  %v2647_v2 = vpack.c.bf16 %v457_v61, %v450_v60  ;;  %v352_v4 = vand.u32 4294901760, %v275_v56  ;;  %v355_v5 = vand.u32 4294901760, %v276_v57  ;;  %v4066_v10 = vand.u32 4294901760, %v3129_v29 }
  0x2a   : > { %v2645_v8 = vpack.c.bf16 %v569_v62, %v562_v58  ;;  %2626 = vmatprep.subr.bf16.mxu0 %v3175_v63  ;;  %v576_v9 = vand.u32 4294901760, %v575_v1  ;;  %v4065_v11 = vand.u32 4294901760, %v3140_v39  ;;  %v3192_v13 = vsub.f32 %v292_v43, %v403_v53  ;;  %v295_v58 = vld [vmem:[%s3097_s25 + $0xd0] sm:$0xff] }
  0x2b   : > { %v583_v14 = vand.u32 4294901760, %v582_v3  ;;  %v3194_v17 = vpack.c.bf16 %v355_v5, %v352_v4  ;;  %v3196_v18 = vsub.f32 %v275_v56, %v352_v4  ;;  %v463_v19 = vsub.f32 %v3129_v29, %v4066_v10  ;;  %v299_v10 = vld [vmem:[%s3097_s25 + $0xf0] sm:$0xff] }
  0x2c   : > { %2646 = vmatprep.subr.bf16.mxu1 %v2645_v8  ;;  %v470_v20 = vsub.f32 %v3140_v39, %v4065_v11  ;;  %v406_v24 = vand.u32 4294901760, %v293_v6  ;;  %v409_v25 = vand.u32 4294901760, %v294_v7  ;;  %v4063_v34 = vand.u32 4294901760, %v3144_v41 }
  0x2d   : > { %2648 = vmatpush3.bf16.msra.mxu1 %v2647_v2  ;;  %v2649_v31 = vpack.c.bf16 %v583_v14, %v576_v9  ;;  %2628 = vmatpush3.bf16.msra.mxu0 %v3194_v17  ;;  %v4062_v35 = vand.u32 4294901760, %v3148_v44  ;;  %v358_v38 = vand.u32 4294901760, %v277_v12  ;;  %v3208_v43 = vsub.f32 %v276_v57, %v355_v5  ;;  %v296_v57 = vld [vmem:[%s3097_s25 + $0xd8] sm:$0xff]  ;;  %v279_v2 = vld [vmem:[%s3097_s25 + $0x50] sm:$0xff] }
  0x2e   : > { %v464_v48 = vand.u32 4294901760, %v463_v19  ;;  %v471_v49 = vand.u32 4294901760, %v470_v20  ;;  %v3210_v50 = vpack.c.bf16 %v409_v25, %v406_v24  ;;  %v3212_v51 = vsub.f32 %v293_v6, %v406_v24  ;;  %v280_v19 = vld [vmem:[%s3097_s25 + $0x58] sm:$0xff] }
  0x2f   : > { %2650 = vmatprep.subr.bf16.mxu1 %v2649_v31  ;;  %v589_v52 = vsub.f32 %v3144_v41, %v4063_v34  ;;  %v596_v53 = vsub.f32 %v3148_v44, %v4062_v35  ;;  %v361_v56 = vand.u32 4294901760, %v278_v30  ;;  %v3223_v61 = vsub.f32 %v294_v7, %v409_v25 }
  0x30   : > { %v2651_v60 = vpack.c.bf16 %v471_v49, %v464_v48  ;;  %2630 = vmatprep.subr.bf16.mxu0 %v3210_v50  ;;  %v4059_v62 = vand.u32 4294901760, %v3153_v47  ;;  %v4058_v1 = vand.u32 4294901760, %v3173_v59  ;;  %v3230_v6 = vsub.f32 %v277_v12, %v358_v38 }
  0x31   : > { %v590_v3 = vand.u32 4294901760, %v589_v52  ;;  %v597_v4 = vand.u32 4294901760, %v596_v53  ;;  %v3228_v5 = vpack.c.bf16 %v361_v56, %v358_v38  ;;  %v412_v9 = vand.u32 4294901760, %v295_v58 }
  0x32   : > { %2652 = vmatpush3.bf16.msra.mxu1 %v2651_v60  ;;  %v477_v8 = vsub.f32 %v3153_v47, %v4059_v62  ;;  %v484_v7 = vsub.f32 %v3173_v59, %v4058_v1  ;;  %v415_v14 = vand.u32 4294901760, %v296_v57  ;;  %v4057_v12 = vand.u32 4294901760, %v3177_v0 }
  0x33   : > { %v2653_v20 = vpack.c.bf16 %v597_v4, %v590_v3  ;;  %2632 = vmatpush3.bf16.msra.mxu0 %v3228_v5  ;;  %v4060_v24 = vand.u32 4294901760, %v3192_v13  ;;  %v364_v25 = vand.u32 4294901760, %v279_v2  ;;  %v3242_v31 = vsub.f32 %v278_v30, %v361_v56  ;;  %v297_v4 = vld [vmem:[%s3097_s25 + $0xe0] sm:$0xff]  ;;  %v298_v30 = vld [vmem:[%s3097_s25 + $0xe8] sm:$0xff] }
  0x34   : > { %v478_v38 = vand.u32 4294901760, %v477_v8  ;;  %v485_v48 = vand.u32 4294901760, %v484_v7  ;;  %v3244_v49 = vpack.c.bf16 %v415_v14, %v412_v9  ;;  %v3246_v52 = vsub.f32 %v295_v58, %v412_v9  ;;  %v281_v9 = vld [vmem:[%s3097_s25 + $0x60] sm:$0xff] }
  0x35   : > { %2654 = vmatprep.subr.bf16.mxu1 %v2653_v20  ;;  %v603_v53 = vsub.f32 %v3177_v0, %v4057_v12  ;;  %v610_v60 = vsub.f32 %v3192_v13, %v4060_v24  ;;  %v367_v3 = vand.u32 4294901760, %v280_v19  ;;  %v3257_v8 = vsub.f32 %v296_v57, %v415_v14  ;;  %v282_v24 = vld [vmem:[%s3097_s25 + $0x68] sm:$0xff] }
  0x36   : > { %v2655_v56 = vpack.c.bf16 %v485_v48, %v478_v38  ;;  %2634 = vmatprep.subr.bf16.mxu0 %v3244_v49  ;;  %v4061_v58 = vand.u32 4294901760, %v3196_v18  ;;  %v4064_v7 = vand.u32 4294901760, %v3208_v43  ;;  %v3264_v62 = vsub.f32 %v279_v2, %v364_v25 }
  0x37   : > { %v604_v20 = vand.u32 4294901760, %v603_v53  ;;  %v611_v12 = vand.u32 4294901760, %v610_v60  ;;  %v3262_v1 = vpack.c.bf16 %v367_v3, %v364_v25  ;;  %v418_v14 = vand.u32 4294901760, %v297_v4 }
  0x38   : > { %2656 = vmatpush3.bf16.msra.mxu1 %v2655_v56  ;;  %v491_v38 = vsub.f32 %v3196_v18, %v4061_v58  ;;  %v498_v57 = vsub.f32 %v3208_v43, %v4064_v7  ;;  %v421_v48 = vand.u32 4294901760, %v298_v30  ;;  %v4067_v2 = vand.u32 4294901760, %v3212_v51 }
  0x39   : > { %4148 = vst [vmem:[#allocation3_spill] sm:$0xff] %v3262_v1  ;;  %v2657_v53 = vpack.c.bf16 %v611_v12, %v604_v20  ;;  %2636 = vmatpush3.bf16.msra.mxu0 %v3262_v1  ;;  %v4070_v25 = vand.u32 4294901760, %v3223_v61  ;;  %v370_v60 = vand.u32 4294901760, %v281_v9  ;;  %v3276_v56 = vsub.f32 %v280_v19, %v367_v3  ;;  %v300_v19 = vld [vmem:[%s3097_s25 + $0xf8] sm:$0xff] }
  0x3a   : > { %v492_v58 = vand.u32 4294901760, %v491_v38  ;;  %v499_v35 = vand.u32 4294901760, %v498_v57  ;;  %v3278_v34 = vpack.c.bf16 %v421_v48, %v418_v14  ;;  %v3280_v7 = vsub.f32 %v297_v4, %v418_v14  ;;  %v283_v14 = vld [vmem:[%s3097_s25 + $0x70] sm:$0xff] }
  0x3b   : > { %2658 = vmatprep.subr.bf16.mxu1 %v2657_v53  ;;  %v617_v12 = vsub.f32 %v3212_v51, %v4067_v2  ;;  %v624_v20 = vsub.f32 %v3223_v61, %v4070_v25  ;;  %v373_v11 = vand.u32 4294901760, %v282_v24  ;;  %v3291_v38 = vsub.f32 %v298_v30, %v421_v48  ;;  %v284_v25 = vld [vmem:[%s3097_s25 + $0x78] sm:$0xff] }
  0x3c   : > { %4149 = vst [vmem:[#allocation4_spill] sm:$0xff] %v3278_v34  ;;  %v2659_v3 = vpack.c.bf16 %v499_v35, %v492_v58  ;;  %2638 = vmatprep.subr.bf16.mxu0 %v3278_v34  ;;  %v4072_v4 = vand.u32 4294901760, %v3230_v6  ;;  %v4074_v57 = vand.u32 4294901760, %v3242_v31  ;;  %v3298_v54 = vsub.f32 %v281_v9, %v370_v60 }
  0x3d   : > { %v618_v53 = vand.u32 4294901760, %v617_v12  ;;  %v625_v2 = vand.u32 4294901760, %v624_v20  ;;  %v3296_v55 = vpack.c.bf16 %v373_v11, %v370_v60  ;;  %v424_v58 = vand.u32 4294901760, %v299_v10 }
  0x3e   : > { %2660 = vmatpush3.bf16.msra.mxu1 %v2659_v3  ;;  %v505_v35 = vsub.f32 %v3230_v6, %v4072_v4  ;;  %v512_v30 = vsub.f32 %v3242_v31, %v4074_v57  ;;  %v427_v48 = vand.u32 4294901760, %v300_v19  ;;  %v4079_v12 = vand.u32 4294901760, %v3246_v52 }
  0x3f   : > { %4150 = vst [vmem:[#allocation5_spill] sm:$0xff] %v3296_v55  ;;  %v2661_v37 = vpack.c.bf16 %v625_v2, %v618_v53  ;;  %2640 = vmatpush3.bf16.msra.mxu0 %v3296_v55  ;;  %v4080_v9 = vand.u32 4294901760, %v3257_v8  ;;  %v376_v60 = vand.u32 4294901760, %v283_v14  ;;  %v3310_v20 = vsub.f32 %v282_v24, %v373_v11 }
  0x40   : > { %v506_v3 = vand.u32 4294901760, %v505_v35  ;;  %v513_v4 = vand.u32 4294901760, %v512_v30  ;;  %v3312_v36 = vpack.c.bf16 %v427_v48, %v424_v58  ;;  %v3314_v57 = vsub.f32 %v299_v10, %v424_v58  ;;  %v265_v10 = vld [vmem:[%s3092_s21] sm:$0xff] }
  0x41   : > { %2662 = vmatprep.subr.bf16.mxu1 %v2661_v37  ;;  %v631_v2 = vsub.f32 %v3246_v52, %v4079_v12  ;;  %v638_v53 = vsub.f32 %v3257_v8, %v4080_v9  ;;  %v379_v45 = vand.u32 4294901760, %v284_v25  ;;  %v3324_v11 = vsub.f32 %v300_v19, %v427_v48 }
  0x42   : > { %4151 = vst [vmem:[#allocation6_spill] sm:$0xff] %v3312_v36  ;;  %v2663_v55 = vpack.c.bf16 %v513_v4, %v506_v3  ;;  %2642 = vmatprep.subr.bf16.mxu0 %v3312_v36  ;;  %v4081_v24 = vand.u32 4294901760, %v3264_v62  ;;  %v4082_v37 = vand.u32 4294901760, %v3276_v56  ;;  %v3331_v12 = vsub.f32 %v283_v14, %v376_v60 }
  0x43   : > { %v632_v35 = vand.u32 4294901760, %v631_v2  ;;  %v639_v30 = vand.u32 4294901760, %v638_v53  ;;  %v3329_v58 = vpack.c.bf16 %v379_v45, %v376_v60  ;;  %v3339_v48 = vand.u32 4294901760, %v266_v42 }
  0x44   : > { %2664 = vmatpush3.bf16.msra.mxu1 %v2663_v55  ;;  %v519_v4 = vsub.f32 %v3264_v62, %v4081_v24  ;;  %v526_v19 = vsub.f32 %v3276_v56, %v4082_v37  ;;  %v4085_v3 = vand.u32 4294901760, %v3280_v7  ;;  %v4091_v2 = vand.u32 4294901760, %v3291_v38 }
  0x45   : > { %4152 = vst [vmem:[#allocation7_spill] sm:$0xff] %v3329_v58  ;;  %4153 = vst [vmem:[#allocation8_spill] sm:$0xff] %v3339_v48  ;;  %v2665_v9 = vpack.c.bf16 %v639_v30, %v632_v35  ;;  %2644 = vmatpush3.bf16.msra.mxu0 %v3329_v58  ;;  %v2677_v55 = vpack.c.bf16 %v3134_v33, %v3132_v32  ;;  %v3346_v14 = vand.u32 4294901760, %v265_v10  ;;  %670 = vmatprep.mubr.f32.mxu1 %v3339_v48 }
  0x46   : > { %v520_v60 = vand.u32 4294901760, %v519_v4  ;;  %v527_v53 = vand.u32 4294901760, %v526_v19  ;;  %v3349_v24 = vsub.f32 %v266_v42, %v3339_v48  ;;  %v645_v37 = vsub.f32 %v3280_v7, %v4085_v3 }
  0x47   : > { %2666 = vmatprep.subr.bf16.mxu1 %v2665_v9  ;;  %v652_v35 = vsub.f32 %v3291_v38, %v4091_v2  ;;  %2678 = vmatprep.subr.bf16.mxu0 %v2677_v55  ;;  %v3359_v30 = vsub.f32 %v265_v10, %v3346_v14  ;;  %v4090_v4 = vand.u32 4294901760, %v3298_v54  ;;  %v4092_v42 = vand.u32 4294901760, %v3310_v20 }
  0x48   : > { %v3363_v19 = vsub.f32 %v284_v25, %v379_v45  ;;  %v2667_v58 = vpack.c.bf16 %v527_v53, %v520_v60  ;;  %v4093_v3 = vand.u32 4294901760, %v3349_v24  ;;  %v646_v36 = vand.u32 4294901760, %v645_v37 }
  0x49   : > { %v653_v48 = vand.u32 4294901760, %v652_v35  ;;  %v437_v9 = vand.u32 4294901760, %v3359_v30  ;;  %v533_v55 = vsub.f32 %v3298_v54, %v4090_v4  ;;  %v540_v10 = vsub.f32 %v3310_v20, %v4092_v42 }
  0x4a   : > { %2668 = vmatpush3.bf16.msra.mxu1 %v2667_v58  ;;  %v432_v45 = vsub.f32 %v3349_v24, %v4093_v3  ;;  %v2679_v25 = vpack.c.bf16 %v3116_v22, %v3110_v16  ;;  %v4098_v37 = vand.u32 4294901760, %v3314_v57  ;;  %v4101_v60 = vand.u32 4294901760, %v3324_v11 }
  0x4b   : > { %v2669_v53 = vpack.c.bf16 %v653_v48, %v646_v36  ;;  %v438_v35 = vsub.f32 %v3359_v30, %v437_v9  ;;  %v534_v4 = vand.u32 4294901760, %v533_v55  ;;  %v541_v2 = vand.u32 4294901760, %v540_v10 }
  0x4c   : > { %v433_v42 = vand.u32 4294901760, %v432_v45  ;;  %v659_v58 = vsub.f32 %v3314_v57, %v4098_v37  ;;  %v666_v3 = vsub.f32 %v3324_v11, %v4101_v60  ;;  %v4100_v34 = vand.u32 4294901760, %v3331_v12 }
  0x4d   : > { %2670 = vmatprep.subr.bf16.mxu1 %v2669_v53  ;;  %v439_v1 = vand.u32 4294901760, %v438_v35  ;;  %v2671_v36 = vpack.c.bf16 %v541_v2, %v534_v4  ;;  %v2681_v48 = vpack.c.bf16 %v3125_v27, %v3123_v26  ;;  %v4099_v55 = vand.u32 4294901760, %v3363_v19 }
  0x4e   : > { %434 = vmatprep.mubr.f32.mxu0 %v433_v42  ;;  %v660_v10 = vand.u32 4294901760, %v659_v58  ;;  %v667_v45 = vand.u32 4294901760, %v666_v3  ;;  %v547_v37 = vsub.f32 %v3331_v12, %v4100_v34  ;;  %v2683_v35 = vpack.c.bf16 %v3140_v39, %v3129_v29 }
  0x4f   : > { %440 = vmatmul.mubr.f32.vlgmr.msra.gmra.mrb[0].mxu0 %v439_v1  ;;  %2672 = vmatpush3.bf16.msra.mxu1 %v2671_v36  ;;  %v554_v53 = vsub.f32 %v3363_v19, %v4099_v55  ;;  %v2685_v42 = vpack.c.bf16 %v3148_v44, %v3144_v41  ;;  %v2687_v1 = vpack.c.bf16 %v3173_v59, %v3153_v47  ;;  %v4155_v36 = vand.u32 4294901760, %v3134_v33 }
  0x50   : > { %2680 = vmatpush3.bf16.msra.mxu0 %v2679_v25  ;;  %v2673_v2 = vpack.c.bf16 %v667_v45, %v660_v10  ;;  %v548_v4 = vand.u32 4294901760, %v547_v37  ;;  %807 = vmatprep.mubr.f32.mxu0 %v3349_v24  ;;  %v2689_v58 = vpack.c.bf16 %v3192_v13, %v3177_v0  ;;  %v4154_v37 = vand.u32 4294901760, %v3132_v32 }
  0x51   : > { %2682 = vmatprep.subr.bf16.mxu0 %v2681_v48  ;;  %v555_v3 = vand.u32 4294901760, %v554_v53  ;;  %v4156_v45 = vand.u32 4294901760, %v3110_v16  ;;  %v4157_v48 = vand.u32 4294901760, %v3116_v22  ;;  %v4158_v55 = vand.u32 4294901760, %v3123_v26 }
  0x52   : > { %2674 = vmatprep.subr.bf16.mxu1 %v2673_v2  ;;  %v2741_v10 = vpack.c.bf16 %v4155_v36, %v4154_v37  ;;  %v4159_v2 = vand.u32 4294901760, %v3125_v27  ;;  %v4160_v60 = vand.u32 4294901760, %v3129_v29  ;;  %v4162_v32 = vand.u32 4294901760, %v3144_v41 }
  0x53   : > { %v2675_v25 = vpack.c.bf16 %v555_v3, %v548_v4  ;;  %v2743_v53 = vpack.c.bf16 %v4157_v48, %v4156_v45  ;;  %v4161_v4 = vand.u32 4294901760, %v3140_v39  ;;  %v4163_v33 = vand.u32 4294901760, %v3148_v44  ;;  %v4177_v48 = vld [vmem:[#allocation8_spill] sm:$0xff] }
  0x54   : > { %v2745_v34 = vpack.c.bf16 %v4159_v2, %v4158_v55  ;;  %2684 = vmatpush3.bf16.msra.mxu0 %v2683_v35  ;;  %v4164_v16 = vand.u32 4294901760, %v3153_v47  ;;  %v4165_v22 = vand.u32 4294901760, %v3173_v59  ;;  %v4166_v26 = vand.u32 4294901760, %v3177_v0  ;;  %v318_v2 = vld [vmem:[%s3097_s25 + $0x188] sm:$0xff] }
  0x55   : > { %v2747_v3 = vpack.c.bf16 %v4161_v4, %v4160_v60  ;;  %v2749_v37 = vpack.c.bf16 %v4163_v33, %v4162_v32  ;;  %v4167_v27 = vand.u32 4294901760, %v3192_v13  ;;  %2676 = vmatpush3.bf16.msra.mxu1 %v2675_v25  ;;  %2686 = vmatprep.subr.bf16.mxu0 %v2685_v42  ;;  %v4168_v29 = vand.u32 4294901760, %v3196_v18  ;;  %v301_v4 = vld [vmem:[%s3097_s25 + $0x100] sm:$0xff]  ;;  %v302_v32 = vld [vmem:[%s3097_s25 + $0x108] sm:$0xff]  ;;  %v4178_v33 = vld [vmem:[#allocation5_spill] sm:$0xff] }
  0x56   : > { %v3432_v36 = vpack.c.bf16 %v4165_v22, %v4164_v16  ;;  %v4169_v39 = vand.u32 4294901760, %v3208_v43  ;;  %v4170_v44 = vand.u32 4294901760, %v3212_v51  ;;  %v4171_v47 = vand.u32 4294901760, %v3223_v61  ;;  %2710 = vmatprep.subr.bf16.mxu1 %v3108_v15  ;;  %v4179_v16 = vld [vmem:[#allocation6_spill] sm:$0xff] }
  0x57   : > { %v3438_v55 = vpack.c.bf16 %v4167_v27, %v4166_v26  ;;  %v4172_v0 = vand.u32 4294901760, %v3230_v6  ;;  %v4173_v13 = vand.u32 4294901760, %v3242_v31  ;;  %v2691_v35 = vpack.c.bf16 %v3208_v43, %v3196_v18 }
  0x58   : > { %v3444_v41 = vpack.c.bf16 %v4169_v39, %v4168_v29  ;;  %v3450_v59 = vpack.c.bf16 %v4171_v47, %v4170_v44  ;;  %672 = vmatmul.mubr.f32.vlgmr.msra.gmra.mrb[0].mxu1 %v3346_v14  ;;  %2688 = vmatpush3.bf16.msra.mxu0 %v2687_v1  ;;  %v2693_v42 = vpack.c.bf16 %v3223_v61, %v3212_v51  ;;  %v4174_v25 = vand.u32 4294901760, %v3349_v24  ;;  %v4175_v24 = vld [vmem:[#allocation3_spill] sm:$0xff]  ;;  %v4176_v1 = vld [vmem:[#allocation4_spill] sm:$0xff]  ;;  %v320_v39 = vld [vmem:[%s3097_s25 + $0x198] sm:$0xff] }
  0x59   : > { %v3456_v60 = vpack.c.bf16 %v4173_v13, %v4172_v0  ;;  %2712 = vmatpush3.bf16.msra.mxu1 %v3114_v21  ;;  %2690 = vmatprep.subr.bf16.mxu0 %v2689_v58  ;;  %v2695_v45 = vpack.c.bf16 %v3242_v31, %v3230_v6  ;;  %v2697_v18 = vpack.c.bf16 %v3257_v8, %v3246_v52  ;;  %v317_v58 = vld [vmem:[%s3097_s25 + $0x180] sm:$0xff]  ;;  %v1247_v22 = vand.u32 4294901760, %v318_v2  ;;  %v4180_v29 = vld [vmem:[#allocation7_spill] sm:$0xff]  ;;  %v303_v47 = vld [vmem:[%s3097_s25 + $0x110] sm:$0xff] }
  0x5a   : > { %2714 = vmatprep.subr.bf16.mxu1 %v3118_v23  ;;  %914 = vmatprep.mubr.f32.mxu1 %v4174_v25  ;;  %v2699_v43 = vpack.c.bf16 %v3276_v56, %v3264_v62  ;;  %v2701_v51 = vpack.c.bf16 %v3291_v38, %v3280_v7  ;;  %v2703_v61 = vpack.c.bf16 %v3310_v20, %v3298_v54  ;;  %v1196_v26 = vand.u32 4294901760, %v301_v4  ;;  %v304_v0 = vld [vmem:[%s3097_s25 + $0x118] sm:$0xff] }
  0x5b   : > { %v2705_v6 = vpack.c.bf16 %v3324_v11, %v3314_v57  ;;  %v2707_v31 = vpack.c.bf16 %v3363_v19, %v3331_v12  ;;  %v1199_v27 = vand.u32 4294901760, %v302_v32  ;;  %v1253_v25 = vand.u32 4294901760, %v320_v39 }
  0x5c   : > { %2692 = vmatpush3.bf16.msra.mxu0 %v2691_v35  ;;  %v3510_v13 = vsub.f32 %v301_v4, %v1196_v26  ;;  %v306_v4 = vld [vmem:[%s3097_s25 + $0x128] sm:$0xff] }
  0x5d   : > { %2716 = vmatpush3.bf16.msra.mxu1 %v3127_v28  ;;  %2694 = vmatprep.subr.bf16.mxu0 %v2693_v42  ;;  %v3512_v35 = vsub.f32 %v302_v32, %v1199_v27 }
  0x5e   : > { %2718 = vmatprep.subr.bf16.mxu1 %v3142_v40 }
  0x5f   : > { %v4102_v32 = vand.u32 4294901760, %v3512_v35 }
  0x60   : > { %2696 = vmatpush3.bf16.msra.mxu0 %v2695_v45  ;;  %v4183_v45 = vand.u32 4294901760, %v3264_v62  ;;  %v4188_v62 = vand.u32 4294901760, %v3310_v20 }
  0x61   : > { %2720 = vmatpush3.bf16.msra.mxu1 %v3151_v46  ;;  %2698 = vmatprep.subr.bf16.mxu0 %v2697_v18  ;;  %v4184_v18 = vand.u32 4294901760, %v3276_v56 }
  0x62   : > { %2722 = vmatprep.subr.bf16.mxu1 %v3175_v63 }
  0x64   : > { %2700 = vmatpush3.bf16.msra.mxu0 %v2699_v43  ;;  %v1205_v43 = vand.u32 4294901760, %v304_v0 }
  0x65   : > { %2724 = vmatpush3.bf16.msra.mxu1 %v3194_v17  ;;  %2702 = vmatprep.subr.bf16.mxu0 %v2701_v51  ;;  %v321_v51 = vld [vmem:[%s3097_s25 + $0x1a0] sm:$0xff] }
  0x66   : > { %2726 = vmatprep.subr.bf16.mxu1 %v3210_v50 }
  0x68   : > { %2704 = vmatpush3.bf16.msra.mxu0 %v2703_v61  ;;  %v322_v61 = vld [vmem:[%s3097_s25 + $0x1a8] sm:$0xff] }
  0x69   : > { %2728 = vmatpush3.bf16.msra.mxu1 %v3228_v5  ;;  %2706 = vmatprep.subr.bf16.mxu0 %v2705_v6  ;;  %v4191_v6 = vand.u32 4294901760, %v3331_v12  ;;  %v3565_v12 = vpack.c.bf16 %v1199_v27, %v1196_v26 }
  0x6a   : > { %2730 = vmatprep.subr.bf16.mxu1 %v3244_v49 }
  0x6b   : > { %4193 = vst [vmem:[#allocation3_spill] sm:$0xff] %v3565_v12 }
  0x6c   : > { %2708 = vmatpush3.bf16.msra.mxu0 %v2707_v31  ;;  %v4192_v31 = vand.u32 4294901760, %v3363_v19 }
  0x6d   : > { %2732 = vmatpush3.bf16.msra.mxu1 %v4175_v24  ;;  %2742 = vmatprep.subr.bf16.mxu0 %v2741_v10  ;;  %v1244_v10 = vand.u32 4294901760, %v317_v58 }
  0x6e   : > { %2734 = vmatprep.subr.bf16.mxu1 %v4176_v1 }
  0x6f   : > { %810 = vmatmul.mubr.f32.vlgmr.msra.gmra.mrb[2].mxu0 %v3359_v30  ;;  %v3504_v44 = vsub.f32 %v317_v58, %v1244_v10  ;;  %v2763_v30 = vpack.c.bf16 %v4184_v18, %v4183_v45  ;;  %v3552_v58 = vpack.c.bf16 %v4192_v31, %v4191_v6  ;;  %v3557_v20 = vpack.c.bf16 %v1247_v22, %v1244_v10  ;;  %v323_v18 = vld [vmem:[%s3097_s25 + $0x1b0] sm:$0xff] }
  0x70   : > { %2744 = vmatpush3.bf16.msra.mxu0 %v2743_v53  ;;  %1084 = vmatprep.mubr.f32.mxu0 %v4177_v48  ;;  %v319_v53 = vld [vmem:[%s3097_s25 + $0x190] sm:$0xff] }
  0x71   : > { %2736 = vmatpush3.bf16.msra.mxu1 %v4178_v33  ;;  %2746 = vmatprep.subr.bf16.mxu0 %v2745_v34  ;;  %v3508_v34 = vsub.f32 %v318_v2, %v1247_v22  ;;  %v1250_v42 = vand.u32 4294901760, %v319_v53  ;;  %v3573_v22 = vsub.f32 %v320_v39, %v1253_v25 }
  0x72   : > { %2738 = vmatprep.subr.bf16.mxu1 %v4179_v16 }
  0x73   : > { %v4111_v2 = vand.u32 4294901760, %v3508_v34  ;;  %v3567_v19 = vpack.c.bf16 %v1253_v25, %v1250_v42  ;;  %v3571_v10 = vsub.f32 %v319_v53, %v1250_v42  ;;  %v3587_v53 = vsub.f32 %v304_v0, %v1205_v43 }
  0x74   : > { %2748 = vmatpush3.bf16.msra.mxu0 %v2747_v3  ;;  %v4181_v3 = vand.u32 4294901760, %v3246_v52  ;;  %v4186_v52 = vand.u32 4294901760, %v3291_v38 }
  0x75   : > { %2740 = vmatpush3.bf16.msra.mxu1 %v4180_v29  ;;  %2750 = vmatprep.subr.bf16.mxu0 %v2749_v37  ;;  %4194 = vst [vmem:[#allocation4_spill] sm:$0xff] %v3567_v19  ;;  %v1430_v39 = vsub.f32 %v3508_v34, %v4111_v2 }
  0x76   : > { %2774 = vmatprep.subr.bf16.mxu1 %v3108_v15  ;;  %v4182_v15 = vand.u32 4294901760, %v3257_v8 }
  0x78   : > { %918 = vmatmul.mubr.f32.vlgmr.msra.gmra.mrb[2].mxu1 %v437_v9  ;;  %2752 = vmatpush3.bf16.msra.mxu0 %v3432_v36  ;;  %v2761_v37 = vpack.c.bf16 %v4182_v15, %v4181_v3  ;;  %v4185_v9 = vand.u32 4294901760, %v3280_v7  ;;  %v1202_v36 = vand.u32 4294901760, %v303_v47  ;;  %v4190_v7 = vand.u32 4294901760, %v3324_v11 }
  0x79   : > { %2776 = vmatpush3.bf16.msra.mxu1 %v3114_v21  ;;  %2754 = vmatprep.subr.bf16.mxu0 %v3438_v55  ;;  %v4187_v21 = vand.u32 4294901760, %v3298_v54  ;;  %v4189_v55 = vand.u32 4294901760, %v3314_v57  ;;  %v268_v54 = vld [vmem:[%s3092_s21 + $0x18] sm:$0xff]  ;;  %v305_v57 = vld [vmem:[%s3097_s25 + $0x120] sm:$0xff]  ;;  %v4110_v11 = vand.u32 4294901760, %v3510_v13  ;;  %v1259_v3 = vand.u32 4294901760, %v322_v61 }
  0x7a   : > { %v3531_v8 = vpack.c.bf16 %v4186_v52, %v4185_v9  ;;  %2778 = vmatprep.subr.bf16.mxu1 %v3118_v23  ;;  %1188 = vmatprep.mubr.f32.mxu1 %v4177_v48  ;;  %v4112_v23 = vand.u32 4294901760, %v3504_v44  ;;  %v1256_v48 = vand.u32 4294901760, %v321_v51  ;;  %v3575_v15 = vpack.c.bf16 %v1205_v43, %v1202_v36 }
  0x7b   : > { %v3540_v56 = vpack.c.bf16 %v4188_v62, %v4187_v21  ;;  %v3546_v38 = vpack.c.bf16 %v4190_v7, %v4189_v55  ;;  %v3577_v45 = vand.u32 4294901760, %v268_v54  ;;  %v1208_v27 = vand.u32 4294901760, %v305_v57  ;;  %v308_v62 = vld [vmem:[%s3097_s25 + $0x138] sm:$0xff] }
  0x7c   : > { %2756 = vmatpush3.bf16.msra.mxu0 %v3444_v41  ;;  %4195 = vst [vmem:[#allocation8_spill] sm:$0xff] %v3575_v15  ;;  %v3580_v41 = vsub.f32 %v303_v47, %v1202_v36  ;;  %v1423_v26 = vsub.f32 %v3504_v44, %v4112_v23  ;;  %v1318_v47 = vsub.f32 %v3512_v35, %v4102_v32  ;;  %v1262_v52 = vand.u32 4294901760, %v323_v18  ;;  %v325_v32 = vld [vmem:[%s3097_s25 + $0x1c0] sm:$0xff]  ;;  %v312_v23 = vld [vmem:[%s3097_s25 + $0x158] sm:$0xff] }
  0x7d   : > { %2780 = vmatpush3.bf16.msra.mxu1 %v3127_v28  ;;  %2758 = vmatprep.subr.bf16.mxu0 %v3450_v59  ;;  %4196 = vst [vmem:[#allocation5_spill] sm:$0xff] %v3577_v45  ;;  %v1211_v28 = vand.u32 4294901760, %v306_v4  ;;  %v324_v59 = vld [vmem:[%s3097_s25 + $0x1b8] sm:$0xff]  ;;  %v3599_v42 = vpack.c.bf16 %v1259_v3, %v1256_v48  ;;  %v3601_v25 = vsub.f32 %v321_v51, %v1256_v48  ;;  %v4106_v43 = vand.u32 4294901760, %v3571_v10 }
  0x7e   : > { %2782 = vmatprep.subr.bf16.mxu1 %v3142_v40  ;;  %v1311_v40 = vsub.f32 %v3510_v13, %v4110_v11  ;;  %v3603_v0 = vsub.f32 %v322_v61, %v1259_v3  ;;  %v3606_v9 = vsub.f32 %v268_v54, %v3577_v45  ;;  %v1265_v36 = vand.u32 4294901760, %v324_v59 }
  0x7f   : > { %4197 = vst [vmem:[#allocation6_spill] sm:$0xff] %v3599_v42  ;;  %v4103_v21 = vand.u32 4294901760, %v3573_v22  ;;  %v1424_v51 = vand.u32 4294901760, %v1423_v26  ;;  %v3614_v61 = vpack.c.bf16 %v1211_v28, %v1208_v27  ;;  %v3616_v55 = vsub.f32 %v305_v57, %v1208_v27 }
  0x80   : > { %2760 = vmatpush3.bf16.msra.mxu0 %v3456_v60  ;;  %v307_v60 = vld [vmem:[%s3097_s25 + $0x130] sm:$0xff]  ;;  %v3618_v7 = vsub.f32 %v306_v4, %v1211_v28  ;;  %v1319_v6 = vand.u32 4294901760, %v1318_v47  ;;  %v4105_v31 = vand.u32 4294901760, %v3580_v41  ;;  %v1217_v48 = vand.u32 4294901760, %v308_v62  ;;  %v326_v28 = vld [vmem:[%s3097_s25 + $0x1c8] sm:$0xff] }
  0x81   : > { %2784 = vmatpush3.bf16.msra.mxu1 %v3151_v46  ;;  %2762 = vmatprep.subr.bf16.mxu0 %v2761_v37  ;;  %4198 = vst [vmem:[#allocation7_spill] sm:$0xff] %v3614_v61  ;;  %v1431_v46 = vand.u32 4294901760, %v1430_v39  ;;  %v1312_v37 = vand.u32 4294901760, %v1311_v40  ;;  %v1214_v54 = vand.u32 4294901760, %v307_v60  ;;  %v4104_v3 = vand.u32 4294901760, %v3587_v53 }
  0x82   : > { %2786 = vmatprep.subr.bf16.mxu1 %v3175_v63  ;;  %v4116_v63 = vand.u32 4294901760, %v3606_v9  ;;  %v3626_v57 = vpack.c.bf16 %v1265_v36, %v1262_v52  ;;  %v1437_v4 = vsub.f32 %v3571_v10, %v4106_v43  ;;  %v3635_v26 = vsub.f32 %v323_v18, %v1262_v52 }
  0x83   : > { %v3637_v27 = vsub.f32 %v324_v59, %v1265_v36  ;;  %v3642_v39 = vpack.c.bf16 %v1431_v46, %v1424_v51  ;;  %v3644_v40 = vpack.c.bf16 %v1319_v6, %v1312_v37  ;;  %v1325_v47 = vsub.f32 %v3580_v41, %v4105_v31  ;;  %v309_v46 = vld [vmem:[%s3097_s25 + $0x140] sm:$0xff]  ;;  %v310_v31 = vld [vmem:[%s3097_s25 + $0x148] sm:$0xff] }
  0x84   : > { %2764 = vmatpush3.bf16.msra.mxu0 %v2763_v30  ;;  %4199 = vst [vmem:[#allocation9_spill] sm:$0xff] %v3626_v57  ;;  %v1444_v30 = vsub.f32 %v3573_v22, %v4103_v21  ;;  %v1268_v21 = vand.u32 4294901760, %v325_v32  ;;  %v1332_v18 = vsub.f32 %v3587_v53, %v4104_v3  ;;  %v4109_v59 = vand.u32 4294901760, %v3616_v55 }
  0x85   : > { %2788 = vmatpush3.bf16.msra.mxu1 %v3194_v17  ;;  %2766 = vmatprep.subr.bf16.mxu0 %v3531_v8  ;;  %v4108_v17 = vand.u32 4294901760, %v3601_v25  ;;  %v4107_v8 = vand.u32 4294901760, %v3603_v0  ;;  %v1294_v52 = vsub.f32 %v3606_v9, %v4116_v63  ;;  %v1438_v36 = vand.u32 4294901760, %v1437_v4  ;;  %v329_v63 = vld [vmem:[%s3097_s25 + $0x1e0] sm:$0xff] }
  0x86   : > { %2790 = vmatprep.subr.bf16.mxu1 %v3210_v50  ;;  %v3650_v50 = vpack.c.bf16 %v1217_v48, %v1214_v54  ;;  %v1445_v51 = vand.u32 4294901760, %v1444_v30  ;;  %v4114_v37 = vand.u32 4294901760, %v3618_v7  ;;  %v3664_v6 = vsub.f32 %v307_v60, %v1214_v54 }
  0x87   : > { %v3666_v3 = vsub.f32 %v308_v62, %v1217_v48  ;;  %v1326_v4 = vand.u32 4294901760, %v1325_v47  ;;  %v3674_v30 = vsub.f32 %v325_v32, %v1268_v21  ;;  %v4113_v43 = vand.u32 4294901760, %v3635_v26  ;;  %v327_v48 = vld [vmem:[%s3097_s25 + $0x1d0] sm:$0xff] }
  0x88   : > { %2768 = vmatpush3.bf16.msra.mxu0 %v3540_v56  ;;  %4200 = vst [vmem:[#allocation10_spill] sm:$0xff] %v3650_v50  ;;  %v1271_v56 = vand.u32 4294901760, %v326_v28  ;;  %v1333_v60 = vand.u32 4294901760, %v1332_v18  ;;  %v1220_v62 = vand.u32 4294901760, %v309_v46  ;;  %v1339_v54 = vsub.f32 %v3616_v55, %v4109_v59 }
  0x89   : > { %2792 = vmatpush3.bf16.msra.mxu1 %v3228_v5  ;;  %2770 = vmatprep.subr.bf16.mxu0 %v3546_v38  ;;  %v1451_v5 = vsub.f32 %v3601_v25, %v4108_v17  ;;  %v1458_v38 = vsub.f32 %v3603_v0, %v4107_v8  ;;  %v328_v8 = vld [vmem:[%s3097_s25 + $0x1d8] sm:$0xff]  ;;  %v1295_v47 = vand.u32 4294901760, %v1294_v52  ;;  %v3687_v32 = vpack.c.bf16 %v1445_v51, %v1438_v36  ;;  %v311_v52 = vld [vmem:[%s3097_s25 + $0x150] sm:$0xff] }
  0x8a   : > { %2794 = vmatprep.subr.bf16.mxu1 %v3244_v49  ;;  %v4115_v49 = vand.u32 4294901760, %v3637_v27  ;;  %v3689_v17 = vpack.c.bf16 %v1271_v56, %v1268_v21  ;;  %v3695_v18 = vsub.f32 %v326_v28, %v1271_v56  ;;  %v1223_v2 = vand.u32 4294901760, %v310_v31 }
  0x8b   : > { %v1452_v59 = vand.u32 4294901760, %v1451_v5  ;;  %v1459_v11 = vand.u32 4294901760, %v1458_v38  ;;  %v1277_v36 = vand.u32 4294901760, %v328_v8  ;;  %v1465_v21 = vsub.f32 %v3635_v26, %v4113_v43 }
  0x8c   : > { %2772 = vmatpush3.bf16.msra.mxu0 %v3552_v58  ;;  %4201 = vst [vmem:[#allocation11_spill] sm:$0xff] %v3689_v17  ;;  %v1346_v58 = vsub.f32 %v3618_v7, %v4114_v37  ;;  %v3707_v28 = vpack.c.bf16 %v1333_v60, %v1326_v4  ;;  %v3709_v51 = vsub.f32 %v309_v46, %v1220_v62  ;;  %v1340_v56 = vand.u32 4294901760, %v1339_v54  ;;  %v330_v54 = vld [vmem:[%s3097_s25 + $0x1e8] sm:$0xff] }
  0x8d   : > { %2796 = vmatpush3.bf16.msra.mxu1 %v4175_v24  ;;  %2806 = vmatprep.subr.bf16.mxu0 %v3557_v20  ;;  %v1274_v24 = vand.u32 4294901760, %v327_v48  ;;  %v1226_v43 = vand.u32 4294901760, %v311_v52  ;;  %v1229_v37 = vand.u32 4294901760, %v312_v23  ;;  %v3717_v4 = vpack.c.bf16 %v1459_v11, %v1452_v59 }
  0x8e   : > { %2798 = vmatprep.subr.bf16.mxu1 %v4176_v1  ;;  %v1472_v1 = vsub.f32 %v3637_v27, %v4115_v49  ;;  %v1347_v38 = vand.u32 4294901760, %v1346_v58  ;;  %v4123_v49 = vand.u32 4294901760, %v3666_v3  ;;  %v3719_v46 = vpack.c.bf16 %v1223_v2, %v1220_v62 }
  0x8f   : > { %1086 = vmatmul.mubr.f32.vlgmr.msra.gmra.mrb[4].mxu0 %v3346_v14  ;;  %v3721_v60 = vsub.f32 %v310_v31, %v1223_v2  ;;  %v1466_v5 = vand.u32 4294901760, %v1465_v21  ;;  %v3734_v11 = vsub.f32 %v328_v8, %v1277_v36  ;;  %v4205_v2 = vand.u32 4294901760, %v3664_v6 }
  0x90   : > { %2808 = vmatpush3.bf16.msra.mxu0 %v3565_v12  ;;  %1296 = vmatprep.mubr.f32.mxu0 %v1295_v47  ;;  %v3725_v47 = vpack.c.bf16 %v1277_v36, %v1274_v24  ;;  %v1473_v58 = vand.u32 4294901760, %v1472_v1  ;;  %v3729_v12 = vld [vmem:[%s3097_s25 + $0x160] sm:$0xff]  ;;  %v1280_v59 = vand.u32 4294901760, %v329_v63  ;;  %v3741_v62 = vpack.c.bf16 %v1347_v38, %v1340_v56  ;;  %v3757_v1 = vld [vmem:[%s3097_s25 + $0x168] sm:$0xff] }
  0x91   : > { %2800 = vmatpush3.bf16.msra.mxu1 %v4178_v33  ;;  %2810 = vmatprep.subr.bf16.mxu0 %v3567_v19  ;;  %v4121_v33 = vand.u32 4294901760, %v3674_v30  ;;  %v4122_v19 = vand.u32 4294901760, %v3695_v18  ;;  %4204 = vst [vmem:[#allocation14_spill] sm:$0xff] %v3734_v11  ;;  %v1353_v31 = vsub.f32 %v3664_v6, %v4205_v2  ;;  %v3743_v21 = vpack.c.bf16 %v1229_v37, %v1226_v43 }
  0x92   : > { %2802 = vmatprep.subr.bf16.mxu1 %v4179_v16  ;;  %4202 = vst [vmem:[#allocation12_spill] sm:$0xff] %v3725_v47  ;;  %v3732_v16 = vsub.f32 %v327_v48, %v1274_v24  ;;  %v1360_v8 = vsub.f32 %v3666_v3, %v4123_v49  ;;  %v1283_v48 = vand.u32 4294901760, %v330_v54  ;;  %v3749_v24 = vsub.f32 %v311_v52, %v1226_v43 }
  0x93   : > { %v3751_v36 = vsub.f32 %v312_v23, %v1229_v37  ;;  %v4124_v56 = vand.u32 4294901760, %v3729_v12  ;;  %v2849_v38 = vpack.c.bf16 %v1473_v58, %v1466_v5  ;;  %v1486_v2 = vsub.f32 %v3695_v18, %v4122_v19  ;;  %v3766_v23 = vld [vmem:[%s3097_s25 + $0x1f0] sm:$0xff]  ;;  %v3769_v37 = vld [vmem:[%s3097_s25 + $0x1f8] sm:$0xff] }
  0x94   : > { %2812 = vmatpush3.bf16.msra.mxu0 %v3575_v15  ;;  %4203 = vst [vmem:[#allocation13_spill] sm:$0xff] %v3732_v16  ;;  %v1354_v52 = vand.u32 4294901760, %v1353_v31  ;;  %v267_v19 = vld [vmem:[%s3092_s21 + $0x10] sm:$0xff]  ;;  %v1361_v49 = vand.u32 4294901760, %v1360_v8  ;;  %v3780_v43 = vpack.c.bf16 %v1283_v48, %v1280_v59  ;;  %v1235_v31 = vand.u32 4294901760, %v3757_v1 }
  0x95   : > { %2804 = vmatpush3.bf16.msra.mxu1 %v4180_v29  ;;  %2814 = vmatprep.subr.bf16.mxu0 %v3599_v42  ;;  %v1479_v29 = vsub.f32 %v3674_v30, %v4121_v33  ;;  %v3773_v33 = vsub.f32 %v329_v63, %v1280_v59  ;;  %v3789_v5 = vsub.f32 %v3729_v12, %v4124_v56  ;;  %v1286_v58 = vand.u32 4294901760, %v3766_v23  ;;  %v3797_v59 = vld [vmem:[%s3097_s25 + $0x178] sm:$0xff] }
  0x96   : > { %2838 = vmatprep.subr.bf16.mxu1 %v3642_v39  ;;  %v3794_v39 = vld [vmem:[%s3097_s25 + $0x170] sm:$0xff]  ;;  %v4206_v8 = vand.u32 4294901760, %v3709_v51  ;;  %v3806_v56 = vand.u32 4294901760, %v267_v19  ;;  %v4209_v42 = vand.u32 4294901760, %v3734_v11  ;;  %v3820_v15 = vsub.f32 %v3757_v1, %v1235_v31 }
  0x97   : > { %v1480_v63 = vand.u32 4294901760, %v1479_v29 }
  0x98   : > { %1190 = vmatmul.mubr.f32.vlgmr.msra.gmra.mrb[4].mxu1 %v3346_v14  ;;  %2816 = vmatpush3.bf16.msra.mxu0 %v3614_v61  ;;  %v3782_v14 = vsub.f32 %v330_v54, %v1283_v48  ;;  %v1487_v54 = vand.u32 4294901760, %v1486_v2  ;;  %v4207_v48 = vand.u32 4294901760, %v3721_v60  ;;  %v1500_v2 = vsub.f32 %v3734_v11, %v4209_v42 }
  0x99   : > { %2840 = vmatpush3.bf16.msra.mxu1 %v3644_v40  ;;  %2818 = vmatprep.subr.bf16.mxu0 %v3626_v57  ;;  %v1289_v40 = vand.u32 4294901760, %v3769_v37  ;;  %v4208_v57 = vand.u32 4294901760, %v3732_v16  ;;  %v3826_v42 = vsub.f32 %v3766_v23, %v1286_v58  ;;  %v4210_v23 = vand.u32 4294901760, %v3749_v24 }
  0x9a   : > { %2842 = vmatprep.subr.bf16.mxu1 %v3687_v32  ;;  %1532 = vmatprep.mubr.f32.mxu1 %v3577_v45  ;;  %v1367_v32 = vsub.f32 %v3709_v51, %v4206_v8  ;;  %v1374_v29 = vsub.f32 %v3721_v60, %v4207_v48  ;;  %v2851_v48 = vpack.c.bf16 %v1361_v49, %v1354_v52  ;;  %v4145_v8 = vand.u32 4294901760, %v3782_v14 }
  0x9b   : > { %v1493_v61 = vsub.f32 %v3732_v16, %v4208_v57  ;;  %v1241_v57 = vand.u32 4294901760, %v3797_v59  ;;  %v3829_v45 = vsub.f32 %v3769_v37, %v1289_v40  ;;  %v2853_v49 = vpack.c.bf16 %v1487_v54, %v1480_v63 }
  0x9c   : > { %2820 = vmatpush3.bf16.msra.mxu0 %v3650_v50  ;;  %v1238_v50 = vand.u32 4294901760, %v3794_v39  ;;  %v1368_v52 = vand.u32 4294901760, %v1367_v32  ;;  %v1375_v1 = vand.u32 4294901760, %v1374_v29  ;;  %v1381_v16 = vsub.f32 %v3749_v24, %v4210_v23 }
  0x9d   : > { %2844 = vmatpush3.bf16.msra.mxu1 %v3707_v28  ;;  %2822 = vmatprep.subr.bf16.mxu0 %v3689_v17  ;;  %v3834_v17 = vsub.f32 %v267_v19, %v3806_v56  ;;  %v1494_v11 = vand.u32 4294901760, %v1493_v61  ;;  %v4211_v37 = vand.u32 4294901760, %v3751_v36  ;;  %v3849_v19 = vsub.f32 %v3797_v59, %v1241_v57 }
  0x9e   : > { %2846 = vmatprep.subr.bf16.mxu1 %v3717_v4  ;;  %v1501_v4 = vand.u32 4294901760, %v1500_v2  ;;  %v3846_v63 = vsub.f32 %v3794_v39, %v1238_v50  ;;  %v4212_v32 = vand.u32 4294901760, %v3773_v33  ;;  %v1520_v2 = vand.u32 4294901760, %v3826_v42 }
  0x9f   : > { %v1388_v28 = vsub.f32 %v3751_v36, %v4211_v37  ;;  %v4213_v59 = vand.u32 4294901760, %v3729_v12  ;;  %v3865_v37 = vpack.c.bf16 %v1289_v40, %v1286_v58  ;;  %v2855_v54 = vpack.c.bf16 %v1375_v1, %v1368_v52 }
  0xa0   : > { %2824 = vmatpush3.bf16.msra.mxu0 %v3719_v46  ;;  %v1507_v29 = vsub.f32 %v3773_v33, %v4212_v32  ;;  %v2857_v32 = vpack.c.bf16 %v1501_v4, %v1494_v11  ;;  %v1382_v61 = vand.u32 4294901760, %v1381_v16  ;;  %v4215_v12 = vand.u32 4294901760, %v3820_v15 }
  0xa1   : > { %2848 = vmatpush3.bf16.msra.mxu1 %v3741_v62  ;;  %2826 = vmatprep.subr.bf16.mxu0 %v3725_v47  ;;  %v1514_v62 = vsub.f32 %v3782_v14, %v4145_v8  ;;  %v3863_v23 = vpack.c.bf16 %v1235_v31, %v4213_v59  ;;  %v1389_v47 = vand.u32 4294901760, %v1388_v28  ;;  %v4214_v8 = vand.u32 4294901760, %v3789_v5 }
  0xa2   : > { %2850 = vmatprep.subr.bf16.mxu1 %v2849_v38  ;;  %v1299_v38 = vand.u32 4294901760, %v3834_v17  ;;  %v1402_v58 = vsub.f32 %v3820_v15, %v4215_v12  ;;  %v4146_v31 = vand.u32 4294901760, %v3846_v63  ;;  %v4147_v40 = vand.u32 4294901760, %v3849_v19 }
  0xa3   : > { %v1395_v39 = vsub.f32 %v3789_v5, %v4214_v8  ;;  %v1508_v52 = vand.u32 4294901760, %v1507_v29  ;;  %v1515_v11 = vand.u32 4294901760, %v1514_v62  ;;  %v1521_v16 = vsub.f32 %v3826_v42, %v1520_v2 }
  0xa4   : > { %2828 = vmatpush3.bf16.msra.mxu0 %v3743_v21  ;;  %v1300_v8 = vsub.f32 %v3834_v17, %v1299_v38  ;;  %v3888_v1 = vpack.c.bf16 %v1241_v57, %v1238_v50  ;;  %v2859_v4 = vpack.c.bf16 %v1389_v47, %v1382_v61  ;;  %v1403_v62 = vand.u32 4294901760, %v1402_v58 }
  0xa5   : > { %2852 = vmatpush3.bf16.msra.mxu1 %v2851_v48  ;;  %2830 = vmatprep.subr.bf16.mxu0 %v3780_v43  ;;  %v4216_v48 = vand.u32 4294901760, %v3829_v45  ;;  %v1396_v29 = vand.u32 4294901760, %v1395_v39  ;;  %v1409_v59 = vsub.f32 %v3846_v63, %v4146_v31  ;;  %v1416_v12 = vsub.f32 %v3849_v19, %v4147_v40 }
  0xa6   : > { %2854 = vmatprep.subr.bf16.mxu1 %v2853_v49  ;;  %v2869_v49 = vpack.c.bf16 %v3508_v34, %v3504_v44  ;;  %v2861_v50 = vpack.c.bf16 %v1515_v11, %v1508_v52  ;;  %v1522_v57 = vand.u32 4294901760, %v1521_v16  ;;  %v1301_v61 = vand.u32 4294901760, %v1300_v8  ;;  %v4217_v8 = vld [vmem:[#allocation3_spill] sm:$0xff] }
  0xa7   : > { %v1528_v28 = vsub.f32 %v3829_v45, %v4216_v48  ;;  %v2863_v39 = vpack.c.bf16 %v1403_v62, %v1396_v29  ;;  %v2873_v58 = vpack.c.bf16 %v3573_v22, %v3571_v10  ;;  %v1410_v48 = vand.u32 4294901760, %v1409_v59  ;;  %v4220_v62 = vld [vmem:[#allocation8_spill] sm:$0xff]  ;;  %v4221_v59 = vld [vmem:[#allocation13_spill] sm:$0xff] }
  0xa8   : > { %2832 = vmatpush3.bf16.msra.mxu0 %v3863_v23  ;;  %v1417_v31 = vand.u32 4294901760, %v1416_v12  ;;  %v2877_v11 = vpack.c.bf16 %v3603_v0, %v3601_v25  ;;  %v2879_v16 = vpack.c.bf16 %v3618_v7, %v3616_v55  ;;  %v2887_v29 = vpack.c.bf16 %v3721_v60, %v3709_v51  ;;  %v4222_v12 = vld [vmem:[#allocation14_spill] sm:$0xff] }
  0xa9   : > { %2856 = vmatpush3.bf16.msra.mxu1 %v2855_v54  ;;  %2834 = vmatprep.subr.bf16.mxu0 %v3865_v37  ;;  %v1529_v47 = vand.u32 4294901760, %v1528_v28  ;;  %v2871_v54 = vpack.c.bf16 %v3512_v35, %v3510_v13  ;;  %v2881_v28 = vpack.c.bf16 %v3637_v27, %v3635_v26 }
  0xaa   : > { %2858 = vmatprep.subr.bf16.mxu1 %v2857_v32  ;;  %v2875_v32 = vpack.c.bf16 %v3587_v53, %v3580_v41  ;;  %v2867_v52 = vpack.c.bf16 %v1417_v31, %v1410_v48  ;;  %v2883_v31 = vpack.c.bf16 %v3666_v3, %v3664_v6  ;;  %v2897_v48 = vpack.c.bf16 %v3829_v45, %v3826_v42 }
  0xab   : > { %v2865_v40 = vpack.c.bf16 %v1529_v47, %v1522_v57  ;;  %v4223_v57 = vld [vmem:[#allocation6_spill] sm:$0xff]  ;;  %v2891_v47 = vpack.c.bf16 %v3751_v36, %v3749_v24 }
  0xac   : > { %2836 = vmatpush3.bf16.msra.mxu0 %v3888_v1 }
  0xad   : > { %2860 = vmatpush3.bf16.msra.mxu1 %v2859_v4  ;;  %2870 = vmatprep.subr.bf16.mxu0 %v2869_v49  ;;  %v4218_v4 = vld [vmem:[#allocation4_spill] sm:$0xff]  ;;  %v4219_v49 = vand.u32 4294901760, %v3606_v9 }
  0xae   : > { %2862 = vmatprep.subr.bf16.mxu1 %v2861_v50  ;;  %v2889_v50 = vpack.c.bf16 %v4222_v12, %v4221_v59 }
  0xaf   : > { %1302 = vmatmul.mubr.f32.vlgmr.msra.gmra.mrb[6].mxu0 %v1301_v61  ;;  %v4224_v61 = vld [vmem:[#allocation7_spill] sm:$0xff] }
  0xb0   : > { %2872 = vmatpush3.bf16.msra.mxu0 %v2871_v54  ;;  %1669 = vmatprep.mubr.f32.mxu0 %v3606_v9  ;;  %v2893_v9 = vpack.c.bf16 %v3782_v14, %v3773_v33  ;;  %v4225_v54 = vld [vmem:[#allocation9_spill] sm:$0xff] }
  0xb1   : > { %2864 = vmatpush3.bf16.msra.mxu1 %v2863_v39  ;;  %2874 = vmatprep.subr.bf16.mxu0 %v2873_v58  ;;  %v2895_v39 = vpack.c.bf16 %v3820_v15, %v3789_v5  ;;  %v4226_v58 = vld [vmem:[#allocation10_spill] sm:$0xff] }
  0xb2   : > { %2866 = vmatprep.subr.bf16.mxu1 %v2865_v40  ;;  %v2885_v40 = vpack.c.bf16 %v3695_v18, %v3674_v30 }
  0xb4   : > { %2876 = vmatpush3.bf16.msra.mxu0 %v2875_v32  ;;  %v4227_v32 = vld [vmem:[#allocation11_spill] sm:$0xff] }
  0xb5   : > { %2868 = vmatpush3.bf16.msra.mxu1 %v2867_v52  ;;  %2878 = vmatprep.subr.bf16.mxu0 %v2877_v11  ;;  %v2899_v52 = vpack.c.bf16 %v3849_v19, %v3846_v63  ;;  %v4228_v11 = vand.u32 4294901760, %v3504_v44  ;;  %v4235_v44 = vand.u32 4294901760, %v3580_v41  ;;  %v4241_v41 = vand.u32 4294901760, %v3618_v7 }
  0xb6   : > { %2902 = vmatprep.subr.bf16.mxu1 %v3557_v20  ;;  %v4246_v7 = vand.u32 4294901760, %v3674_v30  ;;  %v4251_v30 = vand.u32 4294901760, %v4222_v12  ;;  %v4257_v12 = vand.u32 4294901760, %v3820_v15 }
  0xb8   : > { %1534 = vmatmul.mubr.f32.vlgmr.msra.gmra.mrb[6].mxu1 %v3806_v56  ;;  %2880 = vmatpush3.bf16.msra.mxu0 %v2879_v16  ;;  %v4229_v16 = vand.u32 4294901760, %v3508_v34  ;;  %v4236_v34 = vand.u32 4294901760, %v3587_v53  ;;  %v4242_v53 = vand.u32 4294901760, %v3635_v26  ;;  %v4247_v26 = vand.u32 4294901760, %v3695_v18 }
  0xb9   : > { %2904 = vmatpush3.bf16.msra.mxu1 %v4217_v8  ;;  %2882 = vmatprep.subr.bf16.mxu0 %v2881_v28  ;;  %v4252_v18 = vand.u32 4294901760, %v3749_v24  ;;  %v4258_v24 = vand.u32 4294901760, %v3829_v45 }
  0xba   : > { %2906 = vmatprep.subr.bf16.mxu1 %v4218_v4  ;;  %1776 = vmatprep.mubr.f32.mxu1 %v4219_v49  ;;  %v2933_v28 = vpack.c.bf16 %v4229_v16, %v4228_v11  ;;  %v4232_v49 = vand.u32 4294901760, %v3512_v35  ;;  %v4237_v35 = vld [vmem:[#allocation5_spill] sm:$0xff]  ;;  %v4243_v11 = vand.u32 4294901760, %v3637_v27  ;;  %v2949_v27 = vpack.c.bf16 %v4247_v26, %v4246_v7 }
  0xbc   : > { %2884 = vmatpush3.bf16.msra.mxu0 %v2883_v31  ;;  %v4230_v31 = vld [vmem:[#allocation12_spill] sm:$0xff]  ;;  %v2945_v16 = vpack.c.bf16 %v4243_v11, %v4242_v53 }
  0xbd   : > { %2908 = vmatpush3.bf16.msra.mxu1 %v4220_v62  ;;  %2886 = vmatprep.subr.bf16.mxu0 %v2885_v40  ;;  %v4231_v40 = vand.u32 4294901760, %v3510_v13  ;;  %v2939_v13 = vpack.c.bf16 %v4236_v34, %v4235_v44 }
  0xbe   : > { %2910 = vmatprep.subr.bf16.mxu1 %v4223_v57 }
  0xc0   : > { %2888 = vmatpush3.bf16.msra.mxu0 %v2887_v29  ;;  %v2935_v29 = vpack.c.bf16 %v4232_v49, %v4231_v40 }
  0xc1   : > { %2912 = vmatpush3.bf16.msra.mxu1 %v4224_v61  ;;  %2890 = vmatprep.subr.bf16.mxu0 %v2889_v50  ;;  %v4233_v50 = vand.u32 4294901760, %v3571_v10  ;;  %v4238_v10 = vand.u32 4294901760, %v3601_v25  ;;  %v4244_v25 = vand.u32 4294901760, %v3664_v6 }
  0xc2   : > { %2914 = vmatprep.subr.bf16.mxu1 %v4225_v54 }
  0xc4   : > { %2892 = vmatpush3.bf16.msra.mxu0 %v2891_v47  ;;  %v4234_v47 = vand.u32 4294901760, %v3573_v22  ;;  %v4239_v22 = vand.u32 4294901760, %v3603_v0  ;;  %v4245_v0 = vand.u32 4294901760, %v3666_v3  ;;  %v4250_v3 = vand.u32 4294901760, %v4221_v59 }
  0xc5   : > { %2916 = vmatpush3.bf16.msra.mxu1 %v4226_v58  ;;  %2894 = vmatprep.subr.bf16.mxu0 %v2893_v9  ;;  %v4256_v59 = vand.u32 4294901760, %v3789_v5 }
  0xc6   : > { %2918 = vmatprep.subr.bf16.mxu1 %v4227_v32  ;;  %v2937_v9 = vpack.c.bf16 %v4234_v47, %v4233_v50 }
  0xc8   : > { %2896 = vmatpush3.bf16.msra.mxu0 %v2895_v39  ;;  %v2941_v39 = vpack.c.bf16 %v4239_v22, %v4238_v10 }
  0xc9   : > { %2920 = vmatpush3.bf16.msra.mxu1 %v3719_v46  ;;  %2898 = vmatprep.subr.bf16.mxu0 %v2897_v48  ;;  %v4240_v48 = vand.u32 4294901760, %v3616_v55  ;;  %v2947_v55 = vpack.c.bf16 %v4245_v0, %v4244_v25 }
  0xca   : > { %2922 = vmatprep.subr.bf16.mxu1 %v4230_v31 }
  0xcc   : > { %2900 = vmatpush3.bf16.msra.mxu0 %v2899_v52  ;;  %v2943_v52 = vpack.c.bf16 %v4241_v41, %v4240_v48 }
  0xcd   : > { %2924 = vmatpush3.bf16.msra.mxu1 %v3743_v21  ;;  %2934 = vmatprep.subr.bf16.mxu0 %v2933_v28 }
  0xce   : > { %2926 = vmatprep.subr.bf16.mxu1 %v3780_v43 }
  0xcf   : > { %1672 = vmatmul.mubr.f32.vlgmr.msra.gmra.mrb[8].mxu0 %v3834_v17  ;;  %v4249_v17 = vand.u32 4294901760, %v3721_v60  ;;  %v4255_v60 = vand.u32 4294901760, %v3782_v14  ;;  %v4260_v14 = vand.u32 4294901760, %v3849_v19 }
  0xd0   : > { %2936 = vmatpush3.bf16.msra.mxu0 %v2935_v29  ;;  %1946 = vmatprep.mubr.f32.mxu0 %v4237_v35 }
  0xd1   : > { %2928 = vmatpush3.bf16.msra.mxu1 %v3863_v23  ;;  %2938 = vmatprep.subr.bf16.mxu0 %v2937_v9 }
  0xd2   : > { %2930 = vmatprep.subr.bf16.mxu1 %v3865_v37 }
  0xd4   : > { %2940 = vmatpush3.bf16.msra.mxu0 %v2939_v13 }
  0xd5   : > { %2932 = vmatpush3.bf16.msra.mxu1 %v3888_v1  ;;  %2942 = vmatprep.subr.bf16.mxu0 %v2941_v39 }
  0xd6   : > { %2966 = vmatprep.subr.bf16.mxu1 %v3557_v20  ;;  %v4248_v20 = vand.u32 4294901760, %v3709_v51  ;;  %v4254_v51 = vand.u32 4294901760, %v3773_v33  ;;  %v4259_v33 = vand.u32 4294901760, %v3846_v63 }
  0xd8   : > { %1780 = vmatmul.mubr.f32.vlgmr.msra.gmra.mrb[8].mxu1 %v1299_v38  ;;  %2944 = vmatpush3.bf16.msra.mxu0 %v2943_v52  ;;  %v2951_v6 = vpack.c.bf16 %v4249_v17, %v4248_v20  ;;  %v2953_v38 = vpack.c.bf16 %v4251_v30, %v4250_v3 }
  0xd9   : > { %2968 = vmatpush3.bf16.msra.mxu1 %v4217_v8  ;;  %2946 = vmatprep.subr.bf16.mxu0 %v2945_v16  ;;  %v4253_v8 = vand.u32 4294901760, %v3751_v36  ;;  %v2961_v36 = vpack.c.bf16 %v4258_v24, %v1520_v2 }
  0xda   : > { %2970 = vmatprep.subr.bf16.mxu1 %v4218_v4  ;;  %2050 = vmatprep.mubr.f32.mxu1 %v4237_v35 }
  0xdb   : > { %v2955_v4 = vpack.c.bf16 %v4253_v8, %v4252_v18  ;;  %v2189_v18 = vld [vmem:[%s4055_s2] ss:$0 sm:$0xff] (!%p2188_p7) }
  0xdc   : > { %2948 = vmatpush3.bf16.msra.mxu0 %v2947_v55 }
  0xdd   : > { %2972 = vmatpush3.bf16.msra.mxu1 %v4220_v62  ;;  %2950 = vmatprep.subr.bf16.mxu0 %v2949_v27  ;;  %v2957_v62 = vpack.c.bf16 %v4255_v60, %v4254_v51 }
  0xde   : > { %2974 = vmatprep.subr.bf16.mxu1 %v4223_v57  ;;  %v2959_v57 = vpack.c.bf16 %v4257_v12, %v4256_v59 }
  0xe0   : > { %2952 = vmatpush3.bf16.msra.mxu0 %v2951_v6  ;;  %v264_v6 = vld [vmem:[#allocation2] sm:$0xff] }
  0xe1   : > { %2976 = vmatpush3.bf16.msra.mxu1 %v4224_v61  ;;  %2954 = vmatprep.subr.bf16.mxu0 %v2953_v38  ;;  %v2963_v61 = vpack.c.bf16 %v4260_v14, %v4259_v33 }
  0xe2   : > { %2978 = vmatprep.subr.bf16.mxu1 %v4225_v54 }
  0xe4   : > { %2956 = vmatpush3.bf16.msra.mxu0 %v2955_v4 }
  0xe5   : > { %2980 = vmatpush3.bf16.msra.mxu1 %v4226_v58  ;;  %2958 = vmatprep.subr.bf16.mxu0 %v2957_v62 }
  0xe6   : > { %2982 = vmatprep.subr.bf16.mxu1 %v4227_v32 }
  0xe8   : > { %2960 = vmatpush3.bf16.msra.mxu0 %v2959_v57 }
  0xe9   : > { %2984 = vmatpush3.bf16.msra.mxu1 %v3719_v46  ;;  %2962 = vmatprep.subr.bf16.mxu0 %v2961_v36 }
  0xea   : > { %2986 = vmatprep.subr.bf16.mxu1 %v4230_v31 }
  0xec   : > { %2964 = vmatpush3.bf16.msra.mxu0 %v2963_v61 }
  0xed   : > { %2988 = vmatpush3.bf16.msra.mxu1 %v3743_v21 }
  0xee   : > { %2990 = vmatprep.subr.bf16.mxu1 %v3780_v43 }
  0xef   : > { %1948 = vmatmul.mubr.f32.vlgmr.msra.gmra.mrb[10].mxu0 %v3806_v56 }
  0xf1   : > { %2992 = vmatpush3.bf16.msra.mxu1 %v3863_v23 }
  0xf2   : > { %2994 = vmatprep.subr.bf16.mxu1 %v3865_v37 }
  0xf5   : > { %2996 = vmatpush3.bf16.msra.mxu1 %v3888_v1 }
  0xf8   : > { %2052 = vmatmul.mubr.f32.vlgmr.msra.gmra.mrb[10].mxu1 %v3806_v56 }
 0x122   : > { %v2225_v15 = vpop.f32.mrb[0].mxu0 }
 0x123   : > { %v2226_v45 = vpop.f32.mrb[1].mxu0 }
 0x124   : > { %v2227_v46 = vadd.f32 %v2226_v45, %v2225_v15 }
 0x12b   : > { %v2260_v5 = vpop.f32.mrb[0].mxu1 }
 0x12c   : > { %v2261_v42 = vpop.f32.mrb[1].mxu1 }
 0x12d   : > { %v2262_v63 = vadd.f32 %v2261_v42, %v2260_v5 }
 0x12f   : > { %v674_v19 = vadd.f32 %v2262_v63, %v2227_v46 }
 0x142   : > { %v2295_v21 = vpop.f32.mrb[2].mxu0 }
 0x143   : > { %v2296_v2 = vpop.f32.mrb[3].mxu0 }
 0x144   : > { %v2297_v43 = vadd.f32 %v2296_v2, %v2295_v21 }
 0x146   : > { %v812_v54 = vadd.f32 %v2297_v43, %v674_v19 }
 0x14b   : > { %v2330_v58 = vpop.f32.mrb[2].mxu1 }
 0x14c   : > { %v2331_v32 = vpop.f32.mrb[3].mxu1 }
 0x14d   : > { %v2332_v23 = vadd.f32 %v2331_v32, %v2330_v58 }
 0x14f   : > { %v920_v28 = vadd.f32 %v2332_v23, %v812_v54 }
 0x162   : > { %v2365_v37 = vpop.f32.mrb[4].mxu0 }
 0x163   : > { %v2366_v31 = vpop.f32.mrb[5].mxu0 }
 0x164   : > { %v2367_v1 = vadd.f32 %v2366_v31, %v2365_v37 }
 0x166   : > { %v1088_v40 = vadd.f32 %v2367_v1, %v920_v28 }
 0x16b   : > { %v2400_v56 = vpop.f32.mrb[4].mxu1 }
 0x16c   : > { %v2401_v49 = vpop.f32.mrb[5].mxu1 }
 0x16d   : > { %v2402_v29 = vadd.f32 %v2401_v49, %v2400_v56 }
 0x16f   : > { %v1192_v50 = vadd.f32 %v2402_v29, %v1088_v40 }
 0x182   : > { %v2435_v47 = vpop.f32.mrb[6].mxu0 }
 0x183   : > { %v2436_v9 = vpop.f32.mrb[7].mxu0 }
 0x184   : > { %v2437_v44 = vadd.f32 %v2436_v9, %v2435_v47 }
 0x186   : > { %v1304_v34 = vadd.f32 %v2437_v44, %v1192_v50 }
 0x18b   : > { %v2470_v13 = vpop.f32.mrb[6].mxu1 }
 0x18c   : > { %v2471_v35 = vpop.f32.mrb[7].mxu1 }
 0x18d   : > { %v2472_v10 = vadd.f32 %v2471_v35, %v2470_v13 }
 0x18f   : > { %v1536_v22 = vadd.f32 %v2472_v10, %v1304_v34 }
 0x1a2   : > { %v2505_v39 = vpop.f32.mrb[8].mxu0 }
 0x1a3   : > { %v2506_v48 = vpop.f32.mrb[9].mxu0 }
 0x1a4   : > { %v2507_v41 = vadd.f32 %v2506_v48, %v2505_v39 }
 0x1a6   : > { %v1674_v52 = vadd.f32 %v2507_v41, %v1536_v22 }
 0x1ab   : > { %v2540_v53 = vpop.f32.mrb[8].mxu1 }
 0x1ac   : > { %v2541_v11 = vpop.f32.mrb[9].mxu1 }
 0x1ad   : > { %v2542_v16 = vadd.f32 %v2541_v11, %v2540_v53 }
 0x1af   : > { %v1782_v25 = vadd.f32 %v2542_v16, %v1674_v52 }
 0x1c2   : > { %v2575_v0 = vpop.f32.mrb[10].mxu0 }
 0x1c3   : > { %v2576_v55 = vpop.f32.mrb[11].mxu0 }
 0x1c4   : > { %v2577_v7 = vadd.f32 %v2576_v55, %v2575_v0 }
 0x1c6   : > { %v1950_v26 = vadd.f32 %v2577_v7, %v1782_v25 }
 0x1cb   : > { %v2610_v27 = vpop.f32.mrb[10].mxu1 }
 0x1cc   : > { %v2611_v20 = vpop.f32.mrb[11].mxu1 }
 0x1cd   : > { %v2612_v17 = vadd.f32 %v2611_v20, %v2610_v27  ;;  %2062 = sbr.rel (%p2188_p7) target bundleno = 478 (0x1de), region = 40 }
 0x1cf   : > { %v2054_v3 = vadd.f32 %v2612_v17, %v1950_v26 }
 0x1d1   : > { %v2057_v30 = vadd.f32 %v2054_v3, %v264_v6 }
 0x1d3   : > { %2058 = vst [vmem:[#allocation2] sm:$0xff] %v2057_v30 }
 0x1da   : > { %v2063_v38 = vld [vmem:[#allocation2] sm:$0xff] }
 0x1db   : > { %v2071_v8 = vadd.f32 %v2189_v18, %v2063_v38 }
 0x1dd   : > { %2072 = vst [vmem:[%s4056_s3] sm:$0xff] %v2071_v8 }
 0x1de PF: > { %s13_s14 = sadd.s32 1, %s3044_s14   ;;  %s4261_s12 = smov %s3040_s13 }
 0x1df   : > { %p10_p8 = scmp.ge.s32.totalorder %s13_s14, 6   ;;  %s4262_s13 = smov %s4264_s15 }
 0x1e1   :  { %12 = sbr.rel (!%p10_p8) target bundleno = 2 (0x2), region = 76 }

// kernel: forward.2
= control target key start
LH: loop header
LB: loop body
LE: loop exit
PB: predicated region body
PF: predicated region fallthrough
CT: control target
= control target key end

     0   :  { %s5335_s15 = smov 0   ;;  %s8124_s0 = inlined_call_operand.vmem [shape: f32[2,16,256], index: 0, kind: input, shape index: {}]   ;;  %s8125_s1 = inlined_call_operand.vmem [shape: f32[256,256], index: 1, kind: input, shape index: {}]   ;;  %s8126_s2 = inlined_call_operand.vmem [shape: f32[256,256], index: 2, kind: input, shape index: {}]   ;;  %s8127_s3 = inlined_call_operand.vmem [shape: f32[256,128], index: 3, kind: input, shape index: {}]   ;;  %s8128_s4 = inlined_call_operand.vmem [shape: f32[2,16,128], index: 4, kind: output, shape index: {}]  }
   0x1 LB: > { %s4049_s16 = sadd.s32 4294967295, %s5308_s15   ;;  %p4053_p0 = scmp.ge.s32.totalorder %s5308_s15, 1  ;;  %s5308_s15 = sphi %s5335_s15, %s14_s15  }
   0x2   : > { %p162_p1 = scmp.lt.s32.totalorder %s5308_s15, 3 }
   0x4   : > { %p163_p2 = pnand %p4053_p0, %p162_p1 }
   0x6   : > { %166 = sbr.rel (%p163_p2) target bundleno = 1023 (0x3ff), region = 36 }
   0xd   : > { %v203_v0 = vld [vmem:[%s8125_s1 + $0x8] sm:$0xff]  ;;  %v205_v1 = vld [vmem:[%s8125_s1 + $0x18] sm:$0xff]  ;;  %v202_v7 = vld [vmem:[%s8125_s1] sm:$0xff]  ;;  %p6004_p3 = scmp.lt.s32.totalorder %s4049_s16, 1 }
   0xe   : > { %v1613_v2 = vld [vmem:[%s8126_s2 + $0x8] sm:$0xff]  ;;  %v266_v3 = vand.u32 4294901760, %v203_v0  ;;  %v270_v4 = vand.u32 4294901760, %v205_v1  ;;  %v1615_v5 = vld [vmem:[%s8126_s2 + $0x18] sm:$0xff]  ;;  %v204_v8 = vld [vmem:[%s8125_s1 + $0x10] sm:$0xff]  ;;  %v268_v10 = vand.u32 4294901760, %v202_v7 }
   0xf   : > { %v1676_v6 = vand.u32 4294901760, %v1613_v2  ;;  %v1680_v9 = vand.u32 4294901760, %v1615_v5  ;;  %v272_v11 = vand.u32 4294901760, %v204_v8  ;;  %v1612_v12 = vld [vmem:[%s8126_s2] sm:$0xff]  ;;  %v1614_v13 = vld [vmem:[%s8126_s2 + $0x10] sm:$0xff]  ;;  %v207_v14 = vld [vmem:[%s8125_s1 + $0x28] sm:$0xff] }
  0x10   : > { %v5370_v15 = vpack.c.bf16 %v270_v4, %v266_v3  ;;  %v5372_v16 = vsub.f32 %v203_v0, %v266_v3  ;;  %v5374_v17 = vsub.f32 %v205_v1, %v270_v4  ;;  %v209_v19 = vld [vmem:[%s8125_s1 + $0x38] sm:$0xff]  ;;  %v1617_v20 = vld [vmem:[%s8126_s2 + $0x28] sm:$0xff]  ;;  %v5393_v25 = vsub.f32 %v202_v7, %v268_v10  ;;  %v206_v26 = vld [vmem:[%s8125_s1 + $0x20] sm:$0xff]  ;;  %s9546_s16 = smov (!%p6004_p3, %s4049_s16), 1 }
  0x11   : > { %v5376_v18 = vsub.f32 %v1613_v2, %v1676_v6  ;;  %v1619_v21 = vld [vmem:[%s8126_s2 + $0x38] sm:$0xff]  ;;  %v5387_v22 = vpack.c.bf16 %v1680_v9, %v1676_v6  ;;  %v5389_v23 = vsub.f32 %v1615_v5, %v1680_v9  ;;  %v5391_v24 = vpack.c.bf16 %v272_v11, %v268_v10  ;;  %v208_v31 = vld [vmem:[%s8125_s1 + $0x30] sm:$0xff]  ;;  %v1616_v36 = vld [vmem:[%s8126_s2 + $0x20] sm:$0xff]  ;;  %s4060_s14 = sshll.u32 %s9546_s16, 5  ;;  %s4061_s30 = sshll.u32 %s9546_s16, 4 }
  0x12   : > { %8701 = vst [vmem:[#allocation2_spill] sm:$0xff] %v5370_v15  ;;  %8702 = vst [vmem:[#allocation3_spill] sm:$0xff] %v5372_v16  ;;  %4291 = vmatprep.subr.bf16.mxu0 %v5370_v15  ;;  %v5399_v27 = vsub.f32 %v204_v8, %v272_v11  ;;  %v1678_v28 = vand.u32 4294901760, %v1612_v12  ;;  %v1682_v29 = vand.u32 4294901760, %v1614_v13  ;;  %v274_v30 = vand.u32 4294901760, %v207_v14  ;;  %v1618_v37 = vld [vmem:[%s8126_s2 + $0x30] sm:$0xff]  ;;  %s6123_s25 = scalar_lea.vmem %s8124_s0, %s4060_s14  ;;  %s197_s7 = scalar_lea.vmem %s8128_s4, %s4061_s30 }
  0x13   : > { %8703 = vst [vmem:[#allocation4_spill] sm:$0xff] %v5374_v17  ;;  %8704 = vst [vmem:[#allocation5_spill] sm:$0xff] %v5376_v18  ;;  %4675 = vmatprep.subr.bf16.mxu1 %v5387_v22  ;;  %4293 = vmatpush1.bf16.msra.mxu0 %v5391_v24  ;;  %v278_v32 = vand.u32 4294901760, %v209_v19  ;;  %v1684_v33 = vand.u32 4294901760, %v1617_v20  ;;  %v1688_v34 = vand.u32 4294901760, %v1619_v21  ;;  %v276_v35 = vand.u32 4294901760, %v206_v26 }
  0x14   : > { %8705 = vst [vmem:[#allocation6_spill] sm:$0xff] %v5387_v22  ;;  %8706 = vst [vmem:[#allocation7_spill] sm:$0xff] %v5389_v23  ;;  %v5412_v38 = vpack.c.bf16 %v1682_v29, %v1678_v28  ;;  %v5414_v39 = vsub.f32 %v1612_v12, %v1678_v28  ;;  %v5416_v40 = vsub.f32 %v1614_v13, %v1682_v29  ;;  %v211_v42 = vld [vmem:[%s8125_s1 + $0x48] sm:$0xff]  ;;  %v213_v43 = vld [vmem:[%s8125_s1 + $0x58] sm:$0xff]  ;;  %v280_v51 = vand.u32 4294901760, %v208_v31 }
  0x15   : > { %8707 = vst [vmem:[#allocation8_spill] sm:$0xff] %v5391_v24  ;;  %8708 = vst [vmem:[#allocation9_spill] sm:$0xff] %v5393_v25  ;;  %v5418_v41 = vsub.f32 %v207_v14, %v274_v30  ;;  %v1621_v44 = vld [vmem:[%s8126_s2 + $0x48] sm:$0xff]  ;;  %v5429_v45 = vpack.c.bf16 %v278_v32, %v274_v30  ;;  %v5431_v46 = vsub.f32 %v209_v19, %v278_v32  ;;  %v1623_v49 = vld [vmem:[%s8126_s2 + $0x58] sm:$0xff]  ;;  %v1686_v53 = vand.u32 4294901760, %v1616_v36 }
  0x16   : > { %8709 = vst [vmem:[#allocation10_spill] sm:$0xff] %v5399_v27  ;;  %8710 = vst [vmem:[#allocation11_spill] sm:$0xff] %v5412_v38  ;;  %v5433_v47 = vpack.c.bf16 %v1688_v34, %v1684_v33  ;;  %v5435_v48 = vsub.f32 %v1617_v20, %v1684_v33  ;;  %4677 = vmatpush1.bf16.msra.mxu1 %v5412_v38  ;;  %v5441_v50 = vsub.f32 %v1619_v21, %v1688_v34  ;;  %v210_v58 = vld [vmem:[%s8125_s1 + $0x40] sm:$0xff]  ;;  %v212_v59 = vld [vmem:[%s8125_s1 + $0x50] sm:$0xff] }
  0x17   : > { %8711 = vst [vmem:[#allocation12_spill] sm:$0xff] %v5414_v39  ;;  %8712 = vst [vmem:[#allocation13_spill] sm:$0xff] %v5416_v40  ;;  %v5443_v52 = vsub.f32 %v206_v26, %v276_v35  ;;  %4295 = vmatprep.subr.bf16.mxu0 %v5429_v45  ;;  %v1690_v54 = vand.u32 4294901760, %v1618_v37  ;;  %v282_v55 = vand.u32 4294901760, %v211_v42  ;;  %v286_v56 = vand.u32 4294901760, %v213_v43  ;;  %v1620_v0 = vld [vmem:[%s8126_s2 + $0x40] sm:$0xff] }
  0x18   : > { %8713 = vst [vmem:[#allocation14_spill] sm:$0xff] %v5418_v41  ;;  %8714 = vst [vmem:[#allocation15_spill] sm:$0xff] %v5429_v45  ;;  %4679 = vmatprep.subr.bf16.mxu1 %v5433_v47  ;;  %v1692_v57 = vand.u32 4294901760, %v1621_v44  ;;  %v5453_v60 = vpack.c.bf16 %v280_v51, %v276_v35  ;;  %v5455_v61 = vsub.f32 %v208_v31, %v280_v51  ;;  %v1696_v63 = vand.u32 4294901760, %v1623_v49  ;;  %v1622_v1 = vld [vmem:[%s8126_s2 + $0x50] sm:$0xff]  ;;  %v215_v2 = vld [vmem:[%s8125_s1 + $0x68] sm:$0xff] }
  0x19   : > { %8715 = vst [vmem:[#allocation16_spill] sm:$0xff] %v5431_v46  ;;  %8716 = vst [vmem:[#allocation17_spill] sm:$0xff] %v5433_v47  ;;  %v5457_v62 = vsub.f32 %v1616_v36, %v1686_v53  ;;  %v5468_v3 = vpack.c.bf16 %v1690_v54, %v1686_v53  ;;  %v5470_v4 = vsub.f32 %v1618_v37, %v1690_v54  ;;  %v217_v7 = vld [vmem:[%s8125_s1 + $0x78] sm:$0xff]  ;;  %v1625_v8 = vld [vmem:[%s8126_s2 + $0x68] sm:$0xff]  ;;  %v284_v14 = vand.u32 4294901760, %v210_v58 }
  0x1a   : > { %8717 = vst [vmem:[#allocation18_spill] sm:$0xff] %v5435_v48  ;;  %8718 = vst [vmem:[#allocation19_spill] sm:$0xff] %v5441_v50  ;;  %v5472_v5 = vpack.c.bf16 %v286_v56, %v282_v55  ;;  %v5474_v6 = vsub.f32 %v211_v42, %v282_v55  ;;  %v1627_v9 = vld [vmem:[%s8126_s2 + $0x78] sm:$0xff]  ;;  %4297 = vmatpush1.bf16.msra.mxu0 %v5453_v60  ;;  %v5486_v10 = vsub.f32 %v213_v43, %v286_v56  ;;  %v214_v31 = vld [vmem:[%s8125_s1 + $0x60] sm:$0xff] }
  0x1b   : > { %8719 = vst [vmem:[#allocation20_spill] sm:$0xff] %v5443_v52  ;;  %8720 = vst [vmem:[#allocation21_spill] sm:$0xff] %v5453_v60  ;;  %v5488_v11 = vpack.c.bf16 %v1696_v63, %v1692_v57  ;;  %v5490_v12 = vsub.f32 %v1621_v44, %v1692_v57  ;;  %v5492_v13 = vsub.f32 %v1623_v49, %v1696_v63  ;;  %4681 = vmatpush1.bf16.msra.mxu1 %v5468_v3  ;;  %v216_v36 = vld [vmem:[%s8125_s1 + $0x70] sm:$0xff]  ;;  %v1624_v37 = vld [vmem:[%s8126_s2 + $0x60] sm:$0xff] }
  0x1c   : > { %8721 = vst [vmem:[#allocation22_spill] sm:$0xff] %v5455_v61  ;;  %8722 = vst [vmem:[#allocation23_spill] sm:$0xff] %v5457_v62  ;;  %4299 = vmatprep.subr.bf16.mxu0 %v5472_v5  ;;  %v288_v19 = vand.u32 4294901760, %v212_v59  ;;  %v1694_v20 = vand.u32 4294901760, %v1620_v0  ;;  %v1698_v21 = vand.u32 4294901760, %v1622_v1  ;;  %v290_v26 = vand.u32 4294901760, %v215_v2 }
  0x1d   : > { %8723 = vst [vmem:[#allocation24_spill] sm:$0xff] %v5468_v3  ;;  %8724 = vst [vmem:[#allocation25_spill] sm:$0xff] %v5470_v4  ;;  %4683 = vmatprep.subr.bf16.mxu1 %v5488_v11  ;;  %v294_v28 = vand.u32 4294901760, %v217_v7  ;;  %v1700_v29 = vand.u32 4294901760, %v1625_v8  ;;  %v1704_v30 = vand.u32 4294901760, %v1627_v9  ;;  %v5502_v33 = vsub.f32 %v210_v58, %v284_v14  ;;  %v1626_v42 = vld [vmem:[%s8126_s2 + $0x70] sm:$0xff] }
  0x1e   : > { %8725 = vst [vmem:[#allocation26_spill] sm:$0xff] %v5472_v5  ;;  %8726 = vst [vmem:[#allocation27_spill] sm:$0xff] %v5474_v6  ;;  %v5500_v32 = vpack.c.bf16 %v288_v19, %v284_v14  ;;  %v5504_v34 = vsub.f32 %v212_v59, %v288_v19  ;;  %v5506_v35 = vpack.c.bf16 %v1698_v21, %v1694_v20  ;;  %v219_v53 = vld [vmem:[%s8125_s1 + $0x88] sm:$0xff]  ;;  %v221_v54 = vld [vmem:[%s8125_s1 + $0x98] sm:$0xff]  ;;  %v292_v59 = vand.u32 4294901760, %v214_v31 }
  0x1f   : > { %8727 = vst [vmem:[#allocation28_spill] sm:$0xff] %v5486_v10  ;;  %8728 = vst [vmem:[#allocation29_spill] sm:$0xff] %v5488_v11  ;;  %v5517_v43 = vsub.f32 %v1620_v0, %v1694_v20  ;;  %v5519_v44 = vsub.f32 %v1622_v1, %v1698_v21  ;;  %v5521_v49 = vpack.c.bf16 %v294_v28, %v290_v26  ;;  %v1629_v55 = vld [vmem:[%s8126_s2 + $0x88] sm:$0xff]  ;;  %v296_v0 = vand.u32 4294901760, %v216_v36  ;;  %v1631_v14 = vld [vmem:[%s8126_s2 + $0x98] sm:$0xff] }
  0x20   : > { %8729 = vst [vmem:[#allocation30_spill] sm:$0xff] %v5490_v12  ;;  %8730 = vst [vmem:[#allocation31_spill] sm:$0xff] %v5492_v13  ;;  %v5523_v51 = vsub.f32 %v215_v2, %v290_v26  ;;  %4301 = vmatpush1.bf16.msra.mxu0 %v5500_v32  ;;  %4685 = vmatpush1.bf16.msra.mxu1 %v5506_v35  ;;  %v5536_v56 = vsub.f32 %v217_v7, %v294_v28  ;;  %v1702_v1 = vand.u32 4294901760, %v1624_v37  ;;  %v218_v21 = vld [vmem:[%s8125_s1 + $0x80] sm:$0xff]  ;;  %v227_v38 = vld [vmem:[%s8125_s1 + $0xc8] sm:$0xff] }
  0x21   : > { %8731 = vst [vmem:[#allocation32_spill] sm:$0xff] %v5500_v32  ;;  %8732 = vst [vmem:[#allocation33_spill] sm:$0xff] %v5502_v33  ;;  %v5538_v57 = vpack.c.bf16 %v1704_v30, %v1700_v29  ;;  %v5540_v58 = vsub.f32 %v1625_v8, %v1700_v29  ;;  %4303 = vmatprep.subr.bf16.mxu0 %v5521_v49  ;;  %v5543_v63 = vsub.f32 %v1627_v9, %v1704_v30  ;;  %v220_v9 = vld [vmem:[%s8125_s1 + $0x90] sm:$0xff]  ;;  %v1628_v26 = vld [vmem:[%s8126_s2 + $0x80] sm:$0xff] }
  0x22   : > { %8733 = vst [vmem:[#allocation34_spill] sm:$0xff] %v5504_v34  ;;  %8734 = vst [vmem:[#allocation35_spill] sm:$0xff] %v5506_v35  ;;  %v1706_v2 = vand.u32 4294901760, %v1626_v42  ;;  %v5549_v7 = vsub.f32 %v214_v31, %v292_v59  ;;  %v298_v19 = vand.u32 4294901760, %v219_v53  ;;  %v302_v20 = vand.u32 4294901760, %v221_v54  ;;  %v223_v35 = vld [vmem:[%s8125_s1 + $0xa8] sm:$0xff] }
  0x23   : > { %8735 = vst [vmem:[#allocation36_spill] sm:$0xff] %v5517_v43  ;;  %8736 = vst [vmem:[#allocation37_spill] sm:$0xff] %v5519_v44  ;;  %4687 = vmatprep.subr.bf16.mxu1 %v5538_v57  ;;  %v1708_v8 = vand.u32 4294901760, %v1629_v55  ;;  %v5560_v28 = vpack.c.bf16 %v296_v0, %v292_v59  ;;  %v5562_v29 = vsub.f32 %v216_v36, %v296_v0  ;;  %v300_v11 = vand.u32 4294901760, %v218_v21  ;;  %v1632_v47 = vld [vmem:[%s8126_s2 + $0xa0] sm:$0xff]  ;;  %v229_v45 = vld [vmem:[%s8125_s1 + $0xd8] sm:$0xff] }
  0x24   : > { %8737 = vst [vmem:[#allocation38_spill] sm:$0xff] %v5521_v49  ;;  %8738 = vst [vmem:[#allocation39_spill] sm:$0xff] %v5523_v51  ;;  %v5564_v30 = vpack.c.bf16 %v1706_v2, %v1702_v1  ;;  %v5566_v31 = vsub.f32 %v1624_v37, %v1702_v1  ;;  %v225_v49 = vld [vmem:[%s8125_s1 + $0xb8] sm:$0xff]  ;;  %v5577_v59 = vsub.f32 %v1626_v42, %v1706_v2  ;;  %v1712_v1 = vand.u32 4294901760, %v1631_v14 }
  0x25   : > { %8739 = vst [vmem:[#allocation40_spill] sm:$0xff] %v5536_v56  ;;  %8740 = vst [vmem:[#allocation41_spill] sm:$0xff] %v5538_v57  ;;  %v1630_v57 = vld [vmem:[%s8126_s2 + $0x90] sm:$0xff]  ;;  %v5579_v36 = vpack.c.bf16 %v302_v20, %v298_v19  ;;  %v5581_v0 = vsub.f32 %v219_v53, %v298_v19  ;;  %v5583_v37 = vsub.f32 %v221_v54, %v302_v20  ;;  %4305 = vmatpush1.bf16.msra.mxu0 %v5560_v28  ;;  %v1633_v53 = vld [vmem:[%s8126_s2 + $0xa8] sm:$0xff] }
  0x26   : > { %8741 = vst [vmem:[#allocation42_spill] sm:$0xff] %v5540_v58  ;;  %8742 = vst [vmem:[#allocation43_spill] sm:$0xff] %v5543_v63  ;;  %4689 = vmatpush1.bf16.msra.mxu1 %v5564_v30  ;;  %v5587_v32 = vsub.f32 %v1629_v55, %v1708_v8  ;;  %v304_v3 = vand.u32 4294901760, %v220_v9  ;;  %v1710_v5 = vand.u32 4294901760, %v1628_v26  ;;  %v1714_v42 = vand.u32 4294901760, %v1630_v57  ;;  %v1635_v54 = vld [vmem:[%s8126_s2 + $0xb8] sm:$0xff] }
  0x27   : > { %8743 = vst [vmem:[#allocation44_spill] sm:$0xff] %v5549_v7  ;;  %8744 = vst [vmem:[#allocation45_spill] sm:$0xff] %v5560_v28  ;;  %4307 = vmatprep.subr.bf16.mxu0 %v5579_v36  ;;  %v306_v2 = vand.u32 4294901760, %v223_v35  ;;  %v310_v60 = vand.u32 4294901760, %v225_v49  ;;  %v5596_v19 = vpack.c.bf16 %v1712_v1, %v1708_v8  ;;  %v5598_v55 = vsub.f32 %v1631_v14, %v1712_v1  ;;  %v224_v28 = vld [vmem:[%s8125_s1 + $0xb0] sm:$0xff] }
  0x28   : > { %8745 = vst [vmem:[#allocation46_spill] sm:$0xff] %v5562_v29  ;;  %8746 = vst [vmem:[#allocation47_spill] sm:$0xff] %v5564_v30  ;;  %v5600_v20 = vpack.c.bf16 %v304_v3, %v300_v11  ;;  %v5602_v30 = vsub.f32 %v218_v21, %v300_v11  ;;  %v5613_v8 = vsub.f32 %v220_v9, %v304_v3  ;;  %v1634_v21 = vld [vmem:[%s8126_s2 + $0xb0] sm:$0xff]  ;;  %v1716_v9 = vand.u32 4294901760, %v1633_v53 }
  0x29   : > { %8747 = vst [vmem:[#allocation48_spill] sm:$0xff] %v5566_v31  ;;  %8748 = vst [vmem:[#allocation49_spill] sm:$0xff] %v5577_v59  ;;  %v5615_v14 = vpack.c.bf16 %v1714_v42, %v1710_v5  ;;  %v5617_v1 = vsub.f32 %v1628_v26, %v1710_v5  ;;  %v5619_v11 = vsub.f32 %v1630_v57, %v1714_v42  ;;  %4691 = vmatprep.subr.bf16.mxu1 %v5596_v19 }
  0x2a   : > { %8749 = vst [vmem:[#allocation50_spill] sm:$0xff] %v5579_v36  ;;  %8750 = vst [vmem:[#allocation51_spill] sm:$0xff] %v5581_v0  ;;  %v222_v36 = vld [vmem:[%s8125_s1 + $0xa0] sm:$0xff]  ;;  %4309 = vmatpush1.bf16.msra.mxu0 %v5600_v20  ;;  %v5632_v3 = vpack.c.bf16 %v310_v60, %v306_v2  ;;  %v5634_v5 = vsub.f32 %v223_v35, %v306_v2  ;;  %v5636_v57 = vsub.f32 %v225_v49, %v310_v60  ;;  %v1637_v35 = vld [vmem:[%s8126_s2 + $0xc8] sm:$0xff] }
  0x2b   : > { %8751 = vst [vmem:[#allocation52_spill] sm:$0xff] %v5583_v37  ;;  %8752 = vst [vmem:[#allocation53_spill] sm:$0xff] %v5587_v32  ;;  %4693 = vmatpush1.bf16.msra.mxu1 %v5615_v14  ;;  %v1720_v26 = vand.u32 4294901760, %v1635_v54  ;;  %v308_v42 = vand.u32 4294901760, %v222_v36  ;;  %v312_v24 = vand.u32 4294901760, %v224_v28  ;;  %v1718_v22 = vand.u32 4294901760, %v1632_v47 }
  0x2c   : > { %8753 = vst [vmem:[#allocation54_spill] sm:$0xff] %v5596_v19  ;;  %8754 = vst [vmem:[#allocation55_spill] sm:$0xff] %v5598_v55  ;;  %4311 = vmatprep.subr.bf16.mxu0 %v5632_v3  ;;  %v5640_v15 = vsub.f32 %v1633_v53, %v1716_v9  ;;  %v1722_v19 = vand.u32 4294901760, %v1634_v21  ;;  %v1639_v60 = vld [vmem:[%s8126_s2 + $0xd8] sm:$0xff]  ;;  %v226_v53 = vld [vmem:[%s8125_s1 + $0xc0] sm:$0xff] }
  0x2d   : > { %8755 = vst [vmem:[#allocation56_spill] sm:$0xff] %v5600_v20  ;;  %8756 = vst [vmem:[#allocation57_spill] sm:$0xff] %v5602_v30  ;;  %v318_v20 = vand.u32 4294901760, %v229_v45  ;;  %v5648_v49 = vpack.c.bf16 %v1720_v26, %v1716_v9  ;;  %v5650_v2 = vsub.f32 %v1635_v54, %v1720_v26  ;;  %v5665_v9 = vsub.f32 %v224_v28, %v312_v24 }
  0x2e   : > { %8757 = vst [vmem:[#allocation58_spill] sm:$0xff] %v5613_v8  ;;  %8758 = vst [vmem:[#allocation59_spill] sm:$0xff] %v5615_v14  ;;  %v5652_v14 = vpack.c.bf16 %v312_v24, %v308_v42  ;;  %v5667_v54 = vpack.c.bf16 %v1722_v19, %v1718_v22  ;;  %v5669_v26 = vsub.f32 %v1632_v47, %v1718_v22  ;;  %v1724_v28 = vand.u32 4294901760, %v1637_v35 }
  0x2f   : > { %8759 = vst [vmem:[#allocation60_spill] sm:$0xff] %v5617_v1  ;;  %8760 = vst [vmem:[#allocation61_spill] sm:$0xff] %v5619_v11  ;;  %v314_v11 = vand.u32 4294901760, %v227_v38  ;;  %4695 = vmatprep.subr.bf16.mxu1 %v5648_v49  ;;  %v5688_v47 = vsub.f32 %v229_v45, %v318_v20  ;;  %v1643_v45 = vld [vmem:[%s8126_s2 + $0xf8] sm:$0xff] }
  0x30   : > { %8761 = vst [vmem:[#allocation62_spill] sm:$0xff] %v5632_v3  ;;  %8762 = vst [vmem:[#allocation63_spill] sm:$0xff] %v5634_v5  ;;  %v5654_v3 = vsub.f32 %v222_v36, %v308_v42  ;;  %v5671_v36 = vsub.f32 %v1634_v21, %v1722_v19  ;;  %v1638_v42 = vld [vmem:[%s8126_s2 + $0xd0] sm:$0xff]  ;;  %4313 = vmatpush1.bf16.msra.mxu0 %v5652_v14  ;;  %4697 = vmatpush1.bf16.msra.mxu1 %v5667_v54  ;;  %v1728_v19 = vand.u32 4294901760, %v1639_v60 }
  0x31   : > { %8763 = vst [vmem:[#allocation64_spill] sm:$0xff] %v5636_v57  ;;  %8764 = vst [vmem:[#allocation65_spill] sm:$0xff] %v5640_v15  ;;  %v228_v15 = vld [vmem:[%s8125_s1 + $0xd0] sm:$0xff]  ;;  %v1636_v57 = vld [vmem:[%s8126_s2 + $0xc0] sm:$0xff]  ;;  %v5684_v22 = vpack.c.bf16 %v318_v20, %v314_v11  ;;  %v5686_v24 = vsub.f32 %v227_v38, %v314_v11  ;;  %v316_v21 = vand.u32 4294901760, %v226_v53 }
  0x32   : > { %8765 = vst [vmem:[#allocation66_spill] sm:$0xff] %v5648_v49  ;;  %8766 = vst [vmem:[#allocation67_spill] sm:$0xff] %v5650_v2  ;;  %v233_v2 = vld [vmem:[%s8125_s1 + $0xf8] sm:$0xff]  ;;  %v1730_v49 = vand.u32 4294901760, %v1638_v42  ;;  %v1641_v38 = vld [vmem:[%s8126_s2 + $0xe8] sm:$0xff]  ;;  %v5700_v20 = vpack.c.bf16 %v1728_v19, %v1724_v28  ;;  %v5702_v11 = vsub.f32 %v1639_v60, %v1728_v19 }
  0x33   : > { %8767 = vst [vmem:[#allocation68_spill] sm:$0xff] %v5652_v14  ;;  %8768 = vst [vmem:[#allocation69_spill] sm:$0xff] %v5654_v3  ;;  %v231_v3 = vld [vmem:[%s8125_s1 + $0xe8] sm:$0xff]  ;;  %4315 = vmatprep.subr.bf16.mxu0 %v5684_v22  ;;  %v326_v14 = vand.u32 4294901760, %v233_v2 }
  0x34   : > { %8769 = vst [vmem:[#allocation70_spill] sm:$0xff] %v5665_v9  ;;  %8770 = vst [vmem:[#allocation71_spill] sm:$0xff] %v5667_v54  ;;  %v5692_v9 = vsub.f32 %v1637_v35, %v1724_v28  ;;  %v322_v5 = vand.u32 4294901760, %v231_v3  ;;  %v230_v35 = vld [vmem:[%s8125_s1 + $0xe0] sm:$0xff]  ;;  %4699 = vmatprep.subr.bf16.mxu1 %v5700_v20 }
  0x35   : > { %8771 = vst [vmem:[#allocation72_spill] sm:$0xff] %v5669_v26  ;;  %8772 = vst [vmem:[#allocation73_spill] sm:$0xff] %v5671_v36  ;;  %v320_v36 = vand.u32 4294901760, %v228_v15  ;;  %v1726_v26 = vand.u32 4294901760, %v1636_v57 }
  0x36   : > { %8773 = vst [vmem:[#allocation74_spill] sm:$0xff] %v5684_v22  ;;  %8774 = vst [vmem:[#allocation75_spill] sm:$0xff] %v5686_v24  ;;  %v5706_v22 = vsub.f32 %v226_v53, %v316_v21  ;;  %v5723_v53 = vsub.f32 %v1638_v42, %v1730_v49  ;;  %v324_v42 = vand.u32 4294901760, %v230_v35 }
  0x37   : > { %8775 = vst [vmem:[#allocation76_spill] sm:$0xff] %v5688_v47  ;;  %8776 = vst [vmem:[#allocation77_spill] sm:$0xff] %v5692_v9  ;;  %v5704_v54 = vpack.c.bf16 %v320_v36, %v316_v21  ;;  %v232_v9 = vld [vmem:[%s8125_s1 + $0xf0] sm:$0xff]  ;;  %v1640_v47 = vld [vmem:[%s8126_s2 + $0xe0] sm:$0xff]  ;;  %v5717_v28 = vsub.f32 %v228_v15, %v320_v36  ;;  %v5719_v60 = vpack.c.bf16 %v1730_v49, %v1726_v26  ;;  %v1736_v36 = vand.u32 4294901760, %v1643_v45 }
  0x38   : > { %8777 = vst [vmem:[#allocation78_spill] sm:$0xff] %v5700_v20  ;;  %8778 = vst [vmem:[#allocation79_spill] sm:$0xff] %v5702_v11  ;;  %v5721_v19 = vsub.f32 %v1636_v57, %v1726_v26  ;;  %v1642_v21 = vld [vmem:[%s8126_s2 + $0xf0] sm:$0xff]  ;;  %v237_v11 = vld [vmem:[%s8125_s1 + $0x118] sm:$0xff]  ;;  %v5736_v15 = vpack.c.bf16 %v326_v14, %v322_v5  ;;  %v5738_v57 = vsub.f32 %v231_v3, %v322_v5  ;;  %v1732_v26 = vand.u32 4294901760, %v1641_v38 }
  0x39   : > { %8779 = vst [vmem:[#allocation80_spill] sm:$0xff] %v5704_v54  ;;  %8780 = vst [vmem:[#allocation81_spill] sm:$0xff] %v5706_v22  ;;  %v235_v22 = vld [vmem:[%s8125_s1 + $0x108] sm:$0xff]  ;;  %4317 = vmatpush1.bf16.msra.mxu0 %v5704_v54  ;;  %v5740_v49 = vsub.f32 %v233_v2, %v326_v14  ;;  %4701 = vmatpush1.bf16.msra.mxu1 %v5719_v60  ;;  %v1738_v20 = vand.u32 4294901760, %v1642_v21  ;;  %v334_v54 = vand.u32 4294901760, %v237_v11  ;;  %v1647_v14 = vld [vmem:[%s8126_s2 + $0x118] sm:$0xff] }
  0x3a   : > { %8781 = vst [vmem:[#allocation82_spill] sm:$0xff] %v5717_v28  ;;  %8782 = vst [vmem:[#allocation83_spill] sm:$0xff] %v5719_v60  ;;  %4319 = vmatprep.subr.bf16.mxu0 %v5736_v15  ;;  %v5744_v28 = vsub.f32 %v1641_v38, %v1732_v26  ;;  %v330_v24 = vand.u32 4294901760, %v235_v22  ;;  %v1645_v3 = vld [vmem:[%s8126_s2 + $0x108] sm:$0xff]  ;;  %v5752_v5 = vpack.c.bf16 %v1736_v36, %v1732_v26  ;;  %v234_v38 = vld [vmem:[%s8125_s1 + $0x100] sm:$0xff] }
  0x3b   : > { %8783 = vst [vmem:[#allocation84_spill] sm:$0xff] %v5721_v19  ;;  %8784 = vst [vmem:[#allocation85_spill] sm:$0xff] %v5723_v53  ;;  %v328_v53 = vand.u32 4294901760, %v232_v9  ;;  %v1734_v19 = vand.u32 4294901760, %v1640_v47  ;;  %v5754_v2 = vsub.f32 %v1643_v45, %v1736_v36 }
  0x3c   : > { %8785 = vst [vmem:[#allocation86_spill] sm:$0xff] %v5736_v15  ;;  %8786 = vst [vmem:[#allocation87_spill] sm:$0xff] %v5738_v57  ;;  %v5758_v15 = vsub.f32 %v230_v35, %v324_v42  ;;  %v5775_v35 = vsub.f32 %v1642_v21, %v1738_v20  ;;  %4703 = vmatprep.subr.bf16.mxu1 %v5752_v5  ;;  %v332_v21 = vand.u32 4294901760, %v234_v38 }
  0x3d   : > { %8787 = vst [vmem:[#allocation88_spill] sm:$0xff] %v5740_v49  ;;  %8788 = vst [vmem:[#allocation89_spill] sm:$0xff] %v5744_v28  ;;  %v5756_v60 = vpack.c.bf16 %v328_v53, %v324_v42  ;;  %v236_v28 = vld [vmem:[%s8125_s1 + $0x110] sm:$0xff]  ;;  %v1644_v49 = vld [vmem:[%s8126_s2 + $0x100] sm:$0xff]  ;;  %v5769_v26 = vsub.f32 %v232_v9, %v328_v53  ;;  %v5771_v45 = vpack.c.bf16 %v1738_v20, %v1734_v19  ;;  %v1744_v53 = vand.u32 4294901760, %v1647_v14 }
  0x3e   : > { %8789 = vst [vmem:[#allocation90_spill] sm:$0xff] %v5752_v5  ;;  %8790 = vst [vmem:[#allocation91_spill] sm:$0xff] %v5754_v2  ;;  %v5773_v36 = vsub.f32 %v1640_v47, %v1734_v19  ;;  %v1646_v42 = vld [vmem:[%s8126_s2 + $0x110] sm:$0xff]  ;;  %v241_v2 = vld [vmem:[%s8125_s1 + $0x138] sm:$0xff]  ;;  %v5788_v9 = vpack.c.bf16 %v334_v54, %v330_v24  ;;  %v5790_v47 = vsub.f32 %v235_v22, %v330_v24  ;;  %v1740_v19 = vand.u32 4294901760, %v1645_v3 }
  0x3f   : > { %8791 = vst [vmem:[#allocation92_spill] sm:$0xff] %v5756_v60  ;;  %8792 = vst [vmem:[#allocation93_spill] sm:$0xff] %v5758_v15  ;;  %v239_v15 = vld [vmem:[%s8125_s1 + $0x128] sm:$0xff]  ;;  %4321 = vmatpush1.bf16.msra.mxu0 %v5756_v60  ;;  %v5792_v20 = vsub.f32 %v237_v11, %v334_v54  ;;  %4705 = vmatpush1.bf16.msra.mxu1 %v5771_v45  ;;  %v1746_v5 = vand.u32 4294901760, %v1646_v42  ;;  %v342_v60 = vand.u32 4294901760, %v241_v2  ;;  %v1651_v54 = vld [vmem:[%s8126_s2 + $0x138] sm:$0xff] }
  0x40   : > { %8793 = vst [vmem:[#allocation94_spill] sm:$0xff] %v5769_v26  ;;  %8794 = vst [vmem:[#allocation95_spill] sm:$0xff] %v5771_v45  ;;  %4323 = vmatprep.subr.bf16.mxu0 %v5788_v9  ;;  %v5796_v26 = vsub.f32 %v1645_v3, %v1740_v19  ;;  %v338_v57 = vand.u32 4294901760, %v239_v15  ;;  %v1649_v22 = vld [vmem:[%s8126_s2 + $0x128] sm:$0xff]  ;;  %v5804_v24 = vpack.c.bf16 %v1744_v53, %v1740_v19  ;;  %v238_v3 = vld [vmem:[%s8125_s1 + $0x120] sm:$0xff] }
  0x41   : > { %8795 = vst [vmem:[#allocation96_spill] sm:$0xff] %v5773_v36  ;;  %8796 = vst [vmem:[#allocation97_spill] sm:$0xff] %v5775_v35  ;;  %v336_v35 = vand.u32 4294901760, %v236_v28  ;;  %v1742_v36 = vand.u32 4294901760, %v1644_v49  ;;  %v5806_v11 = vsub.f32 %v1647_v14, %v1744_v53 }
  0x42   : > { %8797 = vst [vmem:[#allocation98_spill] sm:$0xff] %v5788_v9  ;;  %8798 = vst [vmem:[#allocation99_spill] sm:$0xff] %v5790_v47  ;;  %v5810_v9 = vsub.f32 %v234_v38, %v332_v21  ;;  %v5827_v38 = vsub.f32 %v1646_v42, %v1746_v5  ;;  %4707 = vmatprep.subr.bf16.mxu1 %v5804_v24  ;;  %v340_v42 = vand.u32 4294901760, %v238_v3 }
  0x43   : > { %8799 = vst [vmem:[#allocation100_spill] sm:$0xff] %v5792_v20  ;;  %8800 = vst [vmem:[#allocation101_spill] sm:$0xff] %v5796_v26  ;;  %v5808_v45 = vpack.c.bf16 %v336_v35, %v332_v21  ;;  %v240_v26 = vld [vmem:[%s8125_s1 + $0x130] sm:$0xff]  ;;  %v1648_v20 = vld [vmem:[%s8126_s2 + $0x120] sm:$0xff]  ;;  %v5821_v19 = vsub.f32 %v236_v28, %v336_v35  ;;  %v5823_v14 = vpack.c.bf16 %v1746_v5, %v1742_v36  ;;  %v1752_v35 = vand.u32 4294901760, %v1651_v54 }
  0x44   : > { %8801 = vst [vmem:[#allocation102_spill] sm:$0xff] %v5804_v24  ;;  %8802 = vst [vmem:[#allocation103_spill] sm:$0xff] %v5806_v11  ;;  %v5825_v53 = vsub.f32 %v1644_v49, %v1742_v36  ;;  %v1650_v21 = vld [vmem:[%s8126_s2 + $0x130] sm:$0xff]  ;;  %v245_v11 = vld [vmem:[%s8125_s1 + $0x158] sm:$0xff]  ;;  %v5840_v28 = vpack.c.bf16 %v342_v60, %v338_v57  ;;  %v5842_v49 = vsub.f32 %v239_v15, %v338_v57  ;;  %v1748_v36 = vand.u32 4294901760, %v1649_v22 }
  0x45   : > { %8803 = vst [vmem:[#allocation104_spill] sm:$0xff] %v5808_v45  ;;  %8804 = vst [vmem:[#allocation105_spill] sm:$0xff] %v5810_v9  ;;  %v243_v9 = vld [vmem:[%s8125_s1 + $0x148] sm:$0xff]  ;;  %4325 = vmatpush1.bf16.msra.mxu0 %v5808_v45  ;;  %v5844_v5 = vsub.f32 %v241_v2, %v342_v60  ;;  %4709 = vmatpush1.bf16.msra.mxu1 %v5823_v14  ;;  %v1754_v24 = vand.u32 4294901760, %v1650_v21  ;;  %v350_v45 = vand.u32 4294901760, %v245_v11  ;;  %v1655_v60 = vld [vmem:[%s8126_s2 + $0x158] sm:$0xff] }
  0x46   : > { %8805 = vst [vmem:[#allocation106_spill] sm:$0xff] %v5821_v19  ;;  %8806 = vst [vmem:[#allocation107_spill] sm:$0xff] %v5823_v14  ;;  %4327 = vmatprep.subr.bf16.mxu0 %v5840_v28  ;;  %v5848_v19 = vsub.f32 %v1649_v22, %v1748_v36  ;;  %v346_v47 = vand.u32 4294901760, %v243_v9  ;;  %v1653_v15 = vld [vmem:[%s8126_s2 + $0x148] sm:$0xff]  ;;  %v5856_v57 = vpack.c.bf16 %v1752_v35, %v1748_v36  ;;  %v242_v22 = vld [vmem:[%s8125_s1 + $0x140] sm:$0xff] }
  0x47   : > { %8807 = vst [vmem:[#allocation108_spill] sm:$0xff] %v5825_v53  ;;  %8808 = vst [vmem:[#allocation109_spill] sm:$0xff] %v5827_v38  ;;  %v344_v38 = vand.u32 4294901760, %v240_v26  ;;  %v1750_v53 = vand.u32 4294901760, %v1648_v20  ;;  %v5858_v2 = vsub.f32 %v1651_v54, %v1752_v35 }
  0x48   : > { %8809 = vst [vmem:[#allocation110_spill] sm:$0xff] %v5840_v28  ;;  %8810 = vst [vmem:[#allocation111_spill] sm:$0xff] %v5842_v49  ;;  %v5862_v28 = vsub.f32 %v238_v3, %v340_v42  ;;  %v5879_v3 = vsub.f32 %v1650_v21, %v1754_v24  ;;  %4711 = vmatprep.subr.bf16.mxu1 %v5856_v57  ;;  %v348_v21 = vand.u32 4294901760, %v242_v22 }
  0x49   : > { %8811 = vst [vmem:[#allocation112_spill] sm:$0xff] %v5844_v5  ;;  %8812 = vst [vmem:[#allocation113_spill] sm:$0xff] %v5848_v19  ;;  %v5860_v14 = vpack.c.bf16 %v344_v38, %v340_v42  ;;  %v244_v19 = vld [vmem:[%s8125_s1 + $0x150] sm:$0xff]  ;;  %v1652_v5 = vld [vmem:[%s8126_s2 + $0x140] sm:$0xff]  ;;  %v5873_v36 = vsub.f32 %v240_v26, %v344_v38  ;;  %v5875_v54 = vpack.c.bf16 %v1754_v24, %v1750_v53  ;;  %v1760_v38 = vand.u32 4294901760, %v1655_v60 }
  0x4a   : > { %8813 = vst [vmem:[#allocation114_spill] sm:$0xff] %v5856_v57  ;;  %8814 = vst [vmem:[#allocation115_spill] sm:$0xff] %v5858_v2  ;;  %v5877_v35 = vsub.f32 %v1648_v20, %v1750_v53  ;;  %v1654_v42 = vld [vmem:[%s8126_s2 + $0x150] sm:$0xff]  ;;  %v249_v2 = vld [vmem:[%s8125_s1 + $0x178] sm:$0xff]  ;;  %v5892_v26 = vpack.c.bf16 %v350_v45, %v346_v47  ;;  %v5894_v20 = vsub.f32 %v243_v9, %v346_v47  ;;  %v1756_v53 = vand.u32 4294901760, %v1653_v15 }
  0x4b   : > { %8815 = vst [vmem:[#allocation116_spill] sm:$0xff] %v5860_v14  ;;  %8816 = vst [vmem:[#allocation117_spill] sm:$0xff] %v5862_v28  ;;  %v247_v28 = vld [vmem:[%s8125_s1 + $0x168] sm:$0xff]  ;;  %4329 = vmatpush1.bf16.msra.mxu0 %v5860_v14  ;;  %v5896_v24 = vsub.f32 %v245_v11, %v350_v45  ;;  %4713 = vmatpush1.bf16.msra.mxu1 %v5875_v54  ;;  %v1762_v57 = vand.u32 4294901760, %v1654_v42  ;;  %v358_v14 = vand.u32 4294901760, %v249_v2  ;;  %v1659_v45 = vld [vmem:[%s8126_s2 + $0x178] sm:$0xff] }
  0x4c   : > { %8817 = vst [vmem:[#allocation118_spill] sm:$0xff] %v5873_v36  ;;  %8818 = vst [vmem:[#allocation119_spill] sm:$0xff] %v5875_v54  ;;  %4331 = vmatprep.subr.bf16.mxu0 %v5892_v26  ;;  %v5900_v36 = vsub.f32 %v1653_v15, %v1756_v53  ;;  %v354_v49 = vand.u32 4294901760, %v247_v28  ;;  %v1657_v9 = vld [vmem:[%s8126_s2 + $0x168] sm:$0xff]  ;;  %v5908_v47 = vpack.c.bf16 %v1760_v38, %v1756_v53  ;;  %v246_v15 = vld [vmem:[%s8125_s1 + $0x160] sm:$0xff] }
  0x4d   : > { %8819 = vst [vmem:[#allocation120_spill] sm:$0xff] %v5877_v35  ;;  %8820 = vst [vmem:[#allocation121_spill] sm:$0xff] %v5879_v3  ;;  %v352_v3 = vand.u32 4294901760, %v244_v19  ;;  %v1758_v35 = vand.u32 4294901760, %v1652_v5  ;;  %v5910_v11 = vsub.f32 %v1655_v60, %v1760_v38 }
  0x4e   : > { %8821 = vst [vmem:[#allocation122_spill] sm:$0xff] %v5892_v26  ;;  %8822 = vst [vmem:[#allocation123_spill] sm:$0xff] %v5894_v20  ;;  %v5914_v26 = vsub.f32 %v242_v22, %v348_v21  ;;  %v5931_v22 = vsub.f32 %v1654_v42, %v1762_v57  ;;  %4715 = vmatprep.subr.bf16.mxu1 %v5908_v47  ;;  %v356_v42 = vand.u32 4294901760, %v246_v15 }
  0x4f   : > { %8823 = vst [vmem:[#allocation124_spill] sm:$0xff] %v5896_v24  ;;  %8824 = vst [vmem:[#allocation125_spill] sm:$0xff] %v5900_v36  ;;  %v5912_v54 = vpack.c.bf16 %v352_v3, %v348_v21  ;;  %v248_v36 = vld [vmem:[%s8125_s1 + $0x170] sm:$0xff]  ;;  %v1656_v24 = vld [vmem:[%s8126_s2 + $0x160] sm:$0xff]  ;;  %v5925_v53 = vsub.f32 %v244_v19, %v352_v3  ;;  %v5927_v60 = vpack.c.bf16 %v1762_v57, %v1758_v35  ;;  %v1768_v3 = vand.u32 4294901760, %v1659_v45 }
  0x50   : > { %8825 = vst [vmem:[#allocation126_spill] sm:$0xff] %v5908_v47  ;;  %8826 = vst [vmem:[#allocation127_spill] sm:$0xff] %v5910_v11  ;;  %v5929_v38 = vsub.f32 %v1652_v5, %v1758_v35  ;;  %v1658_v21 = vld [vmem:[%s8126_s2 + $0x170] sm:$0xff]  ;;  %v253_v11 = vld [vmem:[%s8125_s1 + $0x198] sm:$0xff]  ;;  %v5944_v19 = vpack.c.bf16 %v358_v14, %v354_v49  ;;  %v5946_v5 = vsub.f32 %v247_v28, %v354_v49  ;;  %v1764_v35 = vand.u32 4294901760, %v1657_v9 }
  0x51   : > { %8827 = vst [vmem:[#allocation128_spill] sm:$0xff] %v5912_v54  ;;  %8828 = vst [vmem:[#allocation129_spill] sm:$0xff] %v5914_v26  ;;  %v251_v26 = vld [vmem:[%s8125_s1 + $0x188] sm:$0xff]  ;;  %4333 = vmatpush1.bf16.msra.mxu0 %v5912_v54  ;;  %v5948_v57 = vsub.f32 %v249_v2, %v358_v14  ;;  %4717 = vmatpush1.bf16.msra.mxu1 %v5927_v60  ;;  %v1770_v47 = vand.u32 4294901760, %v1658_v21  ;;  %v366_v54 = vand.u32 4294901760, %v253_v11  ;;  %v1663_v14 = vld [vmem:[%s8126_s2 + $0x198] sm:$0xff] }
  0x52   : > { %8829 = vst [vmem:[#allocation130_spill] sm:$0xff] %v5925_v53  ;;  %8830 = vst [vmem:[#allocation131_spill] sm:$0xff] %v5927_v60  ;;  %4335 = vmatprep.subr.bf16.mxu0 %v5944_v19  ;;  %v5952_v53 = vsub.f32 %v1657_v9, %v1764_v35  ;;  %v362_v20 = vand.u32 4294901760, %v251_v26  ;;  %v1661_v28 = vld [vmem:[%s8126_s2 + $0x188] sm:$0xff]  ;;  %v5960_v49 = vpack.c.bf16 %v1768_v3, %v1764_v35  ;;  %v250_v9 = vld [vmem:[%s8125_s1 + $0x180] sm:$0xff] }
  0x53   : > { %8831 = vst [vmem:[#allocation132_spill] sm:$0xff] %v5929_v38  ;;  %8832 = vst [vmem:[#allocation133_spill] sm:$0xff] %v5931_v22  ;;  %v360_v22 = vand.u32 4294901760, %v248_v36  ;;  %v1766_v38 = vand.u32 4294901760, %v1656_v24  ;;  %v5962_v2 = vsub.f32 %v1659_v45, %v1768_v3  ;;  %v1660_v35 = vld [vmem:[%s8126_s2 + $0x180] sm:$0xff] }
  0x54   : > { %8833 = vst [vmem:[#allocation134_spill] sm:$0xff] %v5944_v19  ;;  %8834 = vst [vmem:[#allocation135_spill] sm:$0xff] %v5946_v5  ;;  %v5966_v19 = vsub.f32 %v246_v15, %v356_v42  ;;  %v5983_v15 = vsub.f32 %v1658_v21, %v1770_v47  ;;  %4719 = vmatprep.subr.bf16.mxu1 %v5960_v49  ;;  %v364_v21 = vand.u32 4294901760, %v250_v9 }
  0x55   : > { %8835 = vst [vmem:[#allocation136_spill] sm:$0xff] %v5948_v57  ;;  %8836 = vst [vmem:[#allocation137_spill] sm:$0xff] %v5952_v53  ;;  %v5964_v60 = vpack.c.bf16 %v360_v22, %v356_v42  ;;  %v252_v53 = vld [vmem:[%s8125_s1 + $0x190] sm:$0xff]  ;;  %v5977_v57 = vsub.f32 %v248_v36, %v360_v22  ;;  %v5979_v45 = vpack.c.bf16 %v1770_v47, %v1766_v38  ;;  %v1776_v22 = vand.u32 4294901760, %v1663_v14 }
  0x56   : > { %8837 = vst [vmem:[#allocation138_spill] sm:$0xff] %v5960_v49  ;;  %8838 = vst [vmem:[#allocation139_spill] sm:$0xff] %v5962_v2  ;;  %v5981_v3 = vsub.f32 %v1656_v24, %v1766_v38  ;;  %v1662_v42 = vld [vmem:[%s8126_s2 + $0x190] sm:$0xff]  ;;  %v257_v2 = vld [vmem:[%s8125_s1 + $0x1b8] sm:$0xff]  ;;  %v5996_v36 = vpack.c.bf16 %v366_v54, %v362_v20  ;;  %v5998_v24 = vsub.f32 %v251_v26, %v362_v20  ;;  %v1772_v38 = vand.u32 4294901760, %v1661_v28 }
  0x57   : > { %8839 = vst [vmem:[#allocation140_spill] sm:$0xff] %v5964_v60  ;;  %8840 = vst [vmem:[#allocation141_spill] sm:$0xff] %v5966_v19  ;;  %v255_v19 = vld [vmem:[%s8125_s1 + $0x1a8] sm:$0xff]  ;;  %4337 = vmatpush1.bf16.msra.mxu0 %v5964_v60  ;;  %v6000_v47 = vsub.f32 %v253_v11, %v366_v54  ;;  %4721 = vmatpush1.bf16.msra.mxu1 %v5979_v45  ;;  %v1774_v49 = vand.u32 4294901760, %v1660_v35  ;;  %v1778_v26 = vand.u32 4294901760, %v1662_v42  ;;  %v374_v54 = vand.u32 4294901760, %v257_v2 }
  0x58   : > { %8841 = vst [vmem:[#allocation142_spill] sm:$0xff] %v5977_v57  ;;  %8842 = vst [vmem:[#allocation143_spill] sm:$0xff] %v5979_v45  ;;  %4339 = vmatprep.subr.bf16.mxu0 %v5996_v36  ;;  %v6010_v60 = vsub.f32 %v1661_v28, %v1772_v38  ;;  %v370_v20 = vand.u32 4294901760, %v255_v19  ;;  %v1665_v11 = vld [vmem:[%s8126_s2 + $0x1a8] sm:$0xff]  ;;  %v1667_v45 = vld [vmem:[%s8126_s2 + $0x1b8] sm:$0xff]  ;;  %v6024_v28 = vsub.f32 %v250_v9, %v364_v21 }
  0x59   : > { %8843 = vst [vmem:[#allocation144_spill] sm:$0xff] %v5981_v3  ;;  %8844 = vst [vmem:[#allocation145_spill] sm:$0xff] %v5983_v15  ;;  %v368_v15 = vand.u32 4294901760, %v252_v53  ;;  %v256_v3 = vld [vmem:[%s8125_s1 + $0x1b0] sm:$0xff]  ;;  %v1664_v57 = vld [vmem:[%s8126_s2 + $0x1a0] sm:$0xff]  ;;  %v6041_v9 = vsub.f32 %v1662_v42, %v1778_v26  ;;  %v1784_v42 = vand.u32 4294901760, %v1667_v45 }
  0x5a   : > { %8845 = vst [vmem:[#allocation146_spill] sm:$0xff] %v5996_v36  ;;  %8846 = vst [vmem:[#allocation147_spill] sm:$0xff] %v5998_v24  ;;  %v6020_v24 = vsub.f32 %v1663_v14, %v1776_v22  ;;  %v6037_v14 = vpack.c.bf16 %v1778_v26, %v1774_v49 }
  0x5b   : > { %8847 = vst [vmem:[#allocation148_spill] sm:$0xff] %v6000_v47  ;;  %8849 = vst [vmem:[#allocation149_spill] sm:$0xff] %v6010_v60  ;;  %v6018_v47 = vpack.c.bf16 %v1776_v22, %v1772_v38  ;;  %v6022_v36 = vpack.c.bf16 %v368_v15, %v364_v21  ;;  %v254_v60 = vld [vmem:[%s8125_s1 + $0x1a0] sm:$0xff]  ;;  %v6035_v38 = vsub.f32 %v252_v53, %v368_v15  ;;  %v1666_v21 = vld [vmem:[%s8126_s2 + $0x1b0] sm:$0xff]  ;;  %v1780_v15 = vand.u32 4294901760, %v1665_v11 }
  0x5c   : > { %8851 = vst [vmem:[#allocation151_spill] sm:$0xff] %v6020_v24  ;;  %8853 = vst [vmem:[#allocation153_spill] sm:$0xff] %v6024_v28  ;;  %v6039_v22 = vsub.f32 %v1660_v35, %v1774_v49  ;;  %v259_v28 = vld [vmem:[%s8125_s1 + $0x1c8] sm:$0xff]  ;;  %v261_v24 = vld [vmem:[%s8125_s1 + $0x1d8] sm:$0xff]  ;;  %v6060_v53 = vpack.c.bf16 %v374_v54, %v370_v20  ;;  %v6062_v49 = vsub.f32 %v255_v19, %v370_v20  ;;  %v372_v26 = vand.u32 4294901760, %v254_v60 }
  0x5d   : > { %8850 = vst [vmem:[#allocation150_spill] sm:$0xff] %v6018_v47  ;;  %8852 = vst [vmem:[#allocation152_spill] sm:$0xff] %v6022_v36  ;;  %4723 = vmatprep.subr.bf16.mxu1 %v6018_v47  ;;  %4341 = vmatpush1.bf16.msra.mxu0 %v6022_v36  ;;  %v6064_v35 = vsub.f32 %v257_v2, %v374_v54  ;;  %v1786_v47 = vand.u32 4294901760, %v1666_v21  ;;  %v378_v36 = vand.u32 4294901760, %v259_v28  ;;  %v382_v5 = vand.u32 4294901760, %v261_v24  ;;  %v1669_v19 = vld [vmem:[%s8126_s2 + $0x1c8] sm:$0xff] }
  0x5e   : > { %8854 = vst [vmem:[#allocation154_spill] sm:$0xff] %v6035_v38  ;;  %8855 = vst [vmem:[#allocation155_spill] sm:$0xff] %v6037_v14  ;;  %4725 = vmatpush1.bf16.msra.mxu1 %v6037_v14  ;;  %4343 = vmatprep.subr.bf16.mxu0 %v6060_v53  ;;  %v6068_v38 = vsub.f32 %v1665_v11, %v1780_v15  ;;  %v1671_v2 = vld [vmem:[%s8126_s2 + $0x1d8] sm:$0xff]  ;;  %v6076_v20 = vpack.c.bf16 %v1784_v42, %v1780_v15  ;;  %v258_v11 = vld [vmem:[%s8125_s1 + $0x1c0] sm:$0xff] }
  0x5f   : > { %8856 = vst [vmem:[#allocation156_spill] sm:$0xff] %v6039_v22  ;;  %8857 = vst [vmem:[#allocation157_spill] sm:$0xff] %v6041_v9  ;;  %v376_v9 = vand.u32 4294901760, %v256_v3  ;;  %v1782_v22 = vand.u32 4294901760, %v1664_v57  ;;  %v6078_v54 = vsub.f32 %v1667_v45, %v1784_v42 }
  0x60   : > { %8858 = vst [vmem:[#allocation158_spill] sm:$0xff] %v6060_v53  ;;  %8859 = vst [vmem:[#allocation159_spill] sm:$0xff] %v6062_v49  ;;  %v6082_v53 = vsub.f32 %v254_v60, %v372_v26  ;;  %v6100_v60 = vsub.f32 %v1666_v21, %v1786_v47  ;;  %4727 = vmatprep.subr.bf16.mxu1 %v6076_v20  ;;  %v380_v21 = vand.u32 4294901760, %v258_v11 }
  0x61   : > { %8860 = vst [vmem:[#allocation160_spill] sm:$0xff] %v6064_v35  ;;  %8861 = vst [vmem:[#allocation161_spill] sm:$0xff] %v6068_v38  ;;  %v6080_v14 = vpack.c.bf16 %v376_v9, %v372_v26  ;;  %v260_v38 = vld [vmem:[%s8125_s1 + $0x1d0] sm:$0xff]  ;;  %v1668_v35 = vld [vmem:[%s8126_s2 + $0x1c0] sm:$0xff]  ;;  %v6094_v15 = vsub.f32 %v256_v3, %v376_v9  ;;  %v6096_v45 = vpack.c.bf16 %v1786_v47, %v1782_v22  ;;  %v1792_v9 = vand.u32 4294901760, %v1671_v2 }
  0x62   : > { %8862 = vst [vmem:[#allocation162_spill] sm:$0xff] %v6076_v20  ;;  %8863 = vst [vmem:[#allocation163_spill] sm:$0xff] %v6078_v54  ;;  %v6098_v42 = vsub.f32 %v1664_v57, %v1782_v22  ;;  %v1670_v26 = vld [vmem:[%s8126_s2 + $0x1d0] sm:$0xff]  ;;  %v265_v54 = vld [vmem:[%s8125_s1 + $0x1f8] sm:$0xff]  ;;  %v6113_v57 = vpack.c.bf16 %v382_v5, %v378_v36  ;;  %v6115_v3 = vsub.f32 %v259_v28, %v378_v36  ;;  %v1788_v22 = vand.u32 4294901760, %v1669_v19 }
  0x63   : > { %8864 = vst [vmem:[#allocation164_spill] sm:$0xff] %v6080_v14  ;;  %8865 = vst [vmem:[#allocation165_spill] sm:$0xff] %v6082_v53  ;;  %v263_v53 = vld [vmem:[%s8125_s1 + $0x1e8] sm:$0xff]  ;;  %4345 = vmatpush1.bf16.msra.mxu0 %v6080_v14  ;;  %v6117_v47 = vsub.f32 %v261_v24, %v382_v5  ;;  %4729 = vmatpush1.bf16.msra.mxu1 %v6096_v45  ;;  %v1794_v36 = vand.u32 4294901760, %v1670_v26  ;;  %v390_v5 = vand.u32 4294901760, %v265_v54 }
  0x64   : > { %8866 = vst [vmem:[#allocation166_spill] sm:$0xff] %v6094_v15  ;;  %8867 = vst [vmem:[#allocation167_spill] sm:$0xff] %v6096_v45  ;;  %4347 = vmatprep.subr.bf16.mxu0 %v6113_v57  ;;  %v6126_v14 = vsub.f32 %v1669_v19, %v1788_v22  ;;  %v386_v28 = vand.u32 4294901760, %v263_v53  ;;  %v1673_v24 = vld [vmem:[%s8126_s2 + $0x1e8] sm:$0xff]  ;;  %v1675_v45 = vld [vmem:[%s8126_s2 + $0x1f8] sm:$0xff]  ;;  %v6134_v20 = vpack.c.bf16 %v1792_v9, %v1788_v22 }
  0x65   : > { %8868 = vst [vmem:[#allocation168_spill] sm:$0xff] %v6098_v42  ;;  %8869 = vst [vmem:[#allocation169_spill] sm:$0xff] %v6100_v60  ;;  %v384_v60 = vand.u32 4294901760, %v260_v38  ;;  %v1790_v42 = vand.u32 4294901760, %v1668_v35  ;;  %v6140_v19 = vsub.f32 %v258_v11, %v380_v21  ;;  %v1672_v15 = vld [vmem:[%s8126_s2 + $0x1e0] sm:$0xff]  ;;  %v6157_v11 = vsub.f32 %v1670_v26, %v1794_v36 }
  0x66   : > { %8870 = vst [vmem:[#allocation170_spill] sm:$0xff] %v6113_v57  ;;  %8871 = vst [vmem:[#allocation171_spill] sm:$0xff] %v6115_v3  ;;  %v262_v57 = vld [vmem:[%s8125_s1 + $0x1e0] sm:$0xff]  ;;  %4731 = vmatprep.subr.bf16.mxu1 %v6134_v20  ;;  %v6167_v49 = vsub.f32 %v263_v53, %v386_v28  ;;  %v8333_v53 = vand.u32 4294901760, %v5372_v16 }
  0x67   : > { %8872 = vst [vmem:[#allocation172_spill] sm:$0xff] %v6117_v47  ;;  %8873 = vst [vmem:[#allocation173_spill] sm:$0xff] %v6126_v14  ;;  %v6136_v47 = vsub.f32 %v1671_v2, %v1792_v9  ;;  %v6138_v3 = vpack.c.bf16 %v384_v60, %v380_v21  ;;  %v264_v14 = vld [vmem:[%s8125_s1 + $0x1f0] sm:$0xff]  ;;  %v6151_v22 = vsub.f32 %v260_v38, %v384_v60  ;;  %v388_v60 = vand.u32 4294901760, %v262_v57 }
  0x68   : > { %8874 = vst [vmem:[#allocation174_spill] sm:$0xff] %v6134_v20  ;;  %8877 = vst [vmem:[#allocation177_spill] sm:$0xff] %v6140_v19  ;;  %v6153_v2 = vpack.c.bf16 %v1794_v36, %v1790_v42  ;;  %v6155_v9 = vsub.f32 %v1668_v35, %v1790_v42  ;;  %v1674_v21 = vld [vmem:[%s8126_s2 + $0x1f0] sm:$0xff]  ;;  %v199_v19 = vld [vmem:[%s6123_s25 + $0x8] sm:$0xff]  ;;  %v6169_v38 = vsub.f32 %v265_v54, %v390_v5  ;;  %v1796_v35 = vand.u32 4294901760, %v1673_v24 }
  0x69   : > { %8875 = vst [vmem:[#allocation175_spill] sm:$0xff] %v6136_v47  ;;  %8876 = vst [vmem:[#allocation176_spill] sm:$0xff] %v6138_v3  ;;  %4349 = vmatpush1.bf16.msra.mxu0 %v6138_v3  ;;  %v6165_v47 = vpack.c.bf16 %v390_v5, %v386_v28  ;;  %v1800_v42 = vand.u32 4294901760, %v1675_v45  ;;  %v392_v26 = vand.u32 4294901760, %v264_v14  ;;  %v1798_v36 = vand.u32 4294901760, %v1672_v15 }
  0x6a   : > { %8878 = vst [vmem:[#allocation178_spill] sm:$0xff] %v6151_v22  ;;  %8879 = vst [vmem:[#allocation179_spill] sm:$0xff] %v6153_v2  ;;  %4733 = vmatpush1.bf16.msra.mxu1 %v6153_v2  ;;  %v1802_v20 = vand.u32 4294901760, %v1674_v21  ;;  %v6175_v3 = vand.u32 4294901760, %v199_v19  ;;  %v6184_v2 = vsub.f32 %v262_v57, %v388_v60  ;;  %v430_v57 = vsub.f32 %v5372_v16, %v8333_v53 }
  0x6b   : > { %8880 = vst [vmem:[#allocation180_spill] sm:$0xff] %v6155_v9  ;;  %8881 = vst [vmem:[#allocation181_spill] sm:$0xff] %v6157_v11  ;;  %4351 = vmatprep.subr.bf16.mxu0 %v6165_v47  ;;  %v6173_v11 = vsub.f32 %v1673_v24, %v1796_v35  ;;  %v6178_v28 = vpack.c.bf16 %v1800_v42, %v1796_v35  ;;  %v6180_v54 = vsub.f32 %v1675_v45, %v1800_v42 }
  0x6c   : > { %8882 = vst [vmem:[#allocation182_spill] sm:$0xff] %v6165_v47  ;;  %8883 = vst [vmem:[#allocation183_spill] sm:$0xff] %v6167_v49  ;;  %v6182_v5 = vpack.c.bf16 %v392_v26, %v388_v60  ;;  %v6187_v49 = vsub.f32 %v264_v14, %v392_v26  ;;  %v6189_v9 = vpack.c.bf16 %v1802_v20, %v1798_v36  ;;  %v8338_v14 = vand.u32 4294901760, %v5374_v17 }
  0x6d   : > { %8884 = vst [vmem:[#allocation184_spill] sm:$0xff] %v6169_v38  ;;  %8885 = vst [vmem:[#allocation185_spill] sm:$0xff] %v6173_v11  ;;  %v198_v38 = vld [vmem:[%s6123_s25] sm:$0xff]  ;;  %v6191_v24 = vsub.f32 %v1672_v15, %v1798_v36  ;;  %v6193_v47 = vsub.f32 %v1674_v21, %v1802_v20  ;;  %4735 = vmatprep.subr.bf16.mxu1 %v6178_v28  ;;  %v6198_v45 = vsub.f32 %v199_v19, %v6175_v3 }
  0x6e   : > { %8886 = vst [vmem:[#allocation186_spill] sm:$0xff] %v6175_v3  ;;  %8887 = vst [vmem:[#allocation187_spill] sm:$0xff] %v6178_v28  ;;  %4353 = vmatpush1.bf16.msra.mxu0 %v6182_v5  ;;  %v8341_v35 = vand.u32 4294901760, %v5376_v18  ;;  %4737 = vmatpush1.bf16.msra.mxu1 %v6189_v9  ;;  %v8346_v20 = vand.u32 4294901760, %v5389_v23  ;;  %v6207_v15 = vand.u32 4294901760, %v198_v38  ;;  %v431_v60 = vand.u32 4294901760, %v430_v57 }
  0x6f   : > { %8888 = vst [vmem:[#allocation188_spill] sm:$0xff] %v6180_v54  ;;  %8889 = vst [vmem:[#allocation189_spill] sm:$0xff] %v6182_v5  ;;  %v6212_v19 = vand.u32 4294901760, %v6198_v45  ;;  %v442_v26 = vsub.f32 %v5374_v17, %v8338_v14  ;;  %v8899_v42 = vand.u32 4294901760, %v5393_v25  ;;  %v8900_v57 = vand.u32 4294901760, %v5399_v27 }
  0x70   : > { %8890 = vst [vmem:[#allocation190_spill] sm:$0xff] %v6184_v2  ;;  %8891 = vst [vmem:[#allocation191_spill] sm:$0xff] %v6187_v49  ;;  %v1840_v36 = vsub.f32 %v5376_v18, %v8341_v35  ;;  %v1852_v53 = vsub.f32 %v5389_v23, %v8346_v20  ;;  %v6224_v21 = vsub.f32 %v198_v38, %v6207_v15  ;;  %v8358_v3 = vand.u32 4294901760, %v5414_v39 }
  0x71   : > { %8892 = vst [vmem:[#allocation192_spill] sm:$0xff] %v6189_v9  ;;  %8893 = vst [vmem:[#allocation193_spill] sm:$0xff] %v6191_v24  ;;  %v436_v9 = vsub.f32 %v5393_v25, %v8899_v42  ;;  %v448_v5 = vsub.f32 %v5399_v27, %v8900_v57  ;;  %v397_v14 = vsub.f32 %v6198_v45, %v6212_v19  ;;  %v443_v28 = vand.u32 4294901760, %v442_v26 }
  0x72   : > { %8894 = vst [vmem:[#allocation194_spill] sm:$0xff] %v6193_v47  ;;  %8895 = vst [vmem:[#allocation195_spill] sm:$0xff] %v6198_v45  ;;  %v1841_v35 = vand.u32 4294901760, %v1840_v36  ;;  %v1853_v18 = vand.u32 4294901760, %v1852_v53  ;;  %v6236_v20 = vand.u32 4294901760, %v6224_v21  ;;  %v1846_v42 = vsub.f32 %v5414_v39, %v8358_v3 }
  0x73   : > { %8896 = vst [vmem:[#allocation196_spill] sm:$0xff] %v6207_v15  ;;  %8897 = vst [vmem:[#allocation197_spill] sm:$0xff] %v6212_v19  ;;  %v437_v38 = vand.u32 4294901760, %v436_v9  ;;  %v449_v15 = vand.u32 4294901760, %v448_v5  ;;  %v398_v23 = vand.u32 4294901760, %v397_v14  ;;  %v4354_v17 = vpack.c.bf16 %v443_v28, %v431_v60 }
  0x74   : > { %8898 = vst [vmem:[#allocation198_spill] sm:$0xff] %v6224_v21  ;;  %8901 = vst [vmem:[#allocation199_spill] sm:$0xff] %v6236_v20  ;;  %v8357_v57 = vand.u32 4294901760, %v5416_v40  ;;  %v4738_v27 = vpack.c.bf16 %v1853_v18, %v1841_v35  ;;  %v403_v26 = vsub.f32 %v6224_v21, %v6236_v20  ;;  %v8362_v53 = vand.u32 4294901760, %v5418_v41 }
  0x75   : > { %v4356_v36 = vpack.c.bf16 %v449_v15, %v437_v38  ;;  %399 = vmatprep.mubr.f32.mxu0 %v398_v23  ;;  %4355 = vmatprep.subr.bf16.mxu0 %v4354_v17  ;;  %v1847_v19 = vand.u32 4294901760, %v1846_v42  ;;  %v8359_v28 = vand.u32 4294901760, %v5431_v46  ;;  %v8360_v5 = vand.u32 4294901760, %v5435_v48 }
  0x76   : > { %v1858_v9 = vsub.f32 %v5416_v40, %v8357_v57  ;;  %1809 = vmatprep.mubr.f32.mxu1 %v398_v23  ;;  %4739 = vmatprep.subr.bf16.mxu1 %v4738_v27  ;;  %v404_v18 = vand.u32 4294901760, %v403_v26  ;;  %v454_v14 = vsub.f32 %v5418_v41, %v8362_v53  ;;  %v8361_v35 = vand.u32 4294901760, %v5441_v50 }
  0x77   : > { %v8363_v17 = vand.u32 4294901760, %v5443_v52  ;;  %v466_v60 = vsub.f32 %v5431_v46, %v8359_v28  ;;  %v1864_v38 = vsub.f32 %v5435_v48, %v8360_v5  ;;  %v8388_v23 = vand.u32 4294901760, %v5455_v61 }
  0x78   : > { %v1859_v15 = vand.u32 4294901760, %v1858_v9  ;;  %405 = vmatmul.mubr.f32.vlgmr.msra.gmra.mrb[0].mxu0 %v404_v18  ;;  %1815 = vmatmul.mubr.f32.vlgmr.msra.gmra.mrb[0].mxu1 %v404_v18  ;;  %v455_v27 = vand.u32 4294901760, %v454_v14  ;;  %v1876_v42 = vsub.f32 %v5441_v50, %v8361_v35  ;;  %v8367_v9 = vand.u32 4294901760, %v5457_v62 }
  0x79   : > { %v460_v26 = vsub.f32 %v5443_v52, %v8363_v17  ;;  %4357 = vmatpush1.bf16.msra.mxu0 %v4356_v36  ;;  %v467_v3 = vand.u32 4294901760, %v466_v60  ;;  %v1865_v28 = vand.u32 4294901760, %v1864_v38  ;;  %v472_v5 = vsub.f32 %v5455_v61, %v8388_v23  ;;  %v8904_v23 = vld [vmem:[#allocation64_spill] sm:$0xff] }
  0x7a   : > { %v4740_v57 = vpack.c.bf16 %v1859_v15, %v1847_v19  ;;  %v1877_v18 = vand.u32 4294901760, %v1876_v42  ;;  %v1870_v35 = vsub.f32 %v5457_v62, %v8367_v9  ;;  %v8366_v53 = vand.u32 4294901760, %v5470_v4 }
  0x7b   : > { %v461_v14 = vand.u32 4294901760, %v460_v26  ;;  %v4358_v17 = vpack.c.bf16 %v467_v3, %v455_v27  ;;  %v473_v20 = vand.u32 4294901760, %v472_v5  ;;  %v8372_v36 = vand.u32 4294901760, %v5474_v6 }
  0x7c   : > { %4741 = vmatpush1.bf16.msra.mxu1 %v4740_v57  ;;  %v8369_v19 = vand.u32 4294901760, %v5486_v10  ;;  %v4742_v15 = vpack.c.bf16 %v1877_v18, %v1865_v28  ;;  %v1871_v60 = vand.u32 4294901760, %v1870_v35  ;;  %v1882_v38 = vsub.f32 %v5470_v4, %v8366_v53 }
  0x7d   : > { %v8368_v42 = vand.u32 4294901760, %v5490_v12  ;;  %4359 = vmatprep.subr.bf16.mxu0 %v4358_v17  ;;  %v4360_v26 = vpack.c.bf16 %v473_v20, %v461_v14  ;;  %v478_v57 = vsub.f32 %v5474_v6, %v8372_v36  ;;  %v8370_v5 = vand.u32 4294901760, %v5492_v13 }
  0x7e   : > { %v490_v3 = vsub.f32 %v5486_v10, %v8369_v19  ;;  %4743 = vmatprep.subr.bf16.mxu1 %v4742_v15  ;;  %v1883_v28 = vand.u32 4294901760, %v1882_v38  ;;  %v8371_v27 = vand.u32 4294901760, %v5502_v33  ;;  %v8380_v20 = vand.u32 4294901760, %v5504_v34 }
  0x7f   : > { %v1888_v35 = vsub.f32 %v5490_v12, %v8368_v42  ;;  %4361 = vmatpush1.bf16.msra.mxu0 %v4360_v26  ;;  %v479_v17 = vand.u32 4294901760, %v478_v57  ;;  %v1900_v14 = vsub.f32 %v5492_v13, %v8370_v5  ;;  %v8374_v53 = vand.u32 4294901760, %v5517_v43 }
  0x80   : > { %v491_v18 = vand.u32 4294901760, %v490_v3  ;;  %v4744_v9 = vpack.c.bf16 %v1883_v28, %v1871_v60  ;;  %v484_v38 = vsub.f32 %v5502_v33, %v8371_v27  ;;  %v496_v42 = vsub.f32 %v5504_v34, %v8380_v20 }
  0x81   : > { %v1889_v15 = vand.u32 4294901760, %v1888_v35  ;;  %v1901_v26 = vand.u32 4294901760, %v1900_v14  ;;  %v1894_v57 = vsub.f32 %v5517_v43, %v8374_v53  ;;  %v8373_v3 = vand.u32 4294901760, %v5519_v44 }
  0x82   : > { %v4362_v19 = vpack.c.bf16 %v491_v18, %v479_v17  ;;  %4745 = vmatpush1.bf16.msra.mxu1 %v4744_v9  ;;  %v485_v5 = vand.u32 4294901760, %v484_v38  ;;  %v497_v60 = vand.u32 4294901760, %v496_v42  ;;  %v8377_v28 = vand.u32 4294901760, %v5523_v51 }
  0x83   : > { %v8375_v35 = vand.u32 4294901760, %v5536_v56  ;;  %v4746_v27 = vpack.c.bf16 %v1901_v26, %v1889_v15  ;;  %v1895_v36 = vand.u32 4294901760, %v1894_v57  ;;  %v1906_v17 = vsub.f32 %v5519_v44, %v8373_v3 }
  0x84   : > { %4363 = vmatprep.subr.bf16.mxu0 %v4362_v19  ;;  %v8376_v18 = vand.u32 4294901760, %v5540_v58  ;;  %v4364_v14 = vpack.c.bf16 %v497_v60, %v485_v5  ;;  %v502_v9 = vsub.f32 %v5523_v51, %v8377_v28  ;;  %v8378_v38 = vand.u32 4294901760, %v5543_v63 }
  0x85   : > { %v514_v42 = vsub.f32 %v5536_v56, %v8375_v35  ;;  %4747 = vmatprep.subr.bf16.mxu1 %v4746_v27  ;;  %v1907_v19 = vand.u32 4294901760, %v1906_v17  ;;  %v8379_v26 = vand.u32 4294901760, %v5549_v7  ;;  %v8387_v5 = vand.u32 4294901760, %v5562_v29 }
  0x86   : > { %v1912_v15 = vsub.f32 %v5540_v58, %v8376_v18  ;;  %4365 = vmatpush1.bf16.msra.mxu0 %v4364_v14  ;;  %v503_v57 = vand.u32 4294901760, %v502_v9  ;;  %v1924_v3 = vsub.f32 %v5543_v63, %v8378_v38  ;;  %v8382_v53 = vand.u32 4294901760, %v5566_v31 }
  0x87   : > { %v515_v60 = vand.u32 4294901760, %v514_v42  ;;  %v4748_v35 = vpack.c.bf16 %v1907_v19, %v1895_v36  ;;  %v508_v17 = vsub.f32 %v5549_v7, %v8379_v26  ;;  %v520_v18 = vsub.f32 %v5562_v29, %v8387_v5 }
  0x88   : > { %v1913_v27 = vand.u32 4294901760, %v1912_v15  ;;  %v1925_v14 = vand.u32 4294901760, %v1924_v3  ;;  %v1918_v9 = vsub.f32 %v5566_v31, %v8382_v53  ;;  %v8381_v42 = vand.u32 4294901760, %v5577_v59 }
  0x89   : > { %v4366_v28 = vpack.c.bf16 %v515_v60, %v503_v57  ;;  %4749 = vmatpush1.bf16.msra.mxu1 %v4748_v35  ;;  %v509_v38 = vand.u32 4294901760, %v508_v17  ;;  %v521_v36 = vand.u32 4294901760, %v520_v18  ;;  %v8385_v19 = vand.u32 4294901760, %v5581_v0 }
  0x8a   : > { %v8383_v15 = vand.u32 4294901760, %v5583_v37  ;;  %v4750_v26 = vpack.c.bf16 %v1925_v14, %v1913_v27  ;;  %v1919_v20 = vand.u32 4294901760, %v1918_v9  ;;  %v1930_v3 = vsub.f32 %v5577_v59, %v8381_v42 }
  0x8b   : > { %4367 = vmatprep.subr.bf16.mxu0 %v4366_v28  ;;  %v8384_v57 = vand.u32 4294901760, %v5587_v32  ;;  %v4368_v60 = vpack.c.bf16 %v521_v36, %v509_v38  ;;  %v526_v35 = vsub.f32 %v5581_v0, %v8385_v19  ;;  %v8386_v17 = vand.u32 4294901760, %v5598_v55 }
  0x8c   : > { %v538_v18 = vsub.f32 %v5583_v37, %v8383_v15  ;;  %4751 = vmatprep.subr.bf16.mxu1 %v4750_v26  ;;  %v1931_v28 = vand.u32 4294901760, %v1930_v3  ;;  %v8391_v14 = vand.u32 4294901760, %v5602_v30  ;;  %v8394_v38 = vand.u32 4294901760, %v5613_v8 }
  0x8d   : > { %v1936_v27 = vsub.f32 %v5587_v32, %v8384_v57  ;;  %4369 = vmatpush1.bf16.msra.mxu0 %v4368_v60  ;;  %v527_v9 = vand.u32 4294901760, %v526_v35  ;;  %v1948_v42 = vsub.f32 %v5598_v55, %v8386_v17  ;;  %v8395_v53 = vand.u32 4294901760, %v5617_v1  ;;  %v8944_v32 = vld [vmem:[#allocation124_spill] sm:$0xff] }
  0x8e   : > { %v539_v36 = vand.u32 4294901760, %v538_v18  ;;  %v4752_v15 = vpack.c.bf16 %v1931_v28, %v1919_v20  ;;  %v532_v3 = vsub.f32 %v5602_v30, %v8391_v14  ;;  %v544_v57 = vsub.f32 %v5613_v8, %v8394_v38  ;;  %v8902_v18 = vld [vmem:[#allocation61_spill] sm:$0xff]  ;;  %v8903_v28 = vld [vmem:[#allocation63_spill] sm:$0xff] }
  0x8f   : > { %v1937_v26 = vand.u32 4294901760, %v1936_v27  ;;  %v1949_v60 = vand.u32 4294901760, %v1948_v42  ;;  %v1942_v35 = vsub.f32 %v5617_v1, %v8395_v53  ;;  %v8396_v17 = vand.u32 4294901760, %v8902_v18 }
  0x90   : > { %v4370_v19 = vpack.c.bf16 %v539_v36, %v527_v9  ;;  %4753 = vmatpush1.bf16.msra.mxu1 %v4752_v15  ;;  %v533_v5 = vand.u32 4294901760, %v532_v3  ;;  %v545_v20 = vand.u32 4294901760, %v544_v57  ;;  %v8398_v27 = vand.u32 4294901760, %v8903_v28  ;;  %v8905_v9 = vld [vmem:[#allocation65_spill] sm:$0xff]  ;;  %v8906_v3 = vld [vmem:[#allocation67_spill] sm:$0xff] }
  0x91   : > { %v8399_v21 = vand.u32 4294901760, %v8904_v23  ;;  %v4754_v14 = vpack.c.bf16 %v1949_v60, %v1937_v26  ;;  %v1943_v45 = vand.u32 4294901760, %v1942_v35  ;;  %v1954_v42 = vsub.f32 %v8902_v18, %v8396_v17  ;;  %v8907_v60 = vld [vmem:[#allocation69_spill] sm:$0xff]  ;;  %v8908_v17 = vld [vmem:[#allocation70_spill] sm:$0xff] }
  0x92   : > { %4371 = vmatprep.subr.bf16.mxu0 %v4370_v19  ;;  %v8403_v36 = vand.u32 4294901760, %v8905_v9  ;;  %v4372_v38 = vpack.c.bf16 %v545_v20, %v533_v5  ;;  %v550_v15 = vsub.f32 %v8903_v28, %v8398_v27  ;;  %v8405_v53 = vand.u32 4294901760, %v8906_v3  ;;  %v8912_v28 = vld [vmem:[#allocation76_spill] sm:$0xff] }
  0x93   : > { %v562_v57 = vsub.f32 %v8904_v23, %v8399_v21  ;;  %4755 = vmatprep.subr.bf16.mxu1 %v4754_v14  ;;  %v1955_v19 = vand.u32 4294901760, %v1954_v42  ;;  %v8410_v35 = vand.u32 4294901760, %v8907_v60  ;;  %v8412_v5 = vand.u32 4294901760, %v8908_v17  ;;  %v8909_v21 = vld [vmem:[#allocation72_spill] sm:$0xff] }
  0x94   : > { %v1960_v26 = vsub.f32 %v8905_v9, %v8403_v36  ;;  %4373 = vmatpush1.bf16.msra.mxu0 %v4372_v38  ;;  %v551_v20 = vand.u32 4294901760, %v550_v15  ;;  %v1972_v27 = vsub.f32 %v8906_v3, %v8405_v53  ;;  %v8413_v1 = vand.u32 4294901760, %v8909_v21 }
  0x95   : > { %v563_v18 = vand.u32 4294901760, %v562_v57  ;;  %v4756_v23 = vpack.c.bf16 %v1955_v19, %v1943_v45  ;;  %v556_v42 = vsub.f32 %v8907_v60, %v8410_v35  ;;  %v568_v36 = vsub.f32 %v8908_v17, %v8412_v5  ;;  %v8910_v57 = vld [vmem:[#allocation73_spill] sm:$0xff]  ;;  %v8911_v19 = vld [vmem:[#allocation75_spill] sm:$0xff] }
  0x96   : > { %v1961_v14 = vand.u32 4294901760, %v1960_v26  ;;  %v1973_v38 = vand.u32 4294901760, %v1972_v27  ;;  %v1966_v15 = vsub.f32 %v8909_v21, %v8413_v1  ;;  %v8414_v53 = vand.u32 4294901760, %v8910_v57  ;;  %v8913_v27 = vld [vmem:[#allocation77_spill] sm:$0xff] }
  0x97   : > { %v4374_v9 = vpack.c.bf16 %v563_v18, %v551_v20  ;;  %4757 = vmatpush1.bf16.msra.mxu1 %v4756_v23  ;;  %v557_v3 = vand.u32 4294901760, %v556_v42  ;;  %v569_v45 = vand.u32 4294901760, %v568_v36  ;;  %v8416_v26 = vand.u32 4294901760, %v8911_v19  ;;  %v8914_v42 = vld [vmem:[#allocation79_spill] sm:$0xff] }
  0x98   : > { %v8417_v8 = vand.u32 4294901760, %v8912_v28  ;;  %v4758_v35 = vpack.c.bf16 %v1973_v38, %v1961_v14  ;;  %v1967_v60 = vand.u32 4294901760, %v1966_v15  ;;  %v1978_v18 = vsub.f32 %v8910_v57, %v8414_v53  ;;  %v8915_v38 = vld [vmem:[#allocation81_spill] sm:$0xff]  ;;  %v8916_v53 = vld [vmem:[#allocation82_spill] sm:$0xff] }
  0x99   : > { %4375 = vmatprep.subr.bf16.mxu0 %v4374_v9  ;;  %v8420_v20 = vand.u32 4294901760, %v8913_v27  ;;  %v4376_v5 = vpack.c.bf16 %v569_v45, %v557_v3  ;;  %v574_v23 = vsub.f32 %v8911_v19, %v8416_v26  ;;  %v8422_v1 = vand.u32 4294901760, %v8914_v42  ;;  %v8920_v19 = vld [vmem:[#allocation88_spill] sm:$0xff] }
  0x9a   : > { %v586_v36 = vsub.f32 %v8912_v28, %v8417_v8  ;;  %4759 = vmatprep.subr.bf16.mxu1 %v4758_v35  ;;  %v1979_v9 = vand.u32 4294901760, %v1978_v18  ;;  %v8426_v15 = vand.u32 4294901760, %v8915_v38  ;;  %v8428_v3 = vand.u32 4294901760, %v8916_v53  ;;  %v8917_v8 = vld [vmem:[#allocation84_spill] sm:$0xff] }
  0x9b   : > { %v1984_v14 = vsub.f32 %v8913_v27, %v8420_v20  ;;  %4377 = vmatpush1.bf16.msra.mxu0 %v4376_v5  ;;  %v575_v45 = vand.u32 4294901760, %v574_v23  ;;  %v1996_v26 = vsub.f32 %v8914_v42, %v8422_v1  ;;  %v8429_v21 = vand.u32 4294901760, %v8917_v8 }
  0x9c   : > { %v587_v57 = vand.u32 4294901760, %v586_v36  ;;  %v4760_v28 = vpack.c.bf16 %v1979_v9, %v1967_v60  ;;  %v580_v18 = vsub.f32 %v8915_v38, %v8426_v15  ;;  %v592_v20 = vsub.f32 %v8916_v53, %v8428_v3  ;;  %v8918_v36 = vld [vmem:[#allocation85_spill] sm:$0xff]  ;;  %v8919_v9 = vld [vmem:[#allocation87_spill] sm:$0xff] }
  0x9d   : > { %v1985_v35 = vand.u32 4294901760, %v1984_v14  ;;  %v1997_v5 = vand.u32 4294901760, %v1996_v26  ;;  %v1990_v23 = vsub.f32 %v8917_v8, %v8429_v21  ;;  %v8430_v1 = vand.u32 4294901760, %v8918_v36  ;;  %v8921_v26 = vld [vmem:[#allocation89_spill] sm:$0xff] }
  0x9e   : > { %v4378_v27 = vpack.c.bf16 %v587_v57, %v575_v45  ;;  %4761 = vmatpush1.bf16.msra.mxu1 %v4760_v28  ;;  %v581_v42 = vand.u32 4294901760, %v580_v18  ;;  %v593_v60 = vand.u32 4294901760, %v592_v20  ;;  %v8432_v14 = vand.u32 4294901760, %v8919_v9  ;;  %v8922_v18 = vld [vmem:[#allocation91_spill] sm:$0xff] }
  0x9f   : > { %v8433_v17 = vand.u32 4294901760, %v8920_v19  ;;  %v4762_v15 = vpack.c.bf16 %v1997_v5, %v1985_v35  ;;  %v1991_v38 = vand.u32 4294901760, %v1990_v23  ;;  %v2002_v57 = vsub.f32 %v8918_v36, %v8430_v1  ;;  %v8923_v5 = vld [vmem:[#allocation93_spill] sm:$0xff]  ;;  %v8924_v1 = vld [vmem:[#allocation94_spill] sm:$0xff] }
  0xa0   : > { %4379 = vmatprep.subr.bf16.mxu0 %v4378_v27  ;;  %v8436_v45 = vand.u32 4294901760, %v8921_v26  ;;  %v4380_v3 = vpack.c.bf16 %v593_v60, %v581_v42  ;;  %v598_v28 = vsub.f32 %v8919_v9, %v8432_v14  ;;  %v8438_v21 = vand.u32 4294901760, %v8922_v18  ;;  %v8928_v9 = vld [vmem:[#allocation100_spill] sm:$0xff] }
  0xa1   : > { %v610_v20 = vsub.f32 %v8920_v19, %v8433_v17  ;;  %4763 = vmatprep.subr.bf16.mxu1 %v4762_v15  ;;  %v2003_v27 = vand.u32 4294901760, %v2002_v57  ;;  %v8442_v23 = vand.u32 4294901760, %v8923_v5  ;;  %v8444_v42 = vand.u32 4294901760, %v8924_v1  ;;  %v8925_v17 = vld [vmem:[#allocation96_spill] sm:$0xff] }
  0xa2   : > { %v2008_v35 = vsub.f32 %v8921_v26, %v8436_v45  ;;  %4381 = vmatpush1.bf16.msra.mxu0 %v4380_v3  ;;  %v599_v60 = vand.u32 4294901760, %v598_v28  ;;  %v2020_v14 = vsub.f32 %v8922_v18, %v8438_v21  ;;  %v8445_v8 = vand.u32 4294901760, %v8925_v17 }
  0xa3   : > { %v611_v36 = vand.u32 4294901760, %v610_v20  ;;  %v4764_v19 = vpack.c.bf16 %v2003_v27, %v1991_v38  ;;  %v604_v57 = vsub.f32 %v8923_v5, %v8442_v23  ;;  %v616_v45 = vsub.f32 %v8924_v1, %v8444_v42  ;;  %v8926_v20 = vld [vmem:[#allocation97_spill] sm:$0xff]  ;;  %v8927_v27 = vld [vmem:[#allocation99_spill] sm:$0xff] }
  0xa4   : > { %v2009_v15 = vand.u32 4294901760, %v2008_v35  ;;  %v2021_v3 = vand.u32 4294901760, %v2020_v14  ;;  %v2014_v28 = vsub.f32 %v8925_v17, %v8445_v8  ;;  %v8446_v21 = vand.u32 4294901760, %v8926_v20  ;;  %v8929_v14 = vld [vmem:[#allocation101_spill] sm:$0xff] }
  0xa5   : > { %v4382_v26 = vpack.c.bf16 %v611_v36, %v599_v60  ;;  %4765 = vmatpush1.bf16.msra.mxu1 %v4764_v19  ;;  %v605_v18 = vand.u32 4294901760, %v604_v57  ;;  %v617_v38 = vand.u32 4294901760, %v616_v45  ;;  %v8448_v35 = vand.u32 4294901760, %v8927_v27  ;;  %v8930_v57 = vld [vmem:[#allocation103_spill] sm:$0xff] }
  0xa6   : > { %v8449_v53 = vand.u32 4294901760, %v8928_v9  ;;  %v4766_v23 = vpack.c.bf16 %v2021_v3, %v2009_v15  ;;  %v2015_v5 = vand.u32 4294901760, %v2014_v28  ;;  %v2026_v36 = vsub.f32 %v8926_v20, %v8446_v21  ;;  %v8931_v3 = vld [vmem:[#allocation105_spill] sm:$0xff]  ;;  %v8932_v21 = vld [vmem:[#allocation106_spill] sm:$0xff] }
  0xa7   : > { %4383 = vmatprep.subr.bf16.mxu0 %v4382_v26  ;;  %v8452_v60 = vand.u32 4294901760, %v8929_v14  ;;  %v4384_v42 = vpack.c.bf16 %v617_v38, %v605_v18  ;;  %v622_v19 = vsub.f32 %v8927_v27, %v8448_v35  ;;  %v8454_v8 = vand.u32 4294901760, %v8930_v57  ;;  %v8936_v27 = vld [vmem:[#allocation112_spill] sm:$0xff] }
  0xa8   : > { %v634_v45 = vsub.f32 %v8928_v9, %v8449_v53  ;;  %4767 = vmatprep.subr.bf16.mxu1 %v4766_v23  ;;  %v2027_v26 = vand.u32 4294901760, %v2026_v36  ;;  %v8458_v28 = vand.u32 4294901760, %v8931_v3  ;;  %v8460_v18 = vand.u32 4294901760, %v8932_v21  ;;  %v8933_v53 = vld [vmem:[#allocation108_spill] sm:$0xff] }
  0xa9   : > { %v2032_v15 = vsub.f32 %v8929_v14, %v8452_v60  ;;  %4385 = vmatpush1.bf16.msra.mxu0 %v4384_v42  ;;  %v623_v38 = vand.u32 4294901760, %v622_v19  ;;  %v2044_v35 = vsub.f32 %v8930_v57, %v8454_v8  ;;  %v8461_v17 = vand.u32 4294901760, %v8933_v53 }
  0xaa   : > { %v635_v20 = vand.u32 4294901760, %v634_v45  ;;  %v4768_v9 = vpack.c.bf16 %v2027_v26, %v2015_v5  ;;  %v628_v36 = vsub.f32 %v8931_v3, %v8458_v28  ;;  %v640_v60 = vsub.f32 %v8932_v21, %v8460_v18  ;;  %v8934_v45 = vld [vmem:[#allocation109_spill] sm:$0xff]  ;;  %v8935_v26 = vld [vmem:[#allocation111_spill] sm:$0xff] }
  0xab   : > { %v2033_v23 = vand.u32 4294901760, %v2032_v15  ;;  %v2045_v42 = vand.u32 4294901760, %v2044_v35  ;;  %v2038_v19 = vsub.f32 %v8933_v53, %v8461_v17  ;;  %v8462_v8 = vand.u32 4294901760, %v8934_v45  ;;  %v8937_v35 = vld [vmem:[#allocation113_spill] sm:$0xff] }
  0xac   : > { %v4386_v14 = vpack.c.bf16 %v635_v20, %v623_v38  ;;  %4769 = vmatpush1.bf16.msra.mxu1 %v4768_v9  ;;  %v629_v57 = vand.u32 4294901760, %v628_v36  ;;  %v641_v5 = vand.u32 4294901760, %v640_v60  ;;  %v8464_v15 = vand.u32 4294901760, %v8935_v26  ;;  %v8938_v36 = vld [vmem:[#allocation115_spill] sm:$0xff] }
  0xad   : > { %v8465_v1 = vand.u32 4294901760, %v8936_v27  ;;  %v4770_v28 = vpack.c.bf16 %v2045_v42, %v2033_v23  ;;  %v2039_v3 = vand.u32 4294901760, %v2038_v19  ;;  %v2050_v20 = vsub.f32 %v8934_v45, %v8462_v8  ;;  %v8939_v42 = vld [vmem:[#allocation117_spill] sm:$0xff]  ;;  %v8940_v8 = vld [vmem:[#allocation118_spill] sm:$0xff] }
  0xae   : > { %4387 = vmatprep.subr.bf16.mxu0 %v4386_v14  ;;  %v8468_v38 = vand.u32 4294901760, %v8937_v35  ;;  %v4388_v18 = vpack.c.bf16 %v641_v5, %v629_v57  ;;  %v646_v9 = vsub.f32 %v8935_v26, %v8464_v15  ;;  %v8471_v17 = vand.u32 4294901760, %v8938_v36 }
  0xaf   : > { %v658_v60 = vsub.f32 %v8936_v27, %v8465_v1  ;;  %4771 = vmatprep.subr.bf16.mxu1 %v4770_v28  ;;  %v2051_v14 = vand.u32 4294901760, %v2050_v20  ;;  %v8477_v19 = vand.u32 4294901760, %v8939_v42  ;;  %v8479_v57 = vand.u32 4294901760, %v8940_v8  ;;  %v8941_v1 = vld [vmem:[#allocation120_spill] sm:$0xff] }
  0xb0   : > { %v2056_v23 = vsub.f32 %v8937_v35, %v8468_v38  ;;  %4389 = vmatpush1.bf16.msra.mxu0 %v4388_v18  ;;  %v647_v5 = vand.u32 4294901760, %v646_v9  ;;  %v2068_v15 = vsub.f32 %v8938_v36, %v8471_v17  ;;  %v8480_v53 = vand.u32 4294901760, %v8941_v1 }
  0xb1   : > { %v659_v45 = vand.u32 4294901760, %v658_v60  ;;  %v4772_v21 = vpack.c.bf16 %v2051_v14, %v2039_v3  ;;  %v652_v20 = vsub.f32 %v8939_v42, %v8477_v19  ;;  %v664_v38 = vsub.f32 %v8940_v8, %v8479_v57  ;;  %v8942_v60 = vld [vmem:[#allocation121_spill] sm:$0xff]  ;;  %v8943_v14 = vld [vmem:[#allocation123_spill] sm:$0xff] }
  0xb2   : > { %v2057_v28 = vand.u32 4294901760, %v2056_v23  ;;  %v2069_v18 = vand.u32 4294901760, %v2068_v15  ;;  %v2062_v9 = vsub.f32 %v8941_v1, %v8480_v53  ;;  %v8481_v17 = vand.u32 4294901760, %v8942_v60  ;;  %v8945_v15 = vld [vmem:[#allocation125_spill] sm:$0xff]  ;;  %v8952_v1 = vld [vmem:[#allocation136_spill] sm:$0xff] }
  0xb3   : > { %v4390_v30 = vpack.c.bf16 %v659_v45, %v647_v5  ;;  %4773 = vmatpush1.bf16.msra.mxu1 %v4772_v21  ;;  %v653_v55 = vand.u32 4294901760, %v652_v20  ;;  %v665_v3 = vand.u32 4294901760, %v664_v38  ;;  %v8483_v23 = vand.u32 4294901760, %v8943_v14  ;;  %v8946_v20 = vld [vmem:[#allocation127_spill] sm:$0xff] }
  0xb4   : > { %v8484_v36 = vand.u32 4294901760, %v8944_v32  ;;  %v4774_v19 = vpack.c.bf16 %v2069_v18, %v2057_v28  ;;  %v2063_v42 = vand.u32 4294901760, %v2062_v9  ;;  %v2074_v45 = vsub.f32 %v8942_v60, %v8481_v17  ;;  %v8947_v18 = vld [vmem:[#allocation129_spill] sm:$0xff]  ;;  %v8948_v17 = vld [vmem:[#allocation130_spill] sm:$0xff] }
  0xb5   : > { %4391 = vmatprep.subr.bf16.mxu0 %v4390_v30  ;;  %v8487_v5 = vand.u32 4294901760, %v8945_v15  ;;  %v4392_v57 = vpack.c.bf16 %v665_v3, %v653_v55  ;;  %v670_v21 = vsub.f32 %v8943_v14, %v8483_v23  ;;  %v8489_v53 = vand.u32 4294901760, %v8946_v20 }
  0xb6   : > { %v682_v38 = vsub.f32 %v8944_v32, %v8484_v36  ;;  %4775 = vmatprep.subr.bf16.mxu1 %v4774_v19  ;;  %v2075_v30 = vand.u32 4294901760, %v2074_v45  ;;  %v8493_v9 = vand.u32 4294901760, %v8947_v18  ;;  %v8495_v55 = vand.u32 4294901760, %v8948_v17  ;;  %v8949_v36 = vld [vmem:[#allocation132_spill] sm:$0xff] }
  0xb7   : > { %v2080_v28 = vsub.f32 %v8945_v15, %v8487_v5  ;;  %4393 = vmatpush1.bf16.msra.mxu0 %v4392_v57  ;;  %v671_v3 = vand.u32 4294901760, %v670_v21  ;;  %v2092_v23 = vsub.f32 %v8946_v20, %v8489_v53  ;;  %v8496_v32 = vand.u32 4294901760, %v8949_v36 }
  0xb8   : > { %v683_v60 = vand.u32 4294901760, %v682_v38  ;;  %v4776_v14 = vpack.c.bf16 %v2075_v30, %v2063_v42  ;;  %v676_v45 = vsub.f32 %v8947_v18, %v8493_v9  ;;  %v688_v5 = vsub.f32 %v8948_v17, %v8495_v55  ;;  %v8950_v38 = vld [vmem:[#allocation133_spill] sm:$0xff]  ;;  %v8951_v30 = vld [vmem:[#allocation135_spill] sm:$0xff] }
  0xb9   : > { %v2081_v19 = vand.u32 4294901760, %v2080_v28  ;;  %v2093_v57 = vand.u32 4294901760, %v2092_v23  ;;  %v2086_v21 = vsub.f32 %v8949_v36, %v8496_v32  ;;  %v8497_v53 = vand.u32 4294901760, %v8950_v38  ;;  %v8953_v23 = vld [vmem:[#allocation137_spill] sm:$0xff]  ;;  %v8960_v36 = vld [vmem:[#allocation148_spill] sm:$0xff] }
  0xba   : > { %v4394_v15 = vpack.c.bf16 %v683_v60, %v671_v3  ;;  %4777 = vmatpush1.bf16.msra.mxu1 %v4776_v14  ;;  %v677_v20 = vand.u32 4294901760, %v676_v45  ;;  %v689_v42 = vand.u32 4294901760, %v688_v5  ;;  %v8499_v28 = vand.u32 4294901760, %v8951_v30  ;;  %v8954_v45 = vld [vmem:[#allocation139_spill] sm:$0xff] }
  0xbb   : > { %v8500_v8 = vand.u32 4294901760, %v8952_v1  ;;  %v4778_v9 = vpack.c.bf16 %v2093_v57, %v2081_v19  ;;  %v2087_v18 = vand.u32 4294901760, %v2086_v21  ;;  %v2098_v60 = vsub.f32 %v8950_v38, %v8497_v53  ;;  %v8955_v57 = vld [vmem:[#allocation141_spill] sm:$0xff]  ;;  %v8956_v53 = vld [vmem:[#allocation142_spill] sm:$0xff] }
  0xbc   : > { %4395 = vmatprep.subr.bf16.mxu0 %v4394_v15  ;;  %v8503_v3 = vand.u32 4294901760, %v8953_v23  ;;  %v4396_v55 = vpack.c.bf16 %v689_v42, %v677_v20  ;;  %v694_v14 = vsub.f32 %v8951_v30, %v8499_v28  ;;  %v8505_v32 = vand.u32 4294901760, %v8954_v45 }
  0xbd   : > { %v706_v5 = vsub.f32 %v8952_v1, %v8500_v8  ;;  %4779 = vmatprep.subr.bf16.mxu1 %v4778_v9  ;;  %v2099_v15 = vand.u32 4294901760, %v2098_v60  ;;  %v8509_v21 = vand.u32 4294901760, %v8955_v57  ;;  %v8511_v20 = vand.u32 4294901760, %v8956_v53  ;;  %v8957_v8 = vld [vmem:[#allocation144_spill] sm:$0xff] }
  0xbe   : > { %v2104_v19 = vsub.f32 %v8953_v23, %v8503_v3  ;;  %4397 = vmatpush1.bf16.msra.mxu0 %v4396_v55  ;;  %v695_v42 = vand.u32 4294901760, %v694_v14  ;;  %v2116_v28 = vsub.f32 %v8954_v45, %v8505_v32  ;;  %v8512_v1 = vand.u32 4294901760, %v8957_v8 }
  0xbf   : > { %v707_v38 = vand.u32 4294901760, %v706_v5  ;;  %v4780_v30 = vpack.c.bf16 %v2099_v15, %v2087_v18  ;;  %v700_v60 = vsub.f32 %v8955_v57, %v8509_v21  ;;  %v712_v3 = vsub.f32 %v8956_v53, %v8511_v20  ;;  %v8958_v5 = vld [vmem:[#allocation145_spill] sm:$0xff]  ;;  %v8959_v15 = vld [vmem:[#allocation147_spill] sm:$0xff] }
  0xc0   : > { %v2105_v9 = vand.u32 4294901760, %v2104_v19  ;;  %v2117_v55 = vand.u32 4294901760, %v2116_v28  ;;  %v2110_v14 = vsub.f32 %v8957_v8, %v8512_v1  ;;  %v8513_v32 = vand.u32 4294901760, %v8958_v5  ;;  %v8961_v28 = vld [vmem:[#allocation149_spill] sm:$0xff]  ;;  %v8968_v8 = vld [vmem:[#allocation160_spill] sm:$0xff] }
  0xc1   : > { %v4398_v23 = vpack.c.bf16 %v707_v38, %v695_v42  ;;  %4781 = vmatpush1.bf16.msra.mxu1 %v4780_v30  ;;  %v701_v45 = vand.u32 4294901760, %v700_v60  ;;  %v713_v18 = vand.u32 4294901760, %v712_v3  ;;  %v8515_v19 = vand.u32 4294901760, %v8959_v15  ;;  %v8962_v60 = vld [vmem:[#allocation151_spill] sm:$0xff] }
  0xc2   : > { %v8516_v17 = vand.u32 4294901760, %v8960_v36  ;;  %v4782_v21 = vpack.c.bf16 %v2117_v55, %v2105_v9  ;;  %v2111_v57 = vand.u32 4294901760, %v2110_v14  ;;  %v2122_v38 = vsub.f32 %v8958_v5, %v8513_v32  ;;  %v8963_v55 = vld [vmem:[#allocation153_spill] sm:$0xff]  ;;  %v8964_v32 = vld [vmem:[#allocation154_spill] sm:$0xff] }
  0xc3   : > { %4399 = vmatprep.subr.bf16.mxu0 %v4398_v23  ;;  %v8519_v42 = vand.u32 4294901760, %v8961_v28  ;;  %v4400_v20 = vpack.c.bf16 %v713_v18, %v701_v45  ;;  %v718_v30 = vsub.f32 %v8959_v15, %v8515_v19  ;;  %v8521_v1 = vand.u32 4294901760, %v8962_v60 }
  0xc4   : > { %v730_v3 = vsub.f32 %v8960_v36, %v8516_v17  ;;  %4783 = vmatprep.subr.bf16.mxu1 %v4782_v21  ;;  %v2123_v23 = vand.u32 4294901760, %v2122_v38  ;;  %v8525_v14 = vand.u32 4294901760, %v8963_v55  ;;  %v8527_v45 = vand.u32 4294901760, %v8964_v32  ;;  %v8965_v17 = vld [vmem:[#allocation156_spill] sm:$0xff] }
  0xc5   : > { %v2128_v9 = vsub.f32 %v8961_v28, %v8519_v42  ;;  %4401 = vmatpush1.bf16.msra.mxu0 %v4400_v20  ;;  %v719_v18 = vand.u32 4294901760, %v718_v30  ;;  %v2140_v19 = vsub.f32 %v8962_v60, %v8521_v1  ;;  %v8528_v36 = vand.u32 4294901760, %v8965_v17 }
  0xc6   : > { %v731_v5 = vand.u32 4294901760, %v730_v3  ;;  %v4784_v15 = vpack.c.bf16 %v2123_v23, %v2111_v57  ;;  %v724_v38 = vsub.f32 %v8963_v55, %v8525_v14  ;;  %v736_v42 = vsub.f32 %v8964_v32, %v8527_v45  ;;  %v8966_v3 = vld [vmem:[#allocation157_spill] sm:$0xff]  ;;  %v8967_v23 = vld [vmem:[#allocation159_spill] sm:$0xff] }
  0xc7   : > { %v2129_v21 = vand.u32 4294901760, %v2128_v9  ;;  %v2141_v20 = vand.u32 4294901760, %v2140_v19  ;;  %v2134_v30 = vsub.f32 %v8965_v17, %v8528_v36  ;;  %v8529_v1 = vand.u32 4294901760, %v8966_v3  ;;  %v8969_v19 = vld [vmem:[#allocation161_spill] sm:$0xff]  ;;  %v8976_v17 = vld [vmem:[#allocation172_spill] sm:$0xff] }
  0xc8   : > { %v4402_v28 = vpack.c.bf16 %v731_v5, %v719_v18  ;;  %4785 = vmatpush1.bf16.msra.mxu1 %v4784_v15  ;;  %v725_v60 = vand.u32 4294901760, %v724_v38  ;;  %v737_v57 = vand.u32 4294901760, %v736_v42  ;;  %v8531_v9 = vand.u32 4294901760, %v8967_v23  ;;  %v8970_v38 = vld [vmem:[#allocation163_spill] sm:$0xff] }
  0xc9   : > { %v8532_v53 = vand.u32 4294901760, %v8968_v8  ;;  %v4786_v14 = vpack.c.bf16 %v2141_v20, %v2129_v21  ;;  %v2135_v55 = vand.u32 4294901760, %v2134_v30  ;;  %v2146_v5 = vsub.f32 %v8966_v3, %v8529_v1  ;;  %v8971_v20 = vld [vmem:[#allocation165_spill] sm:$0xff]  ;;  %v8972_v1 = vld [vmem:[#allocation166_spill] sm:$0xff] }
  0xca   : > { %4403 = vmatprep.subr.bf16.mxu0 %v4402_v28  ;;  %v8535_v18 = vand.u32 4294901760, %v8969_v19  ;;  %v4404_v45 = vpack.c.bf16 %v737_v57, %v725_v60  ;;  %v742_v15 = vsub.f32 %v8967_v23, %v8531_v9  ;;  %v8537_v36 = vand.u32 4294901760, %v8970_v38 }
  0xcb   : > { %v754_v42 = vsub.f32 %v8968_v8, %v8532_v53  ;;  %4787 = vmatprep.subr.bf16.mxu1 %v4786_v14  ;;  %v2147_v28 = vand.u32 4294901760, %v2146_v5  ;;  %v8541_v30 = vand.u32 4294901760, %v8971_v20  ;;  %v8545_v60 = vand.u32 4294901760, %v8972_v1  ;;  %v8973_v53 = vld [vmem:[#allocation168_spill] sm:$0xff] }
  0xcc   : > { %v2152_v21 = vsub.f32 %v8969_v19, %v8535_v18  ;;  %4405 = vmatpush1.bf16.msra.mxu0 %v4404_v45  ;;  %v743_v57 = vand.u32 4294901760, %v742_v15  ;;  %v2164_v9 = vsub.f32 %v8970_v38, %v8537_v36  ;;  %v8543_v8 = vand.u32 4294901760, %v8973_v53 }
  0xcd   : > { %v755_v3 = vand.u32 4294901760, %v754_v42  ;;  %v4788_v23 = vpack.c.bf16 %v2147_v28, %v2135_v55  ;;  %v748_v5 = vsub.f32 %v8971_v20, %v8541_v30  ;;  %v760_v18 = vsub.f32 %v8972_v1, %v8545_v60  ;;  %v8974_v42 = vld [vmem:[#allocation169_spill] sm:$0xff]  ;;  %v8975_v28 = vld [vmem:[#allocation171_spill] sm:$0xff] }
  0xce   : > { %v2153_v14 = vand.u32 4294901760, %v2152_v21  ;;  %v2165_v45 = vand.u32 4294901760, %v2164_v9  ;;  %v2158_v15 = vsub.f32 %v8973_v53, %v8543_v8  ;;  %v8544_v36 = vand.u32 4294901760, %v8974_v42  ;;  %v8977_v9 = vld [vmem:[#allocation173_spill] sm:$0xff] }
  0xcf   : > { %v4406_v19 = vpack.c.bf16 %v755_v3, %v743_v57  ;;  %4789 = vmatpush1.bf16.msra.mxu1 %v4788_v23  ;;  %v749_v38 = vand.u32 4294901760, %v748_v5  ;;  %v761_v55 = vand.u32 4294901760, %v760_v18  ;;  %v8546_v21 = vand.u32 4294901760, %v8975_v28  ;;  %v8978_v5 = vld [vmem:[#allocation175_spill] sm:$0xff] }
  0xd0   : > { %v8547_v32 = vand.u32 4294901760, %v8976_v17  ;;  %v4790_v30 = vpack.c.bf16 %v2165_v45, %v2153_v14  ;;  %v2159_v20 = vand.u32 4294901760, %v2158_v15  ;;  %v2170_v3 = vsub.f32 %v8974_v42, %v8544_v36  ;;  %v8979_v15 = vld [vmem:[#allocation177_spill] sm:$0xff] }
  0xd1   : > { %4407 = vmatprep.subr.bf16.mxu0 %v4406_v19  ;;  %v8550_v57 = vand.u32 4294901760, %v8977_v9  ;;  %v4408_v8 = vpack.c.bf16 %v761_v55, %v749_v38  ;;  %v766_v23 = vsub.f32 %v8975_v28, %v8546_v21  ;;  %v8551_v19 = vand.u32 4294901760, %v8978_v5 }
  0xd2   : > { %v778_v18 = vsub.f32 %v8976_v17, %v8547_v32  ;;  %4791 = vmatprep.subr.bf16.mxu1 %v4790_v30  ;;  %v2171_v14 = vand.u32 4294901760, %v2170_v3  ;;  %v8556_v36 = vand.u32 4294901760, %v8979_v15  ;;  %v8560_v38 = vand.u32 4294901760, %v6151_v22  ;;  %v8980_v32 = vld [vmem:[#allocation180_spill] sm:$0xff]  ;;  %v201_v30 = vld [vmem:[%s6123_s25 + $0x18] sm:$0xff] }
  0xd3   : > { %v2176_v45 = vsub.f32 %v8977_v9, %v8550_v57  ;;  %4409 = vmatpush1.bf16.msra.mxu0 %v4408_v8  ;;  %v767_v55 = vand.u32 4294901760, %v766_v23  ;;  %v2188_v21 = vsub.f32 %v8978_v5, %v8551_v19  ;;  %v8559_v17 = vand.u32 4294901760, %v8980_v32  ;;  %v8981_v5 = vld [vmem:[#allocation181_spill] sm:$0xff] }
  0xd4   : > { %v779_v60 = vand.u32 4294901760, %v778_v18  ;;  %v4792_v3 = vpack.c.bf16 %v2171_v14, %v2159_v20  ;;  %v772_v57 = vsub.f32 %v8979_v15, %v8556_v36  ;;  %v784_v8 = vsub.f32 %v6151_v22, %v8560_v38  ;;  %v200_v36 = vld [vmem:[%s6123_s25 + $0x10] sm:$0xff] }
  0xd5   : > { %v2177_v28 = vand.u32 4294901760, %v2176_v45  ;;  %v2189_v18 = vand.u32 4294901760, %v2188_v21  ;;  %v2182_v19 = vsub.f32 %v8980_v32, %v8559_v17  ;;  %v8561_v9 = vand.u32 4294901760, %v8981_v5  ;;  %v8983_v45 = vld [vmem:[#allocation183_spill] sm:$0xff]  ;;  %v8984_v21 = vld [vmem:[#allocation184_spill] sm:$0xff] }
  0xd6   : > { %v4410_v23 = vpack.c.bf16 %v779_v60, %v767_v55  ;;  %4793 = vmatpush1.bf16.msra.mxu1 %v4792_v3  ;;  %v773_v42 = vand.u32 4294901760, %v772_v57  ;;  %v785_v20 = vand.u32 4294901760, %v784_v8  ;;  %v6693_v14 = vand.u32 4294901760, %v201_v30 }
  0xd7   : > { %v8563_v53 = vand.u32 4294901760, %v8983_v45  ;;  %v4794_v15 = vpack.c.bf16 %v2189_v18, %v2177_v28  ;;  %v2183_v1 = vand.u32 4294901760, %v2182_v19  ;;  %v2194_v60 = vsub.f32 %v8981_v5, %v8561_v9 }
  0xd8   : > { %8982 = vst [vmem:[#allocation111_spill] sm:$0xff] %v6693_v14  ;;  %4411 = vmatprep.subr.bf16.mxu0 %v4410_v23  ;;  %v8562_v55 = vand.u32 4294901760, %v8984_v21  ;;  %v4412_v17 = vpack.c.bf16 %v785_v20, %v773_v42  ;;  %v6702_v38 = vsub.f32 %v201_v30, %v6693_v14  ;;  %v8564_v3 = vand.u32 4294901760, %v6173_v11 }
  0xd9   : > { %v790_v57 = vsub.f32 %v8983_v45, %v8563_v53  ;;  %4795 = vmatprep.subr.bf16.mxu1 %v4794_v15  ;;  %v2195_v8 = vand.u32 4294901760, %v2194_v60  ;;  %v8565_v19 = vand.u32 4294901760, %v6180_v54  ;;  %v6712_v23 = vand.u32 4294901760, %v200_v36 }
  0xda   : > { %8985 = vst [vmem:[#allocation112_spill] sm:$0xff] %v6702_v38  ;;  %v802_v28 = vsub.f32 %v8984_v21, %v8562_v55  ;;  %4413 = vmatpush1.bf16.msra.mxu0 %v4412_v17  ;;  %v6715_v42 = vand.u32 4294901760, %v6702_v38  ;;  %v2200_v18 = vsub.f32 %v6173_v11, %v8564_v3  ;;  %v8570_v15 = vand.u32 4294901760, %v6184_v2 }
  0xdb   : > { %8986 = vst [vmem:[#allocation113_spill] sm:$0xff] %v6712_v23  ;;  %v791_v30 = vand.u32 4294901760, %v790_v57  ;;  %v4796_v20 = vpack.c.bf16 %v2195_v8, %v2183_v1  ;;  %v2212_v9 = vsub.f32 %v6180_v54, %v8565_v19  ;;  %v6725_v55 = vsub.f32 %v200_v36, %v6712_v23 }
  0xdc   : > { %8987 = vst [vmem:[#allocation200_spill] sm:$0xff] %v6715_v42  ;;  %v803_v60 = vand.u32 4294901760, %v802_v28  ;;  %v413_v17 = vsub.f32 %v6702_v38, %v6715_v42  ;;  %v2201_v53 = vand.u32 4294901760, %v2200_v18  ;;  %v796_v57 = vsub.f32 %v6184_v2, %v8570_v15  ;;  %v8994_v38 = vld [vmem:[#allocation10_spill] sm:$0xff] }
  0xdd   : > { %8988 = vst [vmem:[#allocation201_spill] sm:$0xff] %v6725_v55  ;;  %v8571_v3 = vand.u32 4294901760, %v6187_v49  ;;  %4797 = vmatpush1.bf16.msra.mxu1 %v4796_v20  ;;  %v2213_v8 = vand.u32 4294901760, %v2212_v9  ;;  %v6734_v28 = vand.u32 4294901760, %v6725_v55  ;;  %v8576_v19 = vand.u32 4294901760, %v6191_v24 }
  0xde   : > { %v4414_v1 = vpack.c.bf16 %v803_v60, %v791_v30  ;;  %v414_v36 = vand.u32 4294901760, %v413_v17  ;;  %v797_v23 = vand.u32 4294901760, %v796_v57  ;;  %v8579_v42 = vand.u32 4294901760, %v6193_v47 }
  0xdf   : > { %8989 = vst [vmem:[#allocation202_spill] sm:$0xff] %v6734_v28  ;;  %v808_v18 = vsub.f32 %v6187_v49, %v8571_v3  ;;  %v4798_v15 = vpack.c.bf16 %v2213_v8, %v2201_v53  ;;  %v419_v20 = vsub.f32 %v6725_v55, %v6734_v28  ;;  %v2206_v9 = vsub.f32 %v6191_v24, %v8576_v19  ;;  %v8991_v28 = vld [vmem:[#allocation5_spill] sm:$0xff]  ;;  %v8992_v55 = vld [vmem:[#allocation7_spill] sm:$0xff]  ;;  %v9059_v49 = vld [vmem:[#allocation82_spill] sm:$0xff] }
  0xe0   : > { %4415 = vmatprep.subr.bf16.mxu0 %v4414_v1  ;;  %415 = vmatprep.mubr.f32.mxu0 %v414_v36  ;;  %v2218_v60 = vsub.f32 %v6193_v47, %v8579_v42  ;;  %v8990_v1 = vld [vmem:[#allocation4_spill] sm:$0xff]  ;;  %v4802_v19 = vpack.c.bf16 %v8992_v55, %v8991_v28  ;;  %v4420_v42 = vpack.c.bf16 %v8994_v38, %v5393_v25  ;;  %v9028_v28 = vld [vmem:[#allocation163_spill] sm:$0xff] }
  0xe1   : > { %1825 = vmatprep.mubr.f32.mxu1 %v414_v36  ;;  %v809_v30 = vand.u32 4294901760, %v808_v18  ;;  %4799 = vmatprep.subr.bf16.mxu1 %v4798_v15  ;;  %v420_v17 = vand.u32 4294901760, %v419_v20  ;;  %v2207_v57 = vand.u32 4294901760, %v2206_v9  ;;  %v4418_v53 = vpack.c.bf16 %v8990_v1, %v5372_v16  ;;  %v8993_v18 = vld [vmem:[#allocation186_spill] sm:$0xff]  ;;  %v8995_v20 = vld [vmem:[#allocation196_spill] sm:$0xff]  ;;  %v9029_v1 = vld [vmem:[#allocation165_spill] sm:$0xff] }
  0xe2   : > { %v2219_v3 = vand.u32 4294901760, %v2218_v60  ;;  %v4422_v15 = vpack.c.bf16 %v5431_v46, %v5418_v41  ;;  %v4424_v9 = vpack.c.bf16 %v5455_v61, %v5443_v52  ;;  %v4426_v60 = vpack.c.bf16 %v5486_v10, %v5474_v6  ;;  %v9013_v10 = vld [vmem:[#allocation141_spill] sm:$0xff]  ;;  %v9014_v6 = vld [vmem:[#allocation142_spill] sm:$0xff]  ;;  %v9026_v25 = vld [vmem:[#allocation160_spill] sm:$0xff] }
  0xe3   : > { %v4416_v8 = vpack.c.bf16 %v809_v30, %v797_v23  ;;  %421 = vmatmul.mubr.f32.gmra.mrb[2].mxu0 %v420_v17  ;;  %1831 = vmatmul.mubr.f32.gmra.mrb[2].mxu1 %v420_v17  ;;  %v4804_v23 = vpack.c.bf16 %v5416_v40, %v5414_v39  ;;  %v4808_v30 = vpack.c.bf16 %v5470_v4, %v5457_v62  ;;  %v9012_v62 = vld [vmem:[#allocation139_spill] sm:$0xff]  ;;  %v9022_v46 = vld [vmem:[#allocation154_spill] sm:$0xff]  ;;  %v9024_v41 = vld [vmem:[#allocation157_spill] sm:$0xff] }
  0xe4   : > { %v4800_v36 = vpack.c.bf16 %v2219_v3, %v2207_v57  ;;  %812 = vmatprep.mubr.f32.mxu0 %v8993_v18  ;;  %2222 = vmatprep.mubr.f32.mxu1 %v8993_v18  ;;  %v4806_v3 = vpack.c.bf16 %v5441_v50, %v5435_v48  ;;  %v4428_v17 = vpack.c.bf16 %v5504_v34, %v5502_v33  ;;  %v9006_v34 = vld [vmem:[#allocation130_spill] sm:$0xff]  ;;  %v9008_v33 = vld [vmem:[#allocation133_spill] sm:$0xff]  ;;  %v9018_v50 = vld [vmem:[#allocation148_spill] sm:$0xff] }
  0xe5   : > { %4417 = vmatpush1.bf16.msra.mxu0 %v4416_v8  ;;  %v4430_v57 = vpack.c.bf16 %v5536_v56, %v5523_v51  ;;  %v4432_v8 = vpack.c.bf16 %v5562_v29, %v5549_v7  ;;  %v8998_v56 = vld [vmem:[#allocation118_spill] sm:$0xff]  ;;  %v9001_v29 = vld [vmem:[#allocation123_spill] sm:$0xff]  ;;  %v9002_v7 = vld [vmem:[#allocation124_spill] sm:$0xff] }
  0xe6   : > { %4419 = vmatprep.subr.bf16.mxu0 %v4418_v53  ;;  %4801 = vmatpush1.bf16.msra.mxu1 %v4800_v36  ;;  %v4814_v53 = vpack.c.bf16 %v5543_v63, %v5540_v58  ;;  %v4816_v36 = vpack.c.bf16 %v5577_v59, %v5566_v31  ;;  %v9000_v58 = vld [vmem:[#allocation121_spill] sm:$0xff]  ;;  %v9004_v31 = vld [vmem:[#allocation127_spill] sm:$0xff]  ;;  %v9030_v16 = vld [vmem:[#allocation166_spill] sm:$0xff] }
  0xe7   : > { %4803 = vmatprep.subr.bf16.mxu1 %v4802_v19  ;;  %v4810_v19 = vpack.c.bf16 %v5492_v13, %v5490_v12  ;;  %v9003_v59 = vld [vmem:[#allocation125_spill] sm:$0xff]  ;;  %v9010_v12 = vld [vmem:[#allocation136_spill] sm:$0xff]  ;;  %v9025_v51 = vld [vmem:[#allocation159_spill] sm:$0xff] }
  0xe8   : > { %814 = vmatmul.mubr.f32.vlgmr.msra.gmra.mrb[0].mxu0 %v8995_v20  ;;  %v9011_v63 = vld [vmem:[#allocation137_spill] sm:$0xff]  ;;  %v9033_v13 = vld [vmem:[#allocation171_spill] sm:$0xff]  ;;  %v9042_v48 = vld [vmem:[#allocation58_spill] sm:$0xff] }
  0xe9   : > { %4421 = vmatpush1.bf16.msra.mxu0 %v4420_v42  ;;  %2224 = vmatmul.mubr.f32.vlgmr.msra.gmra.mrb[0].mxu1 %v8995_v20  ;;  %v4812_v42 = vpack.c.bf16 %v5519_v44, %v5517_v43  ;;  %v8996_v20 = vld [vmem:[#allocation115_spill] sm:$0xff]  ;;  %v8997_v43 = vld [vmem:[#allocation117_spill] sm:$0xff]  ;;  %v9053_v47 = vld [vmem:[#allocation76_spill] sm:$0xff] }
  0xea   : > { %4423 = vmatprep.subr.bf16.mxu0 %v4422_v15  ;;  %4805 = vmatpush1.bf16.msra.mxu1 %v4804_v23  ;;  %v4434_v15 = vpack.c.bf16 %v5583_v37, %v5581_v0  ;;  %v9005_v0 = vld [vmem:[#allocation129_spill] sm:$0xff]  ;;  %v9009_v44 = vld [vmem:[#allocation135_spill] sm:$0xff]  ;;  %v9034_v23 = vld [vmem:[#allocation172_spill] sm:$0xff] }
  0xeb   : > { %4807 = vmatprep.subr.bf16.mxu1 %v4806_v3  ;;  %v8999_v3 = vld [vmem:[#allocation120_spill] sm:$0xff]  ;;  %v9017_v37 = vld [vmem:[#allocation147_spill] sm:$0xff]  ;;  %v9027_v18 = vld [vmem:[#allocation161_spill] sm:$0xff]  ;;  %820 = vmatprep.mubr.f32.mxu0 %v6693_v14 }
  0xec   : > { %v9035_v4 = vld [vmem:[#allocation173_spill] sm:$0xff]  ;;  %v9036_v39 = vld [vmem:[#allocation175_spill] sm:$0xff]  ;;  %2230 = vmatprep.mubr.f32.mxu1 %v6693_v14  ;;  %v9044_v14 = vld [vmem:[#allocation64_spill] sm:$0xff] }
  0xed   : > { %4425 = vmatpush1.bf16.msra.mxu0 %v4424_v9  ;;  %v9007_v9 = vld [vmem:[#allocation132_spill] sm:$0xff]  ;;  %v9038_v61 = vld [vmem:[#allocation53_spill] sm:$0xff]  ;;  %v9039_v55 = vld [vmem:[#allocation55_spill] sm:$0xff] }
  0xee   : > { %4427 = vmatprep.subr.bf16.mxu0 %v4426_v60  ;;  %4809 = vmatpush1.bf16.msra.mxu1 %v4808_v30  ;;  %v9032_v60 = vld [vmem:[#allocation169_spill] sm:$0xff]  ;;  %v4818_v40 = vpack.c.bf16 %v9039_v55, %v9038_v61  ;;  %v9045_v38 = vld [vmem:[#allocation195_spill] sm:$0xff] }
  0xef   : > { %4811 = vmatprep.subr.bf16.mxu1 %v4810_v19  ;;  %v9031_v19 = vld [vmem:[#allocation168_spill] sm:$0xff]  ;;  %v9037_v30 = vld [vmem:[#allocation177_spill] sm:$0xff] }
  0xf0   : > { %v9040_v52 = vld [vmem:[#allocation113_spill] sm:$0xff] }
  0xf1   : > { %4429 = vmatpush1.bf16.msra.mxu0 %v4428_v17  ;;  %v9041_v17 = vld [vmem:[#allocation57_spill] sm:$0xff]  ;;  %2232 = vmatmul.mubr.f32.gmra.mrb[2].mxu1 %v9040_v52 }
  0xf2   : > { %4431 = vmatprep.subr.bf16.mxu0 %v4430_v57  ;;  %4813 = vmatpush1.bf16.msra.mxu1 %v4812_v42  ;;  %v4436_v32 = vpack.c.bf16 %v9042_v48, %v9041_v17  ;;  %v9043_v57 = vld [vmem:[#allocation63_spill] sm:$0xff]  ;;  %v9047_v55 = vld [vmem:[#allocation61_spill] sm:$0xff]  ;;  %v9051_v17 = vld [vmem:[#allocation70_spill] sm:$0xff] }
  0xf3   : > { %4815 = vmatprep.subr.bf16.mxu1 %v4814_v53  ;;  %822 = vmatmul.mubr.f32.gmra.mrb[2].mxu0 %v9040_v52  ;;  %v4438_v11 = vpack.c.bf16 %v9044_v14, %v9043_v57  ;;  %v9046_v53 = vld [vmem:[#allocation60_spill] sm:$0xff]  ;;  %v9048_v42 = vld [vmem:[#allocation65_spill] sm:$0xff] }
  0xf4   : > { %1022 = vmatprep.mubr.f32.mxu0 %v9045_v38  ;;  %v4820_v61 = vpack.c.bf16 %v9047_v55, %v9046_v53  ;;  %2432 = vmatprep.mubr.f32.mxu1 %v9045_v38  ;;  %v9050_v48 = vld [vmem:[#allocation69_spill] sm:$0xff]  ;;  %v9054_v57 = vld [vmem:[#allocation72_spill] sm:$0xff]  ;;  %v9057_v53 = vld [vmem:[#allocation79_spill] sm:$0xff] }
  0xf5   : > { %4433 = vmatpush1.bf16.msra.mxu0 %v4432_v8  ;;  %v9049_v8 = vld [vmem:[#allocation67_spill] sm:$0xff]  ;;  %v4440_v52 = vpack.c.bf16 %v9051_v17, %v9050_v48  ;;  %v9056_v55 = vld [vmem:[#allocation77_spill] sm:$0xff] }
  0xf6   : > { %4435 = vmatprep.subr.bf16.mxu0 %v4434_v15  ;;  %4817 = vmatpush1.bf16.msra.mxu1 %v4816_v36  ;;  %v4822_v24 = vpack.c.bf16 %v9049_v8, %v9048_v42  ;;  %v9052_v15 = vld [vmem:[#allocation75_spill] sm:$0xff]  ;;  %v9055_v36 = vld [vmem:[#allocation73_spill] sm:$0xff]  ;;  %v4826_v38 = vpack.c.bf16 %v9057_v53, %v9056_v55  ;;  %v9061_v42 = vld [vmem:[#allocation88_spill] sm:$0xff] }
  0xf7   : > { %4819 = vmatprep.subr.bf16.mxu1 %v4818_v40  ;;  %v4442_v14 = vpack.c.bf16 %v9053_v47, %v9052_v15  ;;  %v4824_v2 = vpack.c.bf16 %v9055_v36, %v9054_v57  ;;  %v9058_v40 = vld [vmem:[#allocation81_spill] sm:$0xff]  ;;  %v9065_v15 = vld [vmem:[#allocation91_spill] sm:$0xff]  ;;  %v9067_v57 = vld [vmem:[#allocation94_spill] sm:$0xff] }
  0xf8   : > { %v4444_v8 = vpack.c.bf16 %v9059_v49, %v9058_v40  ;;  %v9063_v48 = vld [vmem:[#allocation85_spill] sm:$0xff]  ;;  %v9069_v55 = vld [vmem:[#allocation100_spill] sm:$0xff] }
  0xf9   : > { %4437 = vmatpush1.bf16.msra.mxu0 %v4436_v32  ;;  %v9060_v32 = vld [vmem:[#allocation87_spill] sm:$0xff]  ;;  %v9071_v40 = vld [vmem:[#allocation97_spill] sm:$0xff] }
  0xfa   : > { %4439 = vmatprep.subr.bf16.mxu0 %v4438_v11  ;;  %4821 = vmatpush1.bf16.msra.mxu1 %v4820_v61  ;;  %v4446_v17 = vpack.c.bf16 %v9061_v42, %v9060_v32  ;;  %v9062_v11 = vld [vmem:[#allocation84_spill] sm:$0xff]  ;;  %v9064_v61 = vld [vmem:[#allocation89_spill] sm:$0xff]  ;;  %v9073_v32 = vld [vmem:[#allocation103_spill] sm:$0xff] }
  0xfb   : > { %4823 = vmatprep.subr.bf16.mxu1 %v4822_v24  ;;  %v4828_v47 = vpack.c.bf16 %v9063_v48, %v9062_v11  ;;  %v4830_v36 = vpack.c.bf16 %v9065_v15, %v9064_v61  ;;  %v9066_v24 = vld [vmem:[#allocation93_spill] sm:$0xff]  ;;  %v9075_v11 = vld [vmem:[#allocation106_spill] sm:$0xff] }
  0xfc   : > { %v4448_v53 = vpack.c.bf16 %v9067_v57, %v9066_v24  ;;  %v9077_v57 = vld [vmem:[#allocation109_spill] sm:$0xff] }
  0xfd   : > { %4441 = vmatpush1.bf16.msra.mxu0 %v4440_v52  ;;  %v9068_v52 = vld [vmem:[#allocation99_spill] sm:$0xff] }
  0xfe   : > { %4443 = vmatprep.subr.bf16.mxu0 %v4442_v14  ;;  %4825 = vmatpush1.bf16.msra.mxu1 %v4824_v2  ;;  %v4450_v49 = vpack.c.bf16 %v9069_v55, %v9068_v52  ;;  %v9070_v14 = vld [vmem:[#allocation96_spill] sm:$0xff]  ;;  %v9072_v2 = vld [vmem:[#allocation101_spill] sm:$0xff] }
  0xff   : > { %4827 = vmatprep.subr.bf16.mxu1 %v4826_v38  ;;  %v4832_v42 = vpack.c.bf16 %v9071_v40, %v9070_v14  ;;  %v4834_v48 = vpack.c.bf16 %v9073_v32, %v9072_v2  ;;  %v9074_v38 = vld [vmem:[#allocation105_spill] sm:$0xff] }
 0x100   : > { %v4452_v15 = vpack.c.bf16 %v9075_v11, %v9074_v38 }
 0x101   : > { %4445 = vmatpush1.bf16.msra.mxu0 %v4444_v8  ;;  %v9076_v8 = vld [vmem:[#allocation108_spill] sm:$0xff] }
 0x102   : > { %4447 = vmatprep.subr.bf16.mxu0 %v4446_v17  ;;  %4829 = vmatpush1.bf16.msra.mxu1 %v4828_v47  ;;  %v4836_v17 = vpack.c.bf16 %v9077_v57, %v9076_v8  ;;  %v9078_v47 = vpack.c.bf16 %v8936_v27, %v8935_v26 }
 0x103   : > { %4831 = vmatprep.subr.bf16.mxu1 %v4830_v36  ;;  %v9079_v36 = vpack.c.bf16 %v8996_v20, %v8937_v35 }
 0x105   : > { %4449 = vmatpush1.bf16.msra.mxu0 %v4448_v53  ;;  %v9080_v53 = vpack.c.bf16 %v8998_v56, %v8997_v43 }
 0x106   : > { %4451 = vmatprep.subr.bf16.mxu0 %v4450_v49  ;;  %4833 = vmatpush1.bf16.msra.mxu1 %v4832_v42  ;;  %v9081_v49 = vpack.c.bf16 %v9002_v7, %v9001_v29  ;;  %v9083_v42 = vpack.c.bf16 %v9004_v31, %v9003_v59 }
 0x107   : > { %4835 = vmatprep.subr.bf16.mxu1 %v4834_v48  ;;  %v9082_v48 = vpack.c.bf16 %v9000_v58, %v8999_v3 }
 0x109   : > { %4453 = vmatpush1.bf16.msra.mxu0 %v4452_v15  ;;  %v9084_v15 = vpack.c.bf16 %v9006_v34, %v9005_v0 }
 0x10a   : > { %4455 = vmatprep.subr.bf16.mxu0 %v9078_v47  ;;  %4837 = vmatpush1.bf16.msra.mxu1 %v4836_v17  ;;  %v9085_v17 = vpack.c.bf16 %v9010_v12, %v9009_v44  ;;  %v9086_v47 = vpack.c.bf16 %v9008_v33, %v9007_v9  ;;  %v9094_v12 = vld [vmem:[#allocation149_spill] sm:$0xff] }
 0x10b   : > { %4839 = vmatprep.subr.bf16.mxu1 %v9079_v36  ;;  %v9087_v36 = vpack.c.bf16 %v9012_v62, %v9011_v63 }
 0x10d   : > { %4457 = vmatpush1.bf16.msra.mxu0 %v9080_v53  ;;  %v9088_v53 = vpack.c.bf16 %v9014_v6, %v9013_v10 }
 0x10e   : > { %4459 = vmatprep.subr.bf16.mxu0 %v9081_v49  ;;  %4841 = vmatpush1.bf16.msra.mxu1 %v9082_v48  ;;  %v9089_v49 = vpack.c.bf16 %v9018_v50, %v9017_v37  ;;  %v9090_v48 = vld [vmem:[#allocation145_spill] sm:$0xff] }
 0x10f   : > { %4843 = vmatprep.subr.bf16.mxu1 %v9083_v42  ;;  %v9091_v42 = vld [vmem:[#allocation144_spill] sm:$0xff] }
 0x111   : > { %4461 = vmatpush1.bf16.msra.mxu0 %v9084_v15  ;;  %v9092_v15 = vpack.c.bf16 %v9090_v48, %v9091_v42 }
 0x112   : > { %4463 = vmatprep.subr.bf16.mxu0 %v9085_v17  ;;  %4845 = vmatpush1.bf16.msra.mxu1 %v9086_v47  ;;  %v9093_v17 = vld [vmem:[#allocation151_spill] sm:$0xff]  ;;  %v9096_v47 = vld [vmem:[#allocation153_spill] sm:$0xff] }
 0x113   : > { %4847 = vmatprep.subr.bf16.mxu1 %v9087_v36  ;;  %v9095_v33 = vpack.c.bf16 %v9093_v17, %v9094_v12  ;;  %v9097_v62 = vpack.c.bf16 %v9022_v46, %v9096_v47  ;;  %v9098_v36 = vpack.c.bf16 %v9026_v25, %v9025_v51 }
 0x115   : > { %4465 = vmatpush1.bf16.msra.mxu0 %v9088_v53  ;;  %v9099_v53 = vld [vmem:[#allocation156_spill] sm:$0xff] }
 0x116   : > { %4467 = vmatprep.subr.bf16.mxu0 %v9089_v49  ;;  %4849 = vmatpush1.bf16.msra.mxu1 %v9092_v15  ;;  %v9100_v50 = vpack.c.bf16 %v9024_v41, %v9099_v53  ;;  %v9101_v49 = vpack.c.bf16 %v9028_v28, %v9027_v18  ;;  %v9102_v15 = vpack.c.bf16 %v9030_v16, %v9029_v1  ;;  %v9201_v16 = vld [vmem:[#allocation192_spill] sm:$0xff]  ;;  %v9204_v1 = vld [vmem:[#allocation13_spill] sm:$0xff] }
 0x117   : > { %4851 = vmatprep.subr.bf16.mxu1 %v9095_v33  ;;  %v9103_v33 = vpack.c.bf16 %v9034_v23, %v9033_v13  ;;  %v9252_v28 = vld [vmem:[#allocation52_spill] sm:$0xff] }
 0x119   : > { %4469 = vmatpush1.bf16.msra.mxu0 %v9097_v62  ;;  %v9104_v62 = vpack.c.bf16 %v9032_v60, %v9031_v19  ;;  %v9113_v19 = vld [vmem:[#allocation190_spill] sm:$0xff] }
 0x11a   : > { %4471 = vmatprep.subr.bf16.mxu0 %v9098_v36  ;;  %4853 = vmatpush1.bf16.msra.mxu1 %v9100_v50  ;;  %v9105_v36 = vpack.c.bf16 %v9036_v39, %v9035_v4  ;;  %v9106_v50 = vpack.c.bf16 %v6151_v22, %v9037_v30  ;;  %v9116_v22 = vld [vmem:[#allocation194_spill] sm:$0xff] }
 0x11b   : > { %4855 = vmatprep.subr.bf16.mxu1 %v9101_v49  ;;  %v9107_v49 = vpack.c.bf16 %v8984_v21, %v8983_v45  ;;  %v9119_v21 = vld [vmem:[#allocation6_spill] sm:$0xff]  ;;  %v9192_v45 = vld [vmem:[#allocation189_spill] sm:$0xff] }
 0x11c   : > { %v9195_v4 = vld [vmem:[#allocation10_spill] sm:$0xff] }
 0x11d   : > { %4473 = vmatpush1.bf16.msra.mxu0 %v9102_v15  ;;  %v9108_v15 = vld [vmem:[#allocation180_spill] sm:$0xff] }
 0x11e   : > { %4475 = vmatprep.subr.bf16.mxu0 %v9103_v33  ;;  %4857 = vmatpush1.bf16.msra.mxu1 %v9104_v62  ;;  %v9109_v23 = vpack.c.bf16 %v8981_v5, %v9108_v15  ;;  %v9110_v33 = vld [vmem:[#allocation185_spill] sm:$0xff]  ;;  %v9112_v62 = vld [vmem:[#allocation191_spill] sm:$0xff]  ;;  %v9121_v5 = vld [vmem:[#allocation8_spill] sm:$0xff] }
 0x11f   : > { %4859 = vmatprep.subr.bf16.mxu1 %v9105_v36  ;;  %v9111_v60 = vpack.c.bf16 %v6180_v54, %v9110_v33  ;;  %v9114_v39 = vpack.c.bf16 %v9112_v62, %v9113_v19  ;;  %v9115_v36 = vld [vmem:[#allocation2_spill] sm:$0xff]  ;;  %v9124_v62 = vld [vmem:[#allocation11_spill] sm:$0xff]  ;;  %v9184_v19 = vld [vmem:[#allocation4_spill] sm:$0xff] }
 0x121   : > { %4477 = vmatpush1.bf16.msra.mxu0 %v9106_v50  ;;  %v9117_v50 = vld [vmem:[#allocation193_spill] sm:$0xff] }
 0x122   : > { %4479 = vmatprep.subr.bf16.mxu0 %v9107_v49  ;;  %4861 = vmatpush1.bf16.msra.mxu1 %v9109_v23  ;;  %v9118_v30 = vpack.c.bf16 %v9116_v22, %v9117_v50  ;;  %v9120_v49 = vld [vmem:[#allocation198_spill] sm:$0xff]  ;;  %v9122_v23 = vld [vmem:[#allocation112_spill] sm:$0xff] }
 0x123   : > { %4863 = vmatprep.subr.bf16.mxu1 %v9111_v60  ;;  %v9123_v60 = vld [vmem:[#allocation15_spill] sm:$0xff]  ;;  %v9129_v22 = vld [vmem:[#allocation26_spill] sm:$0xff] }
 0x124   : > { %v9137_v50 = vld [vmem:[#allocation50_spill] sm:$0xff] }
 0x125   : > { %4481 = vmatpush1.bf16.msra.mxu0 %v9114_v39  ;;  %v9125_v39 = vld [vmem:[#allocation17_spill] sm:$0xff] }
 0x126   : > { %4483 = vmatprep.subr.bf16.mxu0 %v9115_v36  ;;  %4865 = vmatpush1.bf16.msra.mxu1 %v9118_v30  ;;  %v9126_v36 = vld [vmem:[#allocation201_spill] sm:$0xff] }
 0x127   : > { %4867 = vmatprep.subr.bf16.mxu1 %v9119_v21  ;;  %v9127_v30 = vld [vmem:[#allocation21_spill] sm:$0xff] }
 0x128   : > { %1025 = vmatmul.mubr.f32.vlgmr.msra.gmra.mrb[0].mxu0 %v9120_v49  ;;  %v9128_v21 = vld [vmem:[#allocation197_spill] sm:$0xff] }
 0x129   : > { %4485 = vmatpush1.bf16.msra.mxu0 %v9121_v5  ;;  %1032 = vmatprep.mubr.f32.mxu0 %v9122_v23  ;;  %v9130_v5 = vld [vmem:[#allocation24_spill] sm:$0xff] }
 0x12a   : > { %2435 = vmatmul.mubr.f32.vlgmr.msra.gmra.mrb[0].mxu1 %v9120_v49  ;;  %4487 = vmatprep.subr.bf16.mxu0 %v9123_v60  ;;  %v9131_v49 = vld [vmem:[#allocation29_spill] sm:$0xff] }
 0x12b   : > { %4869 = vmatpush1.bf16.msra.mxu1 %v9124_v62  ;;  %2442 = vmatprep.mubr.f32.mxu1 %v9122_v23  ;;  %v9132_v62 = vld [vmem:[#allocation32_spill] sm:$0xff]  ;;  %v9133_v23 = vld [vmem:[#allocation38_spill] sm:$0xff]  ;;  %v9135_v60 = vld [vmem:[#allocation41_spill] sm:$0xff] }
 0x12c   : > { %4871 = vmatprep.subr.bf16.mxu1 %v9125_v39  ;;  %1035 = vmatmul.mubr.f32.gmra.mrb[2].mxu0 %v9126_v36  ;;  %v9134_v39 = vld [vmem:[#allocation35_spill] sm:$0xff] }
 0x12d   : > { %4489 = vmatpush1.bf16.msra.mxu0 %v9127_v30  ;;  %1172 = vmatprep.mubr.f32.mxu0 %v9128_v21  ;;  %v9136_v30 = vld [vmem:[#allocation45_spill] sm:$0xff] }
 0x12e   : > { %4491 = vmatprep.subr.bf16.mxu0 %v9129_v22  ;;  %2445 = vmatmul.mubr.f32.gmra.mrb[2].mxu1 %v9126_v36  ;;  %v9138_v22 = vld [vmem:[#allocation47_spill] sm:$0xff]  ;;  %v9139_v36 = vld [vmem:[#allocation54_spill] sm:$0xff] }
 0x12f   : > { %4873 = vmatpush1.bf16.msra.mxu1 %v9130_v5  ;;  %2582 = vmatprep.mubr.f32.mxu1 %v9128_v21  ;;  %v9140_v5 = vld [vmem:[#allocation56_spill] sm:$0xff]  ;;  %v9141_v21 = vld [vmem:[#allocation62_spill] sm:$0xff] }
 0x130   : > { %4875 = vmatprep.subr.bf16.mxu1 %v9131_v49  ;;  %v9142_v49 = vld [vmem:[#allocation59_spill] sm:$0xff] }
 0x131   : > { %4493 = vmatpush1.bf16.msra.mxu0 %v9132_v62  ;;  %v9143_v62 = vld [vmem:[#allocation66_spill] sm:$0xff] }
 0x132   : > { %4495 = vmatprep.subr.bf16.mxu0 %v9133_v23  ;;  %v9144_v23 = vld [vmem:[#allocation68_spill] sm:$0xff] }
 0x133   : > { %4877 = vmatpush1.bf16.msra.mxu1 %v9134_v39  ;;  %v9145_v39 = vld [vmem:[#allocation74_spill] sm:$0xff] }
 0x134   : > { %4879 = vmatprep.subr.bf16.mxu1 %v9135_v60  ;;  %v9146_v60 = vld [vmem:[#allocation71_spill] sm:$0xff] }
 0x135   : > { %4497 = vmatpush1.bf16.msra.mxu0 %v9136_v30  ;;  %v9147_v30 = vld [vmem:[#allocation78_spill] sm:$0xff] }
 0x136   : > { %4499 = vmatprep.subr.bf16.mxu0 %v9137_v50  ;;  %v9148_v50 = vld [vmem:[#allocation80_spill] sm:$0xff] }
 0x137   : > { %4881 = vmatpush1.bf16.msra.mxu1 %v9138_v22  ;;  %v9149_v22 = vld [vmem:[#allocation86_spill] sm:$0xff] }
 0x138   : > { %4883 = vmatprep.subr.bf16.mxu1 %v9139_v36  ;;  %v9150_v36 = vld [vmem:[#allocation83_spill] sm:$0xff] }
 0x139   : > { %4501 = vmatpush1.bf16.msra.mxu0 %v9140_v5  ;;  %v9151_v5 = vld [vmem:[#allocation90_spill] sm:$0xff] }
 0x13a   : > { %4503 = vmatprep.subr.bf16.mxu0 %v9141_v21  ;;  %v9152_v21 = vld [vmem:[#allocation92_spill] sm:$0xff] }
 0x13b   : > { %4885 = vmatpush1.bf16.msra.mxu1 %v9142_v49  ;;  %v9153_v49 = vld [vmem:[#allocation98_spill] sm:$0xff] }
 0x13c   : > { %4887 = vmatprep.subr.bf16.mxu1 %v9143_v62  ;;  %v9154_v62 = vld [vmem:[#allocation95_spill] sm:$0xff] }
 0x13d   : > { %4505 = vmatpush1.bf16.msra.mxu0 %v9144_v23  ;;  %v9155_v23 = vld [vmem:[#allocation102_spill] sm:$0xff] }
 0x13e   : > { %4507 = vmatprep.subr.bf16.mxu0 %v9145_v39  ;;  %v9156_v39 = vld [vmem:[#allocation104_spill] sm:$0xff] }
 0x13f   : > { %4889 = vmatpush1.bf16.msra.mxu1 %v9146_v60  ;;  %v9157_v60 = vld [vmem:[#allocation110_spill] sm:$0xff] }
 0x140   : > { %4891 = vmatprep.subr.bf16.mxu1 %v9147_v30  ;;  %v9158_v30 = vld [vmem:[#allocation107_spill] sm:$0xff] }
 0x141   : > { %4509 = vmatpush1.bf16.msra.mxu0 %v9148_v50  ;;  %v9159_v50 = vld [vmem:[#allocation114_spill] sm:$0xff] }
 0x142   : > { %4511 = vmatprep.subr.bf16.mxu0 %v9149_v22  ;;  %v9160_v22 = vld [vmem:[#allocation116_spill] sm:$0xff] }
 0x143   : > { %4893 = vmatpush1.bf16.msra.mxu1 %v9150_v36  ;;  %v9161_v36 = vld [vmem:[#allocation122_spill] sm:$0xff] }
 0x144   : > { %4895 = vmatprep.subr.bf16.mxu1 %v9151_v5  ;;  %v9162_v5 = vld [vmem:[#allocation119_spill] sm:$0xff] }
 0x145   : > { %4513 = vmatpush1.bf16.msra.mxu0 %v9152_v21  ;;  %v9163_v21 = vld [vmem:[#allocation126_spill] sm:$0xff] }
 0x146   : > { %4515 = vmatprep.subr.bf16.mxu0 %v9153_v49  ;;  %v9164_v49 = vld [vmem:[#allocation128_spill] sm:$0xff] }
 0x147   : > { %4897 = vmatpush1.bf16.msra.mxu1 %v9154_v62  ;;  %v9165_v62 = vld [vmem:[#allocation134_spill] sm:$0xff] }
 0x148   : > { %4899 = vmatprep.subr.bf16.mxu1 %v9155_v23  ;;  %v9166_v23 = vld [vmem:[#allocation131_spill] sm:$0xff] }
 0x149   : > { %4517 = vmatpush1.bf16.msra.mxu0 %v9156_v39  ;;  %v9167_v39 = vld [vmem:[#allocation138_spill] sm:$0xff] }
 0x14a   : > { %4519 = vmatprep.subr.bf16.mxu0 %v9157_v60  ;;  %v9168_v60 = vld [vmem:[#allocation140_spill] sm:$0xff] }
 0x14b   : > { %4901 = vmatpush1.bf16.msra.mxu1 %v9158_v30  ;;  %v9169_v30 = vld [vmem:[#allocation146_spill] sm:$0xff] }
 0x14c   : > { %4903 = vmatprep.subr.bf16.mxu1 %v9159_v50  ;;  %v9170_v50 = vld [vmem:[#allocation143_spill] sm:$0xff] }
 0x14d   : > { %4521 = vmatpush1.bf16.msra.mxu0 %v9160_v22  ;;  %v9171_v22 = vld [vmem:[#allocation150_spill] sm:$0xff] }
 0x14e   : > { %4523 = vmatprep.subr.bf16.mxu0 %v9161_v36  ;;  %v9172_v36 = vld [vmem:[#allocation152_spill] sm:$0xff] }
 0x14f   : > { %4905 = vmatpush1.bf16.msra.mxu1 %v9162_v5  ;;  %v9173_v5 = vld [vmem:[#allocation158_spill] sm:$0xff] }
 0x150   : > { %4907 = vmatprep.subr.bf16.mxu1 %v9163_v21  ;;  %v9174_v21 = vld [vmem:[#allocation155_spill] sm:$0xff] }
 0x151   : > { %4525 = vmatpush1.bf16.msra.mxu0 %v9164_v49  ;;  %v9175_v49 = vld [vmem:[#allocation162_spill] sm:$0xff] }
 0x152   : > { %4527 = vmatprep.subr.bf16.mxu0 %v9165_v62  ;;  %v9176_v62 = vld [vmem:[#allocation164_spill] sm:$0xff] }
 0x153   : > { %4909 = vmatpush1.bf16.msra.mxu1 %v9166_v23  ;;  %v9177_v23 = vld [vmem:[#allocation170_spill] sm:$0xff] }
 0x154   : > { %4911 = vmatprep.subr.bf16.mxu1 %v9167_v39  ;;  %v9178_v39 = vld [vmem:[#allocation167_spill] sm:$0xff] }
 0x155   : > { %4529 = vmatpush1.bf16.msra.mxu0 %v9168_v60  ;;  %v9179_v60 = vld [vmem:[#allocation174_spill] sm:$0xff] }
 0x156   : > { %4531 = vmatprep.subr.bf16.mxu0 %v9169_v30  ;;  %v9180_v30 = vld [vmem:[#allocation176_spill] sm:$0xff] }
 0x157   : > { %4913 = vmatpush1.bf16.msra.mxu1 %v9170_v50  ;;  %v9181_v50 = vld [vmem:[#allocation182_spill] sm:$0xff] }
 0x158   : > { %4915 = vmatprep.subr.bf16.mxu1 %v9171_v22  ;;  %v9182_v22 = vld [vmem:[#allocation3_spill] sm:$0xff] }
 0x159   : > { %4533 = vmatpush1.bf16.msra.mxu0 %v9172_v36  ;;  %v9183_v36 = vand.u32 4294901760, %v9182_v22  ;;  %v9197_v22 = vld [vmem:[#allocation14_spill] sm:$0xff] }
 0x15a   : > { %4535 = vmatprep.subr.bf16.mxu0 %v9173_v5  ;;  %v9185_v5 = vand.u32 4294901760, %v9184_v19  ;;  %v9198_v19 = vand.u32 4294901760, %v9197_v22 }
 0x15b   : > { %4917 = vmatpush1.bf16.msra.mxu1 %v9174_v21  ;;  %v9186_v21 = vld [vmem:[#allocation179_spill] sm:$0xff] }
 0x15c   : > { %4919 = vmatprep.subr.bf16.mxu1 %v9175_v49  ;;  %v4546_v54 = vpack.c.bf16 %v9185_v5, %v9183_v36  ;;  %v9187_v49 = vld [vmem:[#allocation187_spill] sm:$0xff]  ;;  %v9199_v5 = vld [vmem:[#allocation16_spill] sm:$0xff] }
 0x15d   : > { %4537 = vmatpush1.bf16.msra.mxu0 %v9176_v62  ;;  %v9188_v62 = vld [vmem:[#allocation5_spill] sm:$0xff]  ;;  %v9200_v36 = vand.u32 4294901760, %v9199_v5  ;;  %v9213_v5 = vld [vmem:[#allocation22_spill] sm:$0xff] }
 0x15e   : > { %4539 = vmatprep.subr.bf16.mxu0 %v9177_v23  ;;  %v9189_v33 = vand.u32 4294901760, %v9188_v62  ;;  %v9190_v23 = vld [vmem:[#allocation7_spill] sm:$0xff] }
 0x15f   : > { %4921 = vmatpush1.bf16.msra.mxu1 %v9178_v39  ;;  %v9191_v15 = vand.u32 4294901760, %v9190_v23  ;;  %v9205_v23 = vand.u32 4294901760, %v9204_v1  ;;  %v9216_v1 = vld [vmem:[#allocation27_spill] sm:$0xff] }
 0x160   : > { %4923 = vmatprep.subr.bf16.mxu1 %v9179_v60  ;;  %v9193_v60 = vld [vmem:[#allocation9_spill] sm:$0xff] }
 0x161   : > { %4541 = vmatpush1.bf16.msra.mxu0 %v9180_v30  ;;  %v4930_v39 = vpack.c.bf16 %v9191_v15, %v9189_v33  ;;  %v9194_v30 = vand.u32 4294901760, %v9193_v60  ;;  %v9206_v33 = vld [vmem:[#allocation199_spill] sm:$0xff]  ;;  %v9207_v60 = vld [vmem:[#allocation18_spill] sm:$0xff] }
 0x162   : > { %4543 = vmatprep.subr.bf16.mxu0 %v9181_v50  ;;  %v9196_v50 = vand.u32 4294901760, %v9195_v4  ;;  %v9209_v4 = vld [vmem:[#allocation19_spill] sm:$0xff] }
 0x163   : > { %4925 = vmatpush1.bf16.msra.mxu1 %v9186_v21  ;;  %v4550_v21 = vpack.c.bf16 %v9200_v36, %v9198_v19  ;;  %v9214_v19 = vand.u32 4294901760, %v9213_v5  ;;  %v9226_v5 = vld [vmem:[#allocation31_spill] sm:$0xff] }
 0x164   : > { %4927 = vmatprep.subr.bf16.mxu1 %v9187_v49  ;;  %v4548_v13 = vpack.c.bf16 %v9196_v50, %v9194_v30  ;;  %v9202_v49 = vld [vmem:[#allocation12_spill] sm:$0xff]  ;;  %v9210_v50 = vand.u32 4294901760, %v9209_v4 }
 0x165   : > { %4545 = vmatpush1.bf16.msra.mxu0 %v9192_v45  ;;  %v9203_v62 = vand.u32 4294901760, %v9202_v49  ;;  %v9208_v45 = vand.u32 4294901760, %v9207_v60  ;;  %v9211_v30 = vld [vmem:[#allocation20_spill] sm:$0xff]  ;;  %v9220_v60 = vld [vmem:[#allocation23_spill] sm:$0xff] }
 0x166   : > { %4547 = vmatprep.subr.bf16.mxu0 %v4546_v54  ;;  %v9212_v22 = vand.u32 4294901760, %v9211_v30  ;;  %v9218_v49 = vld [vmem:[#allocation28_spill] sm:$0xff]  ;;  %v9221_v4 = vand.u32 4294901760, %v9220_v60  ;;  %v9224_v30 = vld [vmem:[#allocation30_spill] sm:$0xff] }
 0x167   : > { %4929 = vmatpush1.bf16.msra.mxu1 %v9201_v16  ;;  %v4932_v15 = vpack.c.bf16 %v9205_v23, %v9203_v62  ;;  %v4934_v54 = vpack.c.bf16 %v9210_v50, %v9208_v45  ;;  %v9215_v16 = vld [vmem:[#allocation200_spill] sm:$0xff]  ;;  %v9219_v62 = vand.u32 4294901760, %v9218_v49  ;;  %v9222_v45 = vld [vmem:[#allocation25_spill] sm:$0xff]  ;;  %v9233_v60 = vld [vmem:[#allocation186_spill] sm:$0xff] }
 0x168   : > { %4931 = vmatprep.subr.bf16.mxu1 %v4930_v39  ;;  %1176 = vmatmul.mubr.f32.vlgmr.msra.gmra.mrb[0].mxu0 %v9206_v33  ;;  %v4552_v36 = vpack.c.bf16 %v9214_v19, %v9212_v22  ;;  %v9217_v39 = vand.u32 4294901760, %v9216_v1  ;;  %v9225_v22 = vand.u32 4294901760, %v9224_v30  ;;  %v9227_v19 = vand.u32 4294901760, %v9226_v5  ;;  %v9229_v1 = vld [vmem:[#allocation33_spill] sm:$0xff]  ;;  %v9238_v30 = vld [vmem:[#allocation36_spill] sm:$0xff] }
 0x169   : > { %4549 = vmatpush1.bf16.msra.mxu0 %v4548_v13  ;;  %1184 = vmatprep.mubr.f32.mxu0 %v9215_v16  ;;  %v9223_v13 = vand.u32 4294901760, %v9222_v45  ;;  %v9230_v49 = vand.u32 4294901760, %v9229_v1  ;;  %v9240_v5 = vld [vmem:[#allocation37_spill] sm:$0xff]  ;;  %v9242_v1 = vld [vmem:[#allocation42_spill] sm:$0xff] }
 0x16a   : > { %2586 = vmatmul.mubr.f32.vlgmr.msra.gmra.mrb[0].mxu1 %v9206_v33  ;;  %4551 = vmatprep.subr.bf16.mxu0 %v4550_v21  ;;  %v4554_v23 = vpack.c.bf16 %v9219_v62, %v9217_v39  ;;  %v4938_v33 = vpack.c.bf16 %v9227_v19, %v9225_v22  ;;  %v9228_v21 = vld [vmem:[#allocation202_spill] sm:$0xff]  ;;  %v9239_v22 = vand.u32 4294901760, %v9238_v30 }
 0x16b   : > { %4933 = vmatpush1.bf16.msra.mxu1 %v4932_v15  ;;  %v4936_v50 = vpack.c.bf16 %v9223_v13, %v9221_v4  ;;  %2594 = vmatprep.mubr.f32.mxu1 %v9215_v16  ;;  %v9231_v39 = vld [vmem:[#allocation34_spill] sm:$0xff]  ;;  %v9234_v4 = vld [vmem:[#allocation39_spill] sm:$0xff]  ;;  %v9236_v16 = vld [vmem:[#allocation40_spill] sm:$0xff] }
 0x16c   : > { %4935 = vmatprep.subr.bf16.mxu1 %v4934_v54  ;;  %1188 = vmatmul.mubr.f32.gmra.mrb[2].mxu0 %v9228_v21  ;;  %v9232_v15 = vand.u32 4294901760, %v9231_v39  ;;  %v9235_v45 = vand.u32 4294901760, %v9234_v4  ;;  %v9237_v54 = vand.u32 4294901760, %v9236_v16  ;;  %v9244_v39 = vld [vmem:[#allocation43_spill] sm:$0xff]  ;;  %v9246_v4 = vld [vmem:[#allocation44_spill] sm:$0xff] }
 0x16d   : > { %4553 = vmatpush1.bf16.msra.mxu0 %v4552_v36  ;;  %1451 = vmatprep.mubr.f32.mxu0 %v9233_v60  ;;  %v9241_v36 = vand.u32 4294901760, %v9240_v5  ;;  %v9247_v16 = vand.u32 4294901760, %v9246_v4  ;;  %v9253_v5 = vand.u32 4294901760, %v9252_v28  ;;  %v9266_v28 = vld [vmem:[#allocation63_spill] sm:$0xff] }
 0x16e   : > { %v4556_v62 = vpack.c.bf16 %v9232_v15, %v9230_v49  ;;  %4555 = vmatprep.subr.bf16.mxu0 %v4554_v23  ;;  %v4558_v13 = vpack.c.bf16 %v9237_v54, %v9235_v45  ;;  %2598 = vmatmul.mubr.f32.gmra.mrb[2].mxu1 %v9228_v21  ;;  %v9243_v49 = vand.u32 4294901760, %v9242_v1  ;;  %v9245_v23 = vand.u32 4294901760, %v9244_v39  ;;  %v9248_v45 = vld [vmem:[#allocation46_spill] sm:$0xff]  ;;  %v9260_v39 = vld [vmem:[#allocation55_spill] sm:$0xff] }
 0x16f   : > { %4937 = vmatpush1.bf16.msra.mxu1 %v4936_v50  ;;  %v4940_v19 = vpack.c.bf16 %v9241_v36, %v9239_v22  ;;  %2861 = vmatprep.mubr.f32.mxu1 %v9233_v60  ;;  %v9249_v54 = vand.u32 4294901760, %v9248_v45  ;;  %v9250_v50 = vld [vmem:[#allocation51_spill] sm:$0xff]  ;;  %v9254_v36 = vld [vmem:[#allocation48_spill] sm:$0xff]  ;;  %v9256_v60 = vld [vmem:[#allocation49_spill] sm:$0xff] }
 0x170   : > { %4939 = vmatprep.subr.bf16.mxu1 %v4938_v33  ;;  %v4942_v15 = vpack.c.bf16 %v9245_v23, %v9243_v49  ;;  %v9251_v30 = vand.u32 4294901760, %v9250_v50  ;;  %v9255_v33 = vand.u32 4294901760, %v9254_v36  ;;  %v9257_v1 = vand.u32 4294901760, %v9256_v60  ;;  %v9258_v49 = vld [vmem:[#allocation53_spill] sm:$0xff]  ;;  %v9264_v45 = vld [vmem:[#allocation58_spill] sm:$0xff]  ;;  %v9270_v60 = vld [vmem:[#allocation60_spill] sm:$0xff] }
 0x171   : > { %4557 = vmatpush1.bf16.msra.mxu0 %v4556_v62  ;;  %v4560_v21 = vpack.c.bf16 %v9249_v54, %v9247_v16  ;;  %v9259_v62 = vand.u32 4294901760, %v9258_v49  ;;  %v9261_v23 = vand.u32 4294901760, %v9260_v39  ;;  %v9262_v16 = vld [vmem:[#allocation57_spill] sm:$0xff]  ;;  %v9265_v54 = vand.u32 4294901760, %v9264_v45  ;;  %v9276_v39 = vld [vmem:[#allocation67_spill] sm:$0xff]  ;;  %v9280_v45 = vld [vmem:[#allocation70_spill] sm:$0xff] }
 0x172   : > { %4559 = vmatprep.subr.bf16.mxu0 %v4558_v13  ;;  %v4562_v22 = vpack.c.bf16 %v9253_v5, %v9251_v30  ;;  %v4944_v18 = vpack.c.bf16 %v9257_v1, %v9255_v33  ;;  %v9263_v13 = vand.u32 4294901760, %v9262_v16  ;;  %v9268_v30 = vld [vmem:[#allocation64_spill] sm:$0xff]  ;;  %v9272_v33 = vld [vmem:[#allocation61_spill] sm:$0xff] }
 0x173   : > { %4941 = vmatpush1.bf16.msra.mxu1 %v4940_v19  ;;  %v4946_v4 = vpack.c.bf16 %v9261_v23, %v9259_v62  ;;  %v9267_v19 = vand.u32 4294901760, %v9266_v28  ;;  %v9269_v5 = vand.u32 4294901760, %v9268_v30  ;;  %v9273_v1 = vand.u32 4294901760, %v9272_v33  ;;  %v9274_v62 = vld [vmem:[#allocation65_spill] sm:$0xff]  ;;  %v9284_v30 = vld [vmem:[#allocation76_spill] sm:$0xff] }
 0x174   : > { %4943 = vmatprep.subr.bf16.mxu1 %v4942_v15  ;;  %v4564_v50 = vpack.c.bf16 %v9265_v54, %v9263_v13  ;;  %v9271_v15 = vand.u32 4294901760, %v9270_v60  ;;  %v9277_v23 = vand.u32 4294901760, %v9276_v39  ;;  %v9278_v13 = vld [vmem:[#allocation69_spill] sm:$0xff]  ;;  %v9281_v54 = vand.u32 4294901760, %v9280_v45  ;;  %v9292_v39 = vld [vmem:[#allocation79_spill] sm:$0xff]  ;;  %v9296_v45 = vld [vmem:[#allocation82_spill] sm:$0xff] }
 0x175   : > { %4561 = vmatpush1.bf16.msra.mxu0 %v4560_v21  ;;  %v4566_v36 = vpack.c.bf16 %v9269_v5, %v9267_v19  ;;  %v9275_v21 = vand.u32 4294901760, %v9274_v62  ;;  %v9282_v19 = vld [vmem:[#allocation75_spill] sm:$0xff]  ;;  %v9285_v5 = vand.u32 4294901760, %v9284_v30  ;;  %v9288_v33 = vld [vmem:[#allocation73_spill] sm:$0xff]  ;;  %v9300_v30 = vld [vmem:[#allocation88_spill] sm:$0xff] }
 0x176   : > { %4563 = vmatprep.subr.bf16.mxu0 %v4562_v22  ;;  %v4948_v49 = vpack.c.bf16 %v9273_v1, %v9271_v15  ;;  %v9279_v22 = vand.u32 4294901760, %v9278_v13  ;;  %v9286_v15 = vld [vmem:[#allocation72_spill] sm:$0xff]  ;;  %v9289_v1 = vand.u32 4294901760, %v9288_v33  ;;  %v9304_v33 = vld [vmem:[#allocation85_spill] sm:$0xff] }
 0x177   : > { %4945 = vmatpush1.bf16.msra.mxu1 %v4944_v18  ;;  %v4950_v16 = vpack.c.bf16 %v9277_v23, %v9275_v21  ;;  %v9283_v18 = vand.u32 4294901760, %v9282_v19  ;;  %v9290_v21 = vld [vmem:[#allocation77_spill] sm:$0xff]  ;;  %v9293_v23 = vand.u32 4294901760, %v9292_v39 }
 0x178   : > { %4947 = vmatprep.subr.bf16.mxu1 %v4946_v4  ;;  %v4568_v28 = vpack.c.bf16 %v9281_v54, %v9279_v22  ;;  %v9287_v4 = vand.u32 4294901760, %v9286_v15  ;;  %v9294_v22 = vld [vmem:[#allocation81_spill] sm:$0xff]  ;;  %v9297_v54 = vand.u32 4294901760, %v9296_v45 }
 0x179   : > { %4565 = vmatpush1.bf16.msra.mxu0 %v4564_v50  ;;  %v4570_v60 = vpack.c.bf16 %v9285_v5, %v9283_v18  ;;  %v9291_v50 = vand.u32 4294901760, %v9290_v21  ;;  %v9298_v18 = vld [vmem:[#allocation87_spill] sm:$0xff]  ;;  %v9301_v5 = vand.u32 4294901760, %v9300_v30 }
 0x17a   : > { %4567 = vmatprep.subr.bf16.mxu0 %v4566_v36  ;;  %v4952_v62 = vpack.c.bf16 %v9289_v1, %v9287_v4  ;;  %v9295_v36 = vand.u32 4294901760, %v9294_v22  ;;  %v9302_v4 = vld [vmem:[#allocation84_spill] sm:$0xff]  ;;  %v9305_v1 = vand.u32 4294901760, %v9304_v33  ;;  %v9310_v22 = vld [vmem:[#allocation94_spill] sm:$0xff] }
 0x17b   : > { %4949 = vmatpush1.bf16.msra.mxu1 %v4948_v49  ;;  %v4954_v13 = vpack.c.bf16 %v9293_v23, %v9291_v50  ;;  %v9299_v49 = vand.u32 4294901760, %v9298_v18  ;;  %v9307_v50 = vld [vmem:[#allocation91_spill] sm:$0xff] }
 0x17c   : > { %4951 = vmatprep.subr.bf16.mxu1 %v4950_v16  ;;  %v4572_v19 = vpack.c.bf16 %v9297_v54, %v9295_v36  ;;  %v9303_v16 = vand.u32 4294901760, %v9302_v4  ;;  %v9308_v39 = vand.u32 4294901760, %v9307_v50  ;;  %v9311_v36 = vand.u32 4294901760, %v9310_v22  ;;  %v9340_v22 = vld [vmem:[#allocation133_spill] sm:$0xff] }
 0x17d   : > { %4569 = vmatpush1.bf16.msra.mxu0 %v4568_v28  ;;  %v4574_v15 = vpack.c.bf16 %v9301_v5, %v9299_v49  ;;  %v9306_v28 = vand.u32 4294901760, %v9064_v61  ;;  %v9313_v54 = vand.u32 4294901760, %v9069_v55  ;;  %v9315_v61 = vand.u32 4294901760, %v9071_v40 }
 0x17e   : > { %4571 = vmatprep.subr.bf16.mxu0 %v4570_v60  ;;  %v4956_v21 = vpack.c.bf16 %v9305_v1, %v9303_v16  ;;  %v9309_v60 = vand.u32 4294901760, %v9066_v24  ;;  %v9317_v24 = vand.u32 4294901760, %v9073_v32  ;;  %v9318_v5 = vand.u32 4294901760, %v9074_v38 }
 0x17f   : > { %4953 = vmatpush1.bf16.msra.mxu1 %v4952_v62  ;;  %v4958_v23 = vpack.c.bf16 %v9308_v39, %v9306_v28  ;;  %v9312_v62 = vand.u32 4294901760, %v9068_v52  ;;  %v9319_v52 = vand.u32 4294901760, %v9075_v11  ;;  %v9320_v55 = vand.u32 4294901760, %v8935_v26 }
 0x180   : > { %4955 = vmatprep.subr.bf16.mxu1 %v4954_v13  ;;  %v4576_v45 = vpack.c.bf16 %v9311_v36, %v9309_v60  ;;  %v9314_v13 = vand.u32 4294901760, %v9070_v14  ;;  %v9321_v14 = vand.u32 4294901760, %v8936_v27  ;;  %v9322_v40 = vand.u32 4294901760, %v9076_v8 }
 0x181   : > { %4573 = vmatpush1.bf16.msra.mxu0 %v4572_v19  ;;  %v4578_v18 = vpack.c.bf16 %v9313_v54, %v9312_v62  ;;  %v9316_v19 = vand.u32 4294901760, %v9072_v2  ;;  %v9323_v2 = vand.u32 4294901760, %v9077_v57  ;;  %v9324_v32 = vand.u32 4294901760, %v8937_v35 }
 0x182   : > { %4575 = vmatprep.subr.bf16.mxu0 %v4574_v15  ;;  %v4960_v49 = vpack.c.bf16 %v9315_v61, %v9314_v13  ;;  %v4580_v15 = vpack.c.bf16 %v9319_v52, %v9318_v5  ;;  %v4582_v4 = vpack.c.bf16 %v9321_v14, %v9320_v55  ;;  %v9325_v38 = vand.u32 4294901760, %v8996_v20  ;;  %v9348_v13 = vld [vmem:[#allocation148_spill] sm:$0xff] }
 0x183   : > { %4957 = vmatpush1.bf16.msra.mxu1 %v4956_v21  ;;  %v4962_v30 = vpack.c.bf16 %v9317_v24, %v9316_v19  ;;  %v4964_v16 = vpack.c.bf16 %v9323_v2, %v9322_v40  ;;  %v9326_v11 = vand.u32 4294901760, %v8997_v43  ;;  %v9327_v26 = vand.u32 4294901760, %v8998_v56 }
 0x184   : > { %4959 = vmatprep.subr.bf16.mxu1 %v4958_v23  ;;  %v4966_v33 = vpack.c.bf16 %v9325_v38, %v9324_v32  ;;  %v9328_v27 = vand.u32 4294901760, %v9001_v29  ;;  %v9329_v8 = vand.u32 4294901760, %v9002_v7  ;;  %v9330_v57 = vand.u32 4294901760, %v8999_v3  ;;  %v9337_v23 = vld [vmem:[#allocation136_spill] sm:$0xff] }
 0x185   : > { %4577 = vmatpush1.bf16.msra.mxu0 %v4576_v45  ;;  %v4584_v1 = vpack.c.bf16 %v9327_v26, %v9326_v11  ;;  %v9331_v35 = vand.u32 4294901760, %v9000_v58  ;;  %v9332_v20 = vand.u32 4294901760, %v9003_v59  ;;  %v9333_v43 = vand.u32 4294901760, %v9004_v31  ;;  %v9343_v45 = vld [vmem:[#allocation139_spill] sm:$0xff] }
 0x186   : > { %4579 = vmatprep.subr.bf16.mxu0 %v4578_v18  ;;  %v4586_v21 = vpack.c.bf16 %v9329_v8, %v9328_v27  ;;  %v9334_v56 = vand.u32 4294901760, %v9005_v0  ;;  %v9335_v29 = vand.u32 4294901760, %v9006_v34  ;;  %v9336_v7 = vand.u32 4294901760, %v9009_v44 }
 0x187   : > { %4961 = vmatpush1.bf16.msra.mxu1 %v4960_v49  ;;  %v4968_v28 = vpack.c.bf16 %v9331_v35, %v9330_v57  ;;  %v4970_v50 = vpack.c.bf16 %v9333_v43, %v9332_v20  ;;  %v9338_v3 = vand.u32 4294901760, %v9337_v23  ;;  %v9339_v58 = vand.u32 4294901760, %v9007_v9  ;;  %v9378_v35 = vld [vmem:[#allocation175_spill] sm:$0xff]  ;;  %v9380_v43 = vld [vmem:[#allocation177_spill] sm:$0xff] }
 0x188   : > { %4963 = vmatprep.subr.bf16.mxu1 %v4962_v30  ;;  %v4588_v39 = vpack.c.bf16 %v9335_v29, %v9334_v56  ;;  %v9341_v59 = vand.u32 4294901760, %v9340_v22  ;;  %v9342_v31 = vand.u32 4294901760, %v9011_v63  ;;  %v9344_v0 = vand.u32 4294901760, %v9343_v45  ;;  %v9382_v56 = vld [vmem:[#allocation178_spill] sm:$0xff]  ;;  %v9388_v22 = vld [vmem:[#allocation180_spill] sm:$0xff] }
 0x189   : > { %4581 = vmatpush1.bf16.msra.mxu0 %v4580_v15  ;;  %v4590_v60 = vpack.c.bf16 %v9338_v3, %v9336_v7  ;;  %v9345_v34 = vand.u32 4294901760, %v9013_v10  ;;  %v9346_v44 = vand.u32 4294901760, %v9014_v6  ;;  %v9347_v18 = vand.u32 4294901760, %v9017_v37  ;;  %v9384_v7 = vld [vmem:[#allocation183_spill] sm:$0xff]  ;;  %v9386_v3 = vld [vmem:[#allocation184_spill] sm:$0xff] }
 0x18a   : > { %4583 = vmatprep.subr.bf16.mxu0 %v4582_v4  ;;  %v4972_v36 = vpack.c.bf16 %v9341_v59, %v9339_v58  ;;  %v4974_v62 = vpack.c.bf16 %v9344_v0, %v9342_v31  ;;  %v9349_v9 = vand.u32 4294901760, %v9348_v13  ;;  %v9350_v49 = vand.u32 4294901760, %v9091_v42  ;;  %v9362_v4 = vld [vmem:[#allocation163_spill] sm:$0xff]  ;;  %v9392_v0 = vld [vmem:[#allocation185_spill] sm:$0xff] }
 0x18b   : > { %4965 = vmatpush1.bf16.msra.mxu1 %v4964_v16  ;;  %v4592_v54 = vpack.c.bf16 %v9346_v44, %v9345_v34  ;;  %v9351_v63 = vand.u32 4294901760, %v9090_v48  ;;  %v9352_v24 = vand.u32 4294901760, %v9094_v12  ;;  %v9353_v10 = vand.u32 4294901760, %v9093_v17  ;;  %v9360_v17 = vld [vmem:[#allocation161_spill] sm:$0xff]  ;;  %v9366_v16 = vld [vmem:[#allocation166_spill] sm:$0xff]  ;;  %v9394_v34 = vld [vmem:[#allocation188_spill] sm:$0xff] }
 0x18c   : > { %4967 = vmatprep.subr.bf16.mxu1 %v4966_v33  ;;  %v4594_v61 = vpack.c.bf16 %v9349_v9, %v9347_v18  ;;  %v9354_v6 = vand.u32 4294901760, %v9096_v47  ;;  %v9355_v37 = vand.u32 4294901760, %v9022_v46  ;;  %v9356_v52 = vand.u32 4294901760, %v9025_v51  ;;  %v9364_v46 = vld [vmem:[#allocation165_spill] sm:$0xff]  ;;  %v9370_v33 = vld [vmem:[#allocation172_spill] sm:$0xff]  ;;  %v9396_v18 = vld [vmem:[#allocation190_spill] sm:$0xff] }
 0x18d   : > { %4585 = vmatpush1.bf16.msra.mxu0 %v4584_v1  ;;  %v4976_v19 = vpack.c.bf16 %v9351_v63, %v9350_v49  ;;  %v4978_v30 = vpack.c.bf16 %v9353_v10, %v9352_v24  ;;  %v9357_v42 = vand.u32 4294901760, %v9026_v25  ;;  %v9358_v48 = vand.u32 4294901760, %v9099_v53  ;;  %v9368_v25 = vld [vmem:[#allocation171_spill] sm:$0xff]  ;;  %v9374_v1 = vld [vmem:[#allocation169_spill] sm:$0xff]  ;;  %v9402_v24 = vld [vmem:[#allocation194_spill] sm:$0xff] }
 0x18e   : > { %4587 = vmatprep.subr.bf16.mxu0 %v4586_v21  ;;  %v4596_v5 = vpack.c.bf16 %v9355_v37, %v9354_v6  ;;  %v9359_v12 = vand.u32 4294901760, %v9024_v41  ;;  %v9361_v14 = vand.u32 4294901760, %v9360_v17  ;;  %v9363_v47 = vand.u32 4294901760, %v9362_v4  ;;  %v9372_v41 = vld [vmem:[#allocation168_spill] sm:$0xff]  ;;  %v9376_v21 = vld [vmem:[#allocation173_spill] sm:$0xff]  ;;  %v9398_v9 = vld [vmem:[#allocation191_spill] sm:$0xff] }
 0x18f   : > { %4969 = vmatpush1.bf16.msra.mxu1 %v4968_v28  ;;  %v4598_v15 = vpack.c.bf16 %v9357_v42, %v9356_v52  ;;  %v9365_v2 = vand.u32 4294901760, %v9364_v46  ;;  %v9367_v51 = vand.u32 4294901760, %v9366_v16  ;;  %v9369_v38 = vand.u32 4294901760, %v9368_v25  ;;  %v9400_v63 = vld [vmem:[#allocation193_spill] sm:$0xff]  ;;  %v9404_v6 = vld [vmem:[#allocation2_spill] sm:$0xff]  ;;  %v9407_v52 = vld [vmem:[#allocation8_spill] sm:$0xff] }
 0x190   : > { %4971 = vmatprep.subr.bf16.mxu1 %v4970_v50  ;;  %v4980_v55 = vpack.c.bf16 %v9359_v12, %v9358_v48  ;;  %v4982_v40 = vpack.c.bf16 %v9363_v47, %v9361_v14  ;;  %v9371_v53 = vand.u32 4294901760, %v9370_v33  ;;  %v9373_v26 = vand.u32 4294901760, %v9372_v41  ;;  %v9405_v37 = vld [vmem:[#allocation6_spill] sm:$0xff]  ;;  %v9408_v42 = vld [vmem:[#allocation111_spill] sm:$0xff]  ;;  %v9411_v12 = vld [vmem:[#allocation17_spill] sm:$0xff] }
 0x191   : > { %4589 = vmatpush1.bf16.msra.mxu0 %v4588_v39  ;;  %v4600_v32 = vpack.c.bf16 %v9367_v51, %v9365_v2  ;;  %v9375_v27 = vand.u32 4294901760, %v9374_v1  ;;  %v9377_v57 = vand.u32 4294901760, %v9376_v21  ;;  %v9379_v28 = vand.u32 4294901760, %v9378_v35  ;;  %v9410_v48 = vld [vmem:[#allocation11_spill] sm:$0xff]  ;;  %v9413_v17 = vld [vmem:[#allocation21_spill] sm:$0xff]  ;;  %v9414_v14 = vld [vmem:[#allocation186_spill] sm:$0xff] }
 0x192   : > { %4591 = vmatprep.subr.bf16.mxu0 %v4590_v60  ;;  %v4602_v11 = vpack.c.bf16 %v9371_v53, %v9369_v38  ;;  %v9381_v50 = vand.u32 4294901760, %v9380_v43  ;;  %v9383_v29 = vand.u32 4294901760, %v9382_v56  ;;  %v9385_v23 = vand.u32 4294901760, %v9384_v7  ;;  %v9415_v4 = vld [vmem:[#allocation26_spill] sm:$0xff]  ;;  %v9416_v47 = vld [vmem:[#allocation24_spill] sm:$0xff]  ;;  %v9420_v16 = vld [vmem:[#allocation35_spill] sm:$0xff] }
 0x193   : > { %4973 = vmatpush1.bf16.msra.mxu1 %v4972_v36  ;;  %v4984_v8 = vpack.c.bf16 %v9375_v27, %v9373_v26  ;;  %v4986_v20 = vpack.c.bf16 %v9379_v28, %v9377_v57  ;;  %v9387_v60 = vand.u32 4294901760, %v9386_v3  ;;  %v9389_v59 = vand.u32 4294901760, %v9388_v22  ;;  %v9390_v36 = vld [vmem:[#allocation181_spill] sm:$0xff]  ;;  %v9418_v46 = vld [vmem:[#allocation32_spill] sm:$0xff]  ;;  %v9419_v2 = vld [vmem:[#allocation38_spill] sm:$0xff] }
 0x194   : > { %4975 = vmatprep.subr.bf16.mxu1 %v4974_v62  ;;  %v4604_v39 = vpack.c.bf16 %v9383_v29, %v9381_v50  ;;  %v9391_v31 = vand.u32 4294901760, %v9390_v36  ;;  %v9393_v62 = vand.u32 4294901760, %v9392_v0  ;;  %v9395_v44 = vand.u32 4294901760, %v9394_v34  ;;  %v9421_v51 = vld [vmem:[#allocation41_spill] sm:$0xff]  ;;  %v9423_v25 = vld [vmem:[#allocation50_spill] sm:$0xff]  ;;  %v9424_v38 = vld [vmem:[#allocation47_spill] sm:$0xff] }
 0x195   : > { %4593 = vmatpush1.bf16.msra.mxu0 %v4592_v54  ;;  %v4606_v58 = vpack.c.bf16 %v9387_v60, %v9385_v23  ;;  %v9397_v13 = vand.u32 4294901760, %v9396_v18  ;;  %v9403_v10 = vand.u32 4294901760, %v9402_v24  ;;  %v9425_v33 = vld [vmem:[#allocation54_spill] sm:$0xff]  ;;  %v9426_v53 = vld [vmem:[#allocation56_spill] sm:$0xff]  ;;  %v9428_v41 = vld [vmem:[#allocation59_spill] sm:$0xff] }
 0x196   : > { %4595 = vmatprep.subr.bf16.mxu0 %v4594_v61  ;;  %v4988_v45 = vpack.c.bf16 %v9391_v31, %v9389_v59  ;;  %v4990_v54 = vpack.c.bf16 %v9395_v44, %v9393_v62  ;;  %v9399_v61 = vand.u32 4294901760, %v9398_v9  ;;  %v9429_v26 = vld [vmem:[#allocation66_spill] sm:$0xff]  ;;  %v9430_v1 = vld [vmem:[#allocation68_spill] sm:$0xff]  ;;  %v9436_v28 = vld [vmem:[#allocation83_spill] sm:$0xff] }
 0x197   : > { %4977 = vmatpush1.bf16.msra.mxu1 %v4976_v19  ;;  %v9401_v19 = vand.u32 4294901760, %v9400_v63  ;;  %v9431_v27 = vld [vmem:[#allocation74_spill] sm:$0xff]  ;;  %v9434_v57 = vld [vmem:[#allocation80_spill] sm:$0xff]  ;;  %v9440_v56 = vld [vmem:[#allocation95_spill] sm:$0xff] }
 0x198   : > { %4979 = vmatprep.subr.bf16.mxu1 %v4978_v30  ;;  %v4608_v49 = vpack.c.bf16 %v9399_v61, %v9397_v13  ;;  %v9433_v21 = vld [vmem:[#allocation78_spill] sm:$0xff]  ;;  %v9438_v43 = vld [vmem:[#allocation92_spill] sm:$0xff]  ;;  %v7367_v3 = vld [vmem:[%s8127_s3 + $0x8] sm:$0xff] }
 0x199   : > { %4597 = vmatpush1.bf16.msra.mxu0 %v4596_v5  ;;  %v4992_v30 = vpack.c.bf16 %v9403_v10, %v9401_v19  ;;  %v9406_v5 = vld [vmem:[#allocation196_spill] sm:$0xff]  ;;  %v9435_v35 = vld [vmem:[#allocation86_spill] sm:$0xff]  ;;  %v7388_v36 = vld [vmem:[%s8127_s3 + $0x18] sm:$0xff]  ;;  %v3070_v44 = vand.u32 4294901760, %v7367_v3 }
 0x19a   : > { %4599 = vmatprep.subr.bf16.mxu0 %v4598_v15  ;;  %v9409_v15 = vld [vmem:[#allocation15_spill] sm:$0xff]  ;;  %v9439_v50 = vld [vmem:[#allocation98_spill] sm:$0xff]  ;;  %v7372_v60 = vld [vmem:[%s8127_s3 + $0x90] sm:$0xff]  ;;  %v3076_v61 = vand.u32 4294901760, %v7388_v36 }
 0x19b   : > { %4981 = vmatpush1.bf16.msra.mxu1 %v4980_v55  ;;  %v9412_v55 = vld [vmem:[#allocation113_spill] sm:$0xff]  ;;  %v7351_v29 = vld [vmem:[%s8127_s3 + $0x80] sm:$0xff]  ;;  %v9442_v22 = vld [vmem:[#allocation104_spill] sm:$0xff] }
 0x19c   : > { %4983 = vmatprep.subr.bf16.mxu1 %v4982_v40  ;;  %v9417_v40 = vld [vmem:[#allocation29_spill] sm:$0xff]  ;;  %v7361_v7 = vld [vmem:[%s8127_s3] sm:$0xff]  ;;  %v7383_v59 = vld [vmem:[%s8127_s3 + $0x10] sm:$0xff] }
 0x19d   : > { %4601 = vmatpush1.bf16.msra.mxu0 %v4600_v32  ;;  %v9422_v32 = vld [vmem:[#allocation45_spill] sm:$0xff]  ;;  %v9441_v23 = vld [vmem:[#allocation102_spill] sm:$0xff]  ;;  %v9444_v62 = vld [vmem:[#allocation107_spill] sm:$0xff]  ;;  %v3067_v34 = vand.u32 4294901760, %v7361_v7  ;;  %v3073_v9 = vand.u32 4294901760, %v7383_v59 }
 0x19e   : > { %4603 = vmatprep.subr.bf16.mxu0 %v4602_v11  ;;  %v9427_v11 = vld [vmem:[#allocation62_spill] sm:$0xff]  ;;  %v9448_v10 = vld [vmem:[#allocation119_spill] sm:$0xff] }
 0x19f   : > { %4985 = vmatpush1.bf16.msra.mxu1 %v4984_v8  ;;  %v9432_v8 = vld [vmem:[#allocation71_spill] sm:$0xff]  ;;  %v9443_v31 = vld [vmem:[#allocation110_spill] sm:$0xff] }
 0x1a0   : > { %4987 = vmatprep.subr.bf16.mxu1 %v4986_v20  ;;  %v9437_v20 = vld [vmem:[#allocation90_spill] sm:$0xff] }
 0x1a1   : > { %4605 = vmatpush1.bf16.msra.mxu0 %v4604_v39  ;;  %v7356_v39 = vld [vmem:[%s8127_s3 + $0x88] sm:$0xff]  ;;  %v9445_v13 = vld [vmem:[#allocation114_spill] sm:$0xff] }
 0x1a2   : > { %4607 = vmatprep.subr.bf16.mxu0 %v4606_v58  ;;  %v7377_v58 = vld [vmem:[%s8127_s3 + $0x98] sm:$0xff]  ;;  %v3118_v0 = vand.u32 4294901760, %v7356_v39  ;;  %v9447_v63 = vld [vmem:[#allocation122_spill] sm:$0xff] }
 0x1a3   : > { %4989 = vmatpush1.bf16.msra.mxu1 %v4988_v45  ;;  %v3115_v45 = vand.u32 4294901760, %v7351_v29  ;;  %v3124_v18 = vand.u32 4294901760, %v7377_v58 }
 0x1a4   : > { %4991 = vmatprep.subr.bf16.mxu1 %v4990_v54  ;;  %v3121_v54 = vand.u32 4294901760, %v7372_v60  ;;  %v7411_v24 = vsub.f32 %v7356_v39, %v3118_v0  ;;  %v7611_v39 = vld [vmem:[%s8127_s3 + $0x48] sm:$0xff] }
 0x1a5   : > { %4609 = vmatpush1.bf16.msra.mxu0 %v4608_v49  ;;  %v9446_v49 = vld [vmem:[#allocation116_spill] sm:$0xff]  ;;  %v7406_v19 = vsub.f32 %v7351_v29, %v3115_v45  ;;  %v7606_v29 = vld [vmem:[%s8127_s3 + $0x40] sm:$0xff] }
 0x1a6   : > { %4611 = vmatprep.subr.bf16.mxu0 %v9404_v6  ;;  %v7422_v6 = vsub.f32 %v7367_v3, %v3070_v44 }
 0x1a7   : > { %4993 = vmatpush1.bf16.msra.mxu1 %v4992_v30  ;;  %v7417_v30 = vsub.f32 %v7361_v7, %v3067_v34 }
 0x1a8   : > { %4995 = vmatprep.subr.bf16.mxu1 %v9405_v37  ;;  %1453 = vmatmul.mubr.f32.vlgmr.msra.gmra.mrb[0].mxu0 %v9406_v5  ;;  %v7427_v37 = vsub.f32 %v7372_v60, %v3121_v54 }
 0x1a9   : > { %4613 = vmatpush1.bf16.msra.mxu0 %v9407_v52  ;;  %1459 = vmatprep.mubr.f32.mxu0 %v9408_v42  ;;  %v7432_v52 = vsub.f32 %v7377_v58, %v3124_v18 }
 0x1aa   : > { %2863 = vmatmul.mubr.f32.vlgmr.msra.gmra.mrb[0].mxu1 %v9406_v5  ;;  %4615 = vmatprep.subr.bf16.mxu0 %v9409_v15  ;;  %v9449_v15 = vld [vmem:[#allocation126_spill] sm:$0xff] }
 0x1ab   : > { %4997 = vmatpush1.bf16.msra.mxu1 %v9410_v48  ;;  %2869 = vmatprep.mubr.f32.mxu1 %v9408_v42  ;;  %v7438_v48 = vsub.f32 %v7383_v59, %v3073_v9 }
 0x1ac   : > { %4999 = vmatprep.subr.bf16.mxu1 %v9411_v12  ;;  %1461 = vmatmul.mubr.f32.gmra.mrb[2].mxu0 %v9412_v55  ;;  %v7443_v12 = vsub.f32 %v7388_v36, %v3076_v61 }
 0x1ad   : > { %4617 = vmatpush1.bf16.msra.mxu0 %v9413_v17  ;;  %1596 = vmatprep.mubr.f32.mxu0 %v9414_v14  ;;  %v9450_v17 = vld [vmem:[#allocation128_spill] sm:$0xff] }
 0x1ae   : > { %4619 = vmatprep.subr.bf16.mxu0 %v9415_v4  ;;  %2871 = vmatmul.mubr.f32.gmra.mrb[2].mxu1 %v9412_v55  ;;  %v8654_v4 = vand.u32 4294901760, %v7406_v19 }
 0x1af   : > { %5001 = vmatpush1.bf16.msra.mxu1 %v9416_v47  ;;  %3006 = vmatprep.mubr.f32.mxu1 %v9414_v14  ;;  %v9451_v14 = vld [vmem:[#allocation134_spill] sm:$0xff]  ;;  %v8653_v47 = vand.u32 4294901760, %v7411_v24 }
 0x1b0   : > { %5003 = vmatprep.subr.bf16.mxu1 %v9417_v40  ;;  %v7452_v40 = vld [vmem:[%s8127_s3 + $0xa0] sm:$0xff] }
 0x1b1   : > { %4621 = vmatpush1.bf16.msra.mxu0 %v9418_v46  ;;  %v7457_v46 = vld [vmem:[%s8127_s3 + $0xa8] sm:$0xff] }
 0x1b2   : > { %4623 = vmatprep.subr.bf16.mxu0 %v9419_v2  ;;  %v9452_v2 = vld [vmem:[#allocation131_spill] sm:$0xff] }
 0x1b3   : > { %5005 = vmatpush1.bf16.msra.mxu1 %v9420_v16  ;;  %v8652_v16 = vand.u32 4294901760, %v7417_v30 }
 0x1b4   : > { %5007 = vmatprep.subr.bf16.mxu1 %v9421_v51  ;;  %v8651_v51 = vand.u32 4294901760, %v7422_v6 }
 0x1b5   : > { %4625 = vmatpush1.bf16.msra.mxu0 %v9422_v32  ;;  %v8650_v32 = vand.u32 4294901760, %v7427_v37 }
 0x1b6   : > { %4627 = vmatprep.subr.bf16.mxu0 %v9423_v25  ;;  %v8649_v25 = vand.u32 4294901760, %v7432_v52 }
 0x1b7   : > { %5009 = vmatpush1.bf16.msra.mxu1 %v9424_v38  ;;  %v9453_v38 = vld [vmem:[#allocation138_spill] sm:$0xff] }
 0x1b8   : > { %5011 = vmatprep.subr.bf16.mxu1 %v9425_v33  ;;  %v8648_v33 = vand.u32 4294901760, %v7438_v48 }
 0x1b9   : > { %4629 = vmatpush1.bf16.msra.mxu0 %v9426_v53  ;;  %v8647_v53 = vand.u32 4294901760, %v7443_v12 }
 0x1ba   : > { %4631 = vmatprep.subr.bf16.mxu0 %v9427_v11  ;;  %v9454_v11 = vld [vmem:[#allocation140_spill] sm:$0xff] }
 0x1bb   : > { %5013 = vmatpush1.bf16.msra.mxu1 %v9428_v41  ;;  %v3127_v41 = vand.u32 4294901760, %v7452_v40 }
 0x1bc   : > { %5015 = vmatprep.subr.bf16.mxu1 %v9429_v26  ;;  %v3130_v26 = vand.u32 4294901760, %v7457_v46 }
 0x1bd   : > { %4633 = vmatpush1.bf16.msra.mxu0 %v9430_v1  ;;  %v9455_v1 = vld [vmem:[#allocation146_spill] sm:$0xff] }
 0x1be   : > { %4635 = vmatprep.subr.bf16.mxu0 %v9431_v27  ;;  %v3309_v27 = vsub.f32 %v7406_v19, %v8654_v4 }
 0x1bf   : > { %5017 = vmatpush1.bf16.msra.mxu1 %v9432_v8  ;;  %v3316_v8 = vsub.f32 %v7411_v24, %v8653_v47  ;;  %v9464_v47 = vld [vmem:[#allocation167_spill] sm:$0xff] }
 0x1c0   : > { %5019 = vmatprep.subr.bf16.mxu1 %v9433_v21  ;;  %v7480_v21 = vld [vmem:[%s8127_s3 + $0x20] sm:$0xff] }
 0x1c1   : > { %4637 = vmatpush1.bf16.msra.mxu0 %v9434_v57  ;;  %v7485_v57 = vld [vmem:[%s8127_s3 + $0x28] sm:$0xff] }
 0x1c2   : > { %4639 = vmatprep.subr.bf16.mxu0 %v9435_v35  ;;  %v9456_v35 = vld [vmem:[#allocation143_spill] sm:$0xff] }
 0x1c3   : > { %5021 = vmatpush1.bf16.msra.mxu1 %v9436_v28  ;;  %v3197_v28 = vsub.f32 %v7417_v30, %v8652_v16 }
 0x1c4   : > { %5023 = vmatprep.subr.bf16.mxu1 %v9437_v20  ;;  %v3204_v20 = vsub.f32 %v7422_v6, %v8651_v51 }
 0x1c5   : > { %4641 = vmatpush1.bf16.msra.mxu0 %v9438_v43  ;;  %v3323_v43 = vsub.f32 %v7427_v37, %v8650_v32  ;;  %v9462_v32 = vld [vmem:[#allocation164_spill] sm:$0xff] }
 0x1c6   : > { %4643 = vmatprep.subr.bf16.mxu0 %v9439_v50  ;;  %v3330_v50 = vsub.f32 %v7432_v52, %v8649_v25 }
 0x1c7   : > { %5025 = vmatpush1.bf16.msra.mxu1 %v9440_v56  ;;  %v7503_v56 = vld [vmem:[%s8127_s3 + $0xb0] sm:$0xff] }
 0x1c8   : > { %5027 = vmatprep.subr.bf16.mxu1 %v9441_v23  ;;  %v7508_v23 = vld [vmem:[%s8127_s3 + $0xb8] sm:$0xff] }
 0x1c9   : > { %4645 = vmatpush1.bf16.msra.mxu0 %v9442_v22  ;;  %v9457_v22 = vld [vmem:[#allocation150_spill] sm:$0xff] }
 0x1ca   : > { %4647 = vmatprep.subr.bf16.mxu0 %v9443_v31  ;;  %v3211_v31 = vsub.f32 %v7438_v48, %v8648_v33  ;;  %v7537_v33 = vld [vmem:[%s8127_s3 + $0x30] sm:$0xff] }
 0x1cb   : > { %5029 = vmatpush1.bf16.msra.mxu1 %v9444_v62  ;;  %v3218_v62 = vsub.f32 %v7443_v12, %v8647_v53  ;;  %v3331_v53 = vand.u32 4294901760, %v3330_v50  ;;  %v8664_v51 = vand.u32 4294901760, %v7537_v33 }
 0x1cc   : > { %5031 = vmatprep.subr.bf16.mxu1 %v9445_v13  ;;  %v9458_v13 = vld [vmem:[#allocation152_spill] sm:$0xff] }
 0x1cd   : > { %4649 = vmatpush1.bf16.msra.mxu0 %v9446_v49  ;;  %v7521_v49 = vsub.f32 %v7452_v40, %v3127_v41  ;;  %v3219_v25 = vand.u32 4294901760, %v3218_v62  ;;  %v9463_v62 = vld [vmem:[#allocation170_spill] sm:$0xff] }
 0x1ce   : > { %4651 = vmatprep.subr.bf16.mxu0 %v9447_v63  ;;  %v7526_v63 = vsub.f32 %v7457_v46, %v3130_v26 }
 0x1cf   : > { %5033 = vmatpush1.bf16.msra.mxu1 %v9448_v10  ;;  %v8657_v10 = vand.u32 4294901760, %v7480_v21 }
 0x1d0   : > { %5035 = vmatprep.subr.bf16.mxu1 %v9449_v15  ;;  %v8655_v15 = vand.u32 4294901760, %v7485_v57 }
 0x1d1   : > { %4653 = vmatpush1.bf16.msra.mxu0 %v9450_v17  ;;  %v9459_v17 = vld [vmem:[#allocation158_spill] sm:$0xff] }
 0x1d2   : > { %4655 = vmatprep.subr.bf16.mxu0 %v9451_v14  ;;  %v3310_v14 = vand.u32 4294901760, %v3309_v27  ;;  %v7542_v27 = vld [vmem:[%s8127_s3 + $0x38] sm:$0xff]  ;;  %v7556_v50 = vsub.f32 %v7485_v57, %v8655_v15 }
 0x1d3   : > { %5037 = vmatpush1.bf16.msra.mxu1 %v9452_v2  ;;  %v3317_v2 = vand.u32 4294901760, %v3316_v8  ;;  %v9461_v8 = vld [vmem:[#allocation162_spill] sm:$0xff]  ;;  %v8661_v16 = vand.u32 4294901760, %v7542_v27 }
 0x1d4   : > { %5039 = vmatprep.subr.bf16.mxu1 %v9453_v38  ;;  %v8656_v38 = vand.u32 4294901760, %v7503_v56 }
 0x1d5   : > { %4657 = vmatpush1.bf16.msra.mxu0 %v9454_v11  ;;  %v8658_v11 = vand.u32 4294901760, %v7508_v23  ;;  %v5090_v4 = vpack.c.bf16 %v3317_v2, %v3310_v14 }
 0x1d6   : > { %4659 = vmatprep.subr.bf16.mxu0 %v9455_v1  ;;  %v9460_v1 = vld [vmem:[#allocation155_spill] sm:$0xff] }
 0x1d7   : > { %5041 = vmatpush1.bf16.msra.mxu1 %v9456_v35  ;;  %v3198_v35 = vand.u32 4294901760, %v3197_v28  ;;  %v8660_v28 = vand.u32 4294901760, %v7521_v49 }
 0x1d8   : > { %5043 = vmatprep.subr.bf16.mxu1 %v9457_v22  ;;  %v3205_v22 = vand.u32 4294901760, %v3204_v20  ;;  %v8659_v20 = vand.u32 4294901760, %v7526_v63 }
 0x1d9   : > { %4661 = vmatpush1.bf16.msra.mxu0 %v9458_v13  ;;  %v3324_v13 = vand.u32 4294901760, %v3323_v43  ;;  %v7551_v43 = vsub.f32 %v7480_v21, %v8657_v10  ;;  %v9465_v10 = vld [vmem:[#allocation174_spill] sm:$0xff]  ;;  %v3337_v7 = vsub.f32 %v7521_v49, %v8660_v28  ;;  %v8670_v28 = vand.u32 4294901760, %v7611_v39 }
 0x1da   : > { %4663 = vmatprep.subr.bf16.mxu0 %v9459_v17  ;;  %v3212_v17 = vand.u32 4294901760, %v3211_v31  ;;  %v7561_v31 = vld [vmem:[%s8127_s3 + $0xc0] sm:$0xff]  ;;  %v7582_v15 = vpack.c.bf16 %v3205_v22, %v3198_v35  ;;  %v3344_v3 = vsub.f32 %v7526_v63, %v8659_v20  ;;  %v7638_v22 = vsub.f32 %v7537_v33, %v8664_v51  ;;  %v9473_v51 = vld [vmem:[#allocation192_spill] sm:$0xff] }
 0x1db   : > { %5045 = vmatpush1.bf16.msra.mxu1 %v9460_v1  ;;  %v7572_v1 = vsub.f32 %v7503_v56, %v8656_v38  ;;  %v7590_v38 = vpack.c.bf16 %v3118_v0, %v3115_v45  ;;  %v8663_v14 = vand.u32 4294901760, %v7561_v31  ;;  %v9466_v45 = vld [vmem:[#allocation176_spill] sm:$0xff]  ;;  %v8666_v0 = vand.u32 4294901760, %v7551_v43 }
 0x1dc   : > { %5047 = vmatprep.subr.bf16.mxu1 %v9461_v8  ;;  %v7577_v8 = vsub.f32 %v7508_v23, %v8658_v11  ;;  %v7593_v11 = vpack.c.bf16 %v3219_v25, %v3212_v17  ;;  %v7630_v25 = vld [vmem:[%s8127_s3 + $0xd8] sm:$0xff]  ;;  %v9468_v17 = vld [vmem:[#allocation179_spill] sm:$0xff]  ;;  %v8669_v20 = vand.u32 4294901760, %v7606_v29 }
 0x1dd   : > { %4665 = vmatpush1.bf16.msra.mxu0 %v9462_v32  ;;  %v7566_v32 = vld [vmem:[%s8127_s3 + $0xc8] sm:$0xff]  ;;  %v8667_v2 = vand.u32 4294901760, %v7572_v1  ;;  %v7664_v60 = vsub.f32 %v7561_v31, %v8663_v14  ;;  %v8672_v36 = vand.u32 4294901760, %v7630_v25 }
 0x1de   : > { %4667 = vmatprep.subr.bf16.mxu0 %v9463_v62  ;;  %v7584_v62 = vpack.c.bf16 %v3331_v53, %v3324_v13  ;;  %v8662_v53 = vand.u32 4294901760, %v7566_v32  ;;  %v8668_v35 = vand.u32 4294901760, %v7577_v8  ;;  %v7643_v13 = vsub.f32 %v7542_v27, %v8661_v16  ;;  %v9469_v16 = vld [vmem:[#allocation187_spill] sm:$0xff] }
 0x1df   : > { %5049 = vmatpush1.bf16.msra.mxu1 %v9464_v47  ;;  %v7599_v47 = vpack.c.bf16 %v3070_v44, %v3067_v34  ;;  %v8665_v34 = vand.u32 4294901760, %v7556_v50  ;;  %v7625_v44 = vld [vmem:[%s8127_s3 + $0xd0] sm:$0xff]  ;;  %9470 = vst [vmem:[#allocation115_spill] sm:$0xff] %v7664_v60  ;;  %v3351_v14 = vsub.f32 %v7572_v1, %v8667_v2 }
 0x1e0   : > { %5051 = vmatprep.subr.bf16.mxu1 %v9465_v10  ;;  %v9467_v10 = vld [vmem:[#allocation182_spill] sm:$0xff]  ;;  %v7669_v58 = vsub.f32 %v7566_v32, %v8662_v53  ;;  %v8671_v59 = vand.u32 4294901760, %v7625_v44 }
 0x1e1   : > { %4669 = vmatpush1.bf16.msra.mxu0 %v9466_v45  ;;  %v7650_v45 = vpack.c.bf16 %v3124_v18, %v3121_v54  ;;  %v7676_v54 = vld [vmem:[%s8127_s3 + $0x50] sm:$0xff]  ;;  %v7681_v18 = vld [vmem:[%s8127_s3 + $0x58] sm:$0xff]  ;;  %v3232_v53 = vsub.f32 %v7556_v50, %v8665_v34  ;;  %v7703_v34 = vsub.f32 %v7606_v29, %v8669_v20 }
 0x1e2   : > { %4671 = vmatprep.subr.bf16.mxu0 %v9467_v10  ;;  %v7656_v10 = vpack.c.bf16 %v3076_v61, %v3073_v9  ;;  %9471 = vst [vmem:[#allocation117_spill] sm:$0xff] %v7669_v58  ;;  %v9472_v9 = vld [vmem:[#allocation189_spill] sm:$0xff]  ;;  %v3338_v61 = vand.u32 4294901760, %v3337_v7  ;;  %v8673_v7 = vand.u32 4294901760, %v7638_v22  ;;  %v7718_v20 = vsub.f32 %v7625_v44, %v8671_v59 }
 0x1e3   : > { %5053 = vmatpush1.bf16.msra.mxu1 %v9468_v17  ;;  %v3225_v17 = vsub.f32 %v7551_v43, %v8666_v0  ;;  %9474 = vst [vmem:[#allocation118_spill] sm:$0xff] %v7703_v34  ;;  %v7708_v0 = vsub.f32 %v7611_v39, %v8670_v28  ;;  %v7723_v28 = vsub.f32 %v7630_v25, %v8672_v36  ;;  %v3233_v2 = vand.u32 4294901760, %v3232_v53 }
 0x1e4   : > { %5055 = vmatprep.subr.bf16.mxu1 %v9469_v16  ;;  %v3345_v16 = vand.u32 4294901760, %v3344_v3  ;;  %v8674_v3 = vand.u32 4294901760, %v7664_v60  ;;  %9476 = vst [vmem:[#allocation121_spill] sm:$0xff] %v7718_v20  ;;  %v3352_v59 = vand.u32 4294901760, %v3351_v14  ;;  %v9479_v46 = vand.u32 4294901760, %v7676_v54 }
 0x1e5   : > { %4673 = vmatpush1.bf16.msra.mxu0 %v9472_v9  ;;  %v3358_v9 = vsub.f32 %v7577_v8, %v8668_v35  ;;  %9475 = vst [vmem:[#allocation120_spill] sm:$0xff] %v7708_v0  ;;  %9477 = vst [vmem:[#allocation123_spill] sm:$0xff] %v7723_v28 }
 0x1e6   : > { %5059 = vmatprep.subr.bf16.mxu0 %v7590_v38  ;;  %v5098_v35 = vpack.c.bf16 %v3345_v16, %v3338_v61  ;;  %v3239_v61 = vsub.f32 %v7638_v22, %v8673_v7  ;;  %v9478_v16 = vand.u32 4294901760, %v7643_v13  ;;  %v9485_v7 = vand.u32 4294901760, %v7485_v57 }
 0x1e7   : > { %5057 = vmatpush1.bf16.msra.mxu1 %v9473_v51  ;;  %v7731_v51 = vpack.c.bf16 %v3130_v26, %v3127_v41  ;;  %v3359_v36 = vand.u32 4294901760, %v3358_v9  ;;  %v7748_v41 = vsub.f32 %v7676_v54, %v9479_v46  ;;  %v9481_v26 = vand.u32 4294901760, %v7681_v18 }
 0x1e8   : > { %1598 = vmatmul.mubr.f32.vlgmr.msra.gmra.mrb[0].mxu0 %v9406_v5  ;;  %5091 = vmatprep.subr.bf16.mxu1 %v5090_v4  ;;  %v3226_v4 = vand.u32 4294901760, %v3225_v17  ;;  %v3246_v53 = vsub.f32 %v7643_v13, %v9478_v16  ;;  %v8677_v9 = vand.u32 4294901760, %v7718_v20  ;;  %v9487_v16 = vand.u32 4294901760, %v7508_v23 }
 0x1e9   : > { %1604 = vmatprep.mubr.f32.mxu0 %v9408_v42  ;;  %5061 = vmatpush3.bf16.msra.mxu0 %v7599_v47  ;;  %9480 = vst [vmem:[#allocation124_spill] sm:$0xff] %v7748_v41  ;;  %v7753_v14 = vsub.f32 %v7681_v18, %v9481_v26  ;;  %v9484_v26 = vand.u32 4294901760, %v7480_v21  ;;  %v9488_v21 = vand.u32 4294901760, %v7703_v34 }
 0x1ea   : > { %3008 = vmatmul.mubr.f32.vlgmr.msra.gmra.mrb[0].mxu1 %v9406_v5  ;;  %5063 = vmatprep.subr.bf16.mxu0 %v7650_v45  ;;  %v5100_v46 = vpack.c.bf16 %v3233_v2, %v3226_v4  ;;  %v3240_v5 = vand.u32 4294901760, %v3239_v61  ;;  %v3247_v40 = vand.u32 4294901760, %v3246_v53  ;;  %v3379_v23 = vsub.f32 %v7718_v20, %v8677_v9 }
 0x1eb   : > { %3014 = vmatprep.mubr.f32.mxu1 %v9408_v42  ;;  %5093 = vmatpush3.bf16.msra.mxu1 %v7582_v15  ;;  %9482 = vst [vmem:[#allocation125_spill] sm:$0xff] %v7753_v14  ;;  %v3365_v42 = vsub.f32 %v7664_v60, %v8674_v3  ;;  %v9483_v15 = vand.u32 4294901760, %v7669_v58  ;;  %v5102_v3 = vpack.c.bf16 %v3359_v36, %v3352_v59  ;;  %v8676_v59 = vand.u32 4294901760, %v7748_v41 }
 0x1ec   : > { %1606 = vmatmul.mubr.f32.gmra.mrb[2].mxu0 %v9412_v55  ;;  %5095 = vmatprep.subr.bf16.mxu1 %v7584_v62  ;;  %v7770_v62 = vpack.c.bf16 %v9485_v7, %v9484_v26  ;;  %v3253_v57 = vsub.f32 %v7703_v34, %v9488_v21  ;;  %v9489_v7 = vand.u32 4294901760, %v7708_v0  ;;  %v8675_v36 = vand.u32 4294901760, %v7753_v14 }
 0x1ed   : > { %v3372_v17 = vsub.f32 %v7669_v58, %v9483_v15  ;;  %5065 = vmatpush3.bf16.msra.mxu0 %v7656_v10  ;;  %v9486_v15 = vand.u32 4294901760, %v7503_v56  ;;  %v3366_v56 = vand.u32 4294901760, %v3365_v42  ;;  %v9491_v53 = vand.u32 4294901760, %v7537_v33 }
 0x1ee   : > { %3016 = vmatmul.mubr.f32.gmra.mrb[2].mxu1 %v9412_v55  ;;  %5067 = vmatprep.subr.bf16.mxu0 %v7731_v51  ;;  %v3260_v55 = vsub.f32 %v7708_v0, %v9489_v7  ;;  %v3274_v21 = vsub.f32 %v7753_v14, %v8675_v36  ;;  %v3380_v7 = vand.u32 4294901760, %v3379_v23  ;;  %v7825_v23 = vld [vmem:[%s8127_s3 + $0x60] sm:$0xff]  ;;  %v9493_v60 = vand.u32 4294901760, %v7561_v31 }
 0x1ef   : > { %v7778_v2 = vpack.c.bf16 %v9487_v16, %v9486_v15  ;;  %5097 = vmatpush3.bf16.msra.mxu1 %v7593_v11  ;;  %v3373_v4 = vand.u32 4294901760, %v3372_v17  ;;  %v9490_v11 = vand.u32 4294901760, %v7723_v28  ;;  %v9492_v16 = vand.u32 4294901760, %v7542_v27 }
 0x1f0   : > { %5099 = vmatprep.subr.bf16.mxu1 %v5098_v35  ;;  %v5104_v15 = vpack.c.bf16 %v3247_v40, %v3240_v5  ;;  %v3254_v35 = vand.u32 4294901760, %v3253_v57  ;;  %v3261_v42 = vand.u32 4294901760, %v3260_v55  ;;  %v3267_v17 = vsub.f32 %v7748_v41, %v8676_v59 }
 0x1f1   : > { %v3386_v61 = vsub.f32 %v7723_v28, %v9490_v11  ;;  %5069 = vmatpush3.bf16.msra.mxu0 %v7770_v62  ;;  %v7800_v26 = vpack.c.bf16 %v9492_v16, %v9491_v53  ;;  %v5106_v33 = vpack.c.bf16 %v3373_v4, %v3366_v56  ;;  %v7813_v11 = vld [vmem:[%s8127_s3 + $0xe0] sm:$0xff]  ;;  %v3103_v53 = vand.u32 4294901760, %v7825_v23 }
 0x1f2   : > { %5071 = vmatprep.subr.bf16.mxu0 %v7778_v2  ;;  %v5108_v40 = vpack.c.bf16 %v3261_v42, %v3254_v35  ;;  %v3268_v5 = vand.u32 4294901760, %v3267_v17  ;;  %v3151_v56 = vand.u32 4294901760, %v7813_v11 }
 0x1f3   : > { %5101 = vmatpush3.bf16.msra.mxu1 %v5100_v46  ;;  %v3387_v27 = vand.u32 4294901760, %v3386_v61  ;;  %v3275_v46 = vand.u32 4294901760, %v3274_v21  ;;  %v3047_v61 = vld [vmem:[%s8127_s3 + $0x68] sm:$0xff]  ;;  %v7838_v42 = vsub.f32 %v7825_v23, %v3103_v53  ;;  %v3064_v21 = vld [vmem:[%s8127_s3 + $0xf0] sm:$0xff] }
 0x1f4   : > { %5103 = vmatprep.subr.bf16.mxu1 %v5102_v3  ;;  %v7818_v3 = vld [vmem:[%s8127_s3 + $0xe8] sm:$0xff]  ;;  %v3106_v16 = vand.u32 4294901760, %v3047_v61 }
 0x1f5   : > { %5073 = vmatpush3.bf16.msra.mxu0 %v7800_v26  ;;  %v5110_v57 = vpack.c.bf16 %v3387_v27, %v3380_v7  ;;  %v5112_v55 = vpack.c.bf16 %v3275_v46, %v3268_v5  ;;  %v3154_v4 = vand.u32 4294901760, %v7818_v3  ;;  %v3048_v46 = vld [vmem:[%s8127_s3 + $0x70] sm:$0xff] }
 0x1f6   : > { %v7840_v17 = vsub.f32 %v3047_v61, %v3106_v16 }
 0x1f7   : > { %5105 = vmatpush3.bf16.msra.mxu1 %v5104_v15  ;;  %v7832_v15 = vsub.f32 %v7813_v11, %v3151_v56  ;;  %v7835_v35 = vsub.f32 %v7818_v3, %v3154_v4  ;;  %v3109_v3 = vand.u32 4294901760, %v3048_v46 }
 0x1f8   : > { %5107 = vmatprep.subr.bf16.mxu1 %v5106_v33  ;;  %v3065_v33 = vld [vmem:[%s8127_s3 + $0xf8] sm:$0xff]  ;;  %v8697_v11 = vand.u32 4294901760, %v7840_v17 }
 0x1f9   : > { %v8686_v7 = vand.u32 4294901760, %v7832_v15  ;;  %v8689_v27 = vand.u32 4294901760, %v7835_v35  ;;  %v3160_v5 = vand.u32 4294901760, %v3065_v33  ;;  %v7874_v28 = vsub.f32 %v3048_v46, %v3109_v3 }
 0x1fa   : > { %v3288_v41 = vsub.f32 %v7840_v17, %v8697_v11  ;;  %v9494_v11 = vand.u32 4294901760, %v7566_v32 }
 0x1fb   : > { %5109 = vmatpush3.bf16.msra.mxu1 %v5108_v40  ;;  %v3157_v40 = vand.u32 4294901760, %v3064_v21  ;;  %v3393_v61 = vsub.f32 %v7832_v15, %v8686_v7  ;;  %v3400_v36 = vsub.f32 %v7835_v35, %v8689_v27  ;;  %v7866_v9 = vsub.f32 %v3065_v33, %v3160_v5 }
 0x1fc   : > { %5111 = vmatprep.subr.bf16.mxu1 %v5110_v57  ;;  %v3049_v57 = vld [vmem:[%s8127_s3 + $0x78] sm:$0xff]  ;;  %v3289_v34 = vand.u32 4294901760, %v3288_v41  ;;  %v8698_v58 = vand.u32 4294901760, %v7874_v28  ;;  %v7886_v46 = vpack.c.bf16 %v9494_v11, %v9493_v60  ;;  %v9495_v41 = vand.u32 4294901760, %v7606_v29 }
 0x1fd   : > { %v3112_v23 = vand.u32 4294901760, %v3049_v57  ;;  %v7864_v59 = vsub.f32 %v3064_v21, %v3157_v40  ;;  %v3394_v7 = vand.u32 4294901760, %v3393_v61  ;;  %v3401_v0 = vand.u32 4294901760, %v3400_v36 }
 0x1fe   : > { %v8699_v21 = vand.u32 4294901760, %v7866_v9  ;;  %v9496_v61 = vand.u32 4294901760, %v7611_v39  ;;  %v3295_v32 = vsub.f32 %v7874_v28, %v8698_v58  ;;  %5075 = vmatprep.subr.bf16.mxu0 %v7886_v46  ;;  %v9500_v58 = vand.u32 4294901760, %v7676_v54 }
 0x1ff   : > { %5113 = vmatpush3.bf16.msra.mxu1 %v5112_v55  ;;  %v8694_v55 = vand.u32 4294901760, %v7838_v42  ;;  %v7876_v20 = vsub.f32 %v3049_v57, %v3112_v23  ;;  %v8700_v27 = vand.u32 4294901760, %v7864_v59  ;;  %v5114_v57 = vpack.c.bf16 %v3401_v0, %v3394_v7 }
 0x200   : > { %v3296_v29 = vand.u32 4294901760, %v3295_v32  ;;  %v5122_v54 = vpack.c.bf16 %v7411_v24, %v7406_v19 }
 0x201   : > { %v3281_v14 = vsub.f32 %v7838_v42, %v8694_v55  ;;  %v3407_v36 = vsub.f32 %v7864_v59, %v8700_v27  ;;  %v7898_v55 = vpack.c.bf16 %v9496_v61, %v9495_v41  ;;  %v9497_v0 = vand.u32 4294901760, %v7876_v20  ;;  %5115 = vmatprep.subr.bf16.mxu1 %v5114_v57 }
 0x203   : > { %v3282_v33 = vand.u32 4294901760, %v3281_v14  ;;  %v3414_v14 = vsub.f32 %v7866_v9, %v8699_v21  ;;  %v3302_v60 = vsub.f32 %v7876_v20, %v9497_v0  ;;  %v3408_v7 = vand.u32 4294901760, %v3407_v36  ;;  %5077 = vmatpush3.bf16.msra.mxu0 %v7898_v55 }
 0x204   : > { %v9501_v0 = vand.u32 4294901760, %v7681_v18  ;;  %v7922_v36 = vpack.c.bf16 %v3154_v4, %v3151_v56  ;;  %v5146_v18 = vpack.c.bf16 %v7835_v35, %v7832_v15  ;;  %v9509_v4 = vld [vmem:[#allocation125_spill] sm:$0xff] }
 0x205   : > { %v5116_v31 = vpack.c.bf16 %v3289_v34, %v3282_v33  ;;  %v3415_v11 = vand.u32 4294901760, %v3414_v14  ;;  %v3303_v39 = vand.u32 4294901760, %v3302_v60  ;;  %v9498_v34 = vand.u32 4294901760, %v7625_v44 }
 0x206   : > { %v9499_v33 = vand.u32 4294901760, %v7630_v25  ;;  %v7918_v21 = vpack.c.bf16 %v9501_v0, %v9500_v58  ;;  %v7925_v44 = vpack.c.bf16 %v3106_v16, %v3103_v53  ;;  %v7929_v25 = vpack.c.bf16 %v3160_v5, %v3157_v40 }
 0x207   : > { %5117 = vmatpush3.bf16.msra.mxu1 %v5116_v31  ;;  %v5118_v61 = vpack.c.bf16 %v3415_v11, %v3408_v7  ;;  %v5120_v57 = vpack.c.bf16 %v3303_v39, %v3296_v29  ;;  %v7931_v58 = vpack.c.bf16 %v3112_v23, %v3109_v3  ;;  %v5130_v53 = vpack.c.bf16 %v7526_v63, %v7521_v49 }
 0x208   : > { %v7912_v41 = vpack.c.bf16 %v9499_v33, %v9498_v34 }
 0x209   : > { %5119 = vmatprep.subr.bf16.mxu1 %v5118_v61 }
 0x20a   : > { %5079 = vmatprep.subr.bf16.mxu0 %v7912_v41 }
 0x20b   : > { %5081 = vmatpush3.bf16.msra.mxu0 %v7918_v21  ;;  %5121 = vmatpush3.bf16.msra.mxu1 %v5120_v57 }
 0x20c   : > { %5155 = vmatprep.subr.bf16.mxu1 %v7590_v38  ;;  %5083 = vmatprep.subr.bf16.mxu0 %v7922_v36 }
 0x20f   : > { %5085 = vmatpush3.bf16.msra.mxu0 %v7925_v44 }
 0x210   : > { %5087 = vmatprep.subr.bf16.mxu0 %v7929_v25 }
 0x213   : > { %5089 = vmatpush3.bf16.msra.mxu0 %v7931_v58 }
 0x214   : > { %5123 = vmatprep.subr.bf16.mxu0 %v5122_v54 }
 0x2bb   : > { %v1599_v16 = vpop.f32.mrb[0].mxu0 }
 0x2bc   : > { %v3022_v40 = vmul.f32 %v1599_v16, %v1599_v16  ;;  %v1601_v5 = vpop.f32.mrb[1].mxu0 }
 0x2bd   : > { %v3009_v3 = vpop.f32.mrb[0].mxu1  ;;  %v3023_v23 = vmul.f32 %v1601_v5, %v1601_v5 }
 0x2be   : > { %v3026_v14 = vmul.f32 %v3009_v3, %v3009_v3  ;;  %v3011_v31 = vpop.f32.mrb[1].mxu1 }
 0x2bf   : > { %v3027_v32 = vmul.f32 %v3011_v31, %v3011_v31  ;;  %v1607_v60 = vpop.f32.mrb[2].mxu0 }
 0x2c0   : > { %v3030_v7 = vadd.f32 %v3026_v14, %v3022_v40  ;;  %v3024_v11 = vmul.f32 %v1607_v60, %v1607_v60  ;;  %v1609_v29 = vpop.f32.mrb[3].mxu0 }
 0x2c1   : > { %v3031_v39 = vadd.f32 %v3027_v32, %v3023_v23  ;;  %v3017_v34 = vpop.f32.mrb[2].mxu1  ;;  %v3025_v33 = vmul.f32 %v1609_v29, %v1609_v29 }
 0x2c2   : > { %v7945_v61 = vand.u32 4294901760, %v3030_v7  ;;  %v3028_v0 = vmul.f32 %v3017_v34, %v3017_v34  ;;  %v3019_v57 = vpop.f32.mrb[3].mxu1 }
 0x2c3   : > { %v7947_v54 = vand.u32 4294901760, %v3031_v39  ;;  %v3029_v16 = vmul.f32 %v3019_v57, %v3019_v57 }
 0x2c4   : > { %v7950_v27 = vsub.f32 %v3030_v7, %v7945_v61  ;;  %v3032_v5 = vadd.f32 %v3028_v0, %v3024_v11 }
 0x2c5   : > { %v3163_v3 = vsub.f32 %v3031_v39, %v7947_v54  ;;  %v3033_v31 = vadd.f32 %v3029_v16, %v3025_v33  ;;  %3418 = vmatprep.mubr.f32.mxu1 %v7947_v54  ;;  %v5124_v33 = vpack.c.bf16 %v7422_v6, %v7417_v30  ;;  %v5126_v16 = vpack.c.bf16 %v7432_v52, %v7427_v37 }
 0x2c6   : > { %v3170_v40 = vand.u32 4294901760, %v7950_v27  ;;  %v7955_v23 = vand.u32 4294901760, %v3032_v5  ;;  %3420 = vmatmul.mubr.f32.vlgmr.msra.gmra.mrb[4].mxu1 %v7945_v61 }
 0x2c7   : > { %v7958_v14 = vand.u32 4294901760, %v3033_v31  ;;  %5157 = vmatpush3.bf16.msra.mxu1 %v7599_v47  ;;  %v3164_v32 = vand.u32 4294901760, %v3163_v3 }
 0x2c8   : > { %v3171_v60 = vsub.f32 %v7950_v27, %v3170_v40  ;;  %v7965_v7 = vsub.f32 %v3032_v5, %v7955_v23  ;;  %5159 = vmatprep.subr.bf16.mxu1 %v7650_v45 }
 0x2c9   : > { %v7969_v11 = vsub.f32 %v3033_v31, %v7958_v14  ;;  %3425 = vmatprep.mubr.f32.mxu1 %v7958_v14  ;;  %v3165_v29 = vsub.f32 %v3163_v3, %v3164_v32 }
 0x2ca   : > { %3427 = vmatmul.mubr.f32.gmra.mrb[6].mxu1 %v7955_v23  ;;  %v3185_v39 = vand.u32 4294901760, %v7965_v7  ;;  %v3172_v57 = vand.u32 4294901760, %v3171_v60 }
 0x2cb   : > { %5161 = vmatpush3.bf16.msra.mxu1 %v7656_v10  ;;  %3678 = vmatprep.mubr.f32.mxu1 %v3164_v32  ;;  %v3166_v34 = vand.u32 4294901760, %v3165_v29  ;;  %v3179_v0 = vand.u32 4294901760, %v7969_v11  ;;  %v5128_v29 = vpack.c.bf16 %v7443_v12, %v7438_v48 }
 0x2cc   : > { %5163 = vmatprep.subr.bf16.mxu1 %v7731_v51  ;;  %v3186_v5 = vsub.f32 %v7965_v7, %v3185_v39 }
 0x2cd   : > { %3167 = vmatprep.mubr.f32.mxu0 %v3166_v34  ;;  %v3180_v31 = vsub.f32 %v7969_v11, %v3179_v0  ;;  %v5132_v34 = vpack.c.bf16 %v7556_v50, %v7551_v43 }
 0x2ce   : > { %3173 = vmatmul.mubr.f32.vlgmr.msra.gmra.mrb[4].mxu0 %v3172_v57  ;;  %v3187_v60 = vand.u32 4294901760, %v3186_v5  ;;  %v5136_v57 = vpack.c.bf16 %v7643_v13, %v7638_v22  ;;  %v9503_v5 = vld [vmem:[#allocation117_spill] sm:$0xff] }
 0x2cf   : > { %5125 = vmatpush3.bf16.msra.mxu0 %v5124_v33  ;;  %5165 = vmatpush3.bf16.msra.mxu1 %v7770_v62  ;;  %v3181_v32 = vand.u32 4294901760, %v3180_v31  ;;  %v5134_v33 = vpack.c.bf16 %v7577_v8, %v7572_v1 }
 0x2d0   : > { %5127 = vmatprep.subr.bf16.mxu0 %v5126_v16  ;;  %5167 = vmatprep.subr.bf16.mxu1 %v7778_v2  ;;  %v9502_v16 = vld [vmem:[#allocation115_spill] sm:$0xff] }
 0x2d1   : > { %3182 = vmatprep.mubr.f32.mxu0 %v3181_v32  ;;  %v5138_v31 = vpack.c.bf16 %v9503_v5, %v9502_v16 }
 0x2d2   : > { %3188 = vmatmul.mubr.f32.gmra.mrb[6].mxu0 %v3187_v60  ;;  %v9507_v60 = vld [vmem:[#allocation123_spill] sm:$0xff] }
 0x2d3   : > { %5129 = vmatpush3.bf16.msra.mxu0 %v5128_v29  ;;  %5169 = vmatpush3.bf16.msra.mxu1 %v7800_v26  ;;  %v9506_v29 = vld [vmem:[#allocation121_spill] sm:$0xff] }
 0x2d4   : > { %3562 = vmatprep.mubr.f32.mxu0 %v3163_v3  ;;  %5131 = vmatprep.subr.bf16.mxu0 %v5130_v53  ;;  %v9504_v53 = vld [vmem:[#allocation118_spill] sm:$0xff]  ;;  %v9505_v3 = vld [vmem:[#allocation120_spill] sm:$0xff] }
 0x2d5   : > { %5171 = vmatprep.subr.bf16.mxu1 %v7886_v46  ;;  %v5140_v32 = vpack.c.bf16 %v9505_v3, %v9504_v53 }
 0x2d7   : > { %5133 = vmatpush3.bf16.msra.mxu0 %v5132_v34  ;;  %5173 = vmatpush3.bf16.msra.mxu1 %v7898_v55  ;;  %v5142_v34 = vpack.c.bf16 %v9507_v60, %v9506_v29 }
 0x2d8   : > { %5135 = vmatprep.subr.bf16.mxu0 %v5134_v33  ;;  %5175 = vmatprep.subr.bf16.mxu1 %v7912_v41  ;;  %v9508_v33 = vld [vmem:[#allocation124_spill] sm:$0xff] }
 0x2d9   : > { %v5144_v56 = vpack.c.bf16 %v9509_v4, %v9508_v33 }
 0x2db   : > { %5137 = vmatpush3.bf16.msra.mxu0 %v5136_v57  ;;  %5177 = vmatpush3.bf16.msra.mxu1 %v7918_v21  ;;  %v9510_v57 = vpack.c.bf16 %v7840_v17, %v7838_v42 }
 0x2dc   : > { %5139 = vmatprep.subr.bf16.mxu0 %v5138_v31  ;;  %5179 = vmatprep.subr.bf16.mxu1 %v7922_v36  ;;  %v9512_v31 = vand.u32 4294901760, %v7406_v19  ;;  %v9517_v19 = vand.u32 4294901760, %v7427_v37  ;;  %v9521_v37 = vand.u32 4294901760, %v7521_v49  ;;  %v9525_v49 = vand.u32 4294901760, %v7572_v1 }
 0x2dd   : > { %v9531_v1 = vand.u32 4294901760, %v9504_v53  ;;  %v9539_v53 = vand.u32 4294901760, %v7838_v42 }
 0x2df   : > { %5141 = vmatpush3.bf16.msra.mxu0 %v5140_v32  ;;  %5181 = vmatpush3.bf16.msra.mxu1 %v7925_v44 }
 0x2e0   : > { %5143 = vmatprep.subr.bf16.mxu0 %v5142_v34  ;;  %5183 = vmatprep.subr.bf16.mxu1 %v7929_v25 }
 0x2e3   : > { %5145 = vmatpush3.bf16.msra.mxu0 %v5144_v56  ;;  %5185 = vmatpush3.bf16.msra.mxu1 %v7931_v58  ;;  %v9511_v56 = vpack.c.bf16 %v7866_v9, %v7864_v59 }
 0x2e4   : > { %5147 = vmatprep.subr.bf16.mxu0 %v5146_v18  ;;  %5219 = vmatprep.subr.bf16.mxu1 %v7590_v38  ;;  %v9513_v18 = vand.u32 4294901760, %v7411_v24  ;;  %v9514_v38 = vpack.c.bf16 %v7876_v20, %v7874_v28  ;;  %v9518_v24 = vand.u32 4294901760, %v7432_v52  ;;  %v9522_v52 = vand.u32 4294901760, %v7526_v63 }
 0x2e5   : > { %v9526_v63 = vand.u32 4294901760, %v7577_v8  ;;  %v9532_v8 = vand.u32 4294901760, %v9505_v3 }
 0x2e6   : > { %3682 = vmatmul.mubr.f32.vlgmr.msra.gmra.mrb[8].mxu1 %v3170_v40  ;;  %v5186_v32 = vpack.c.bf16 %v9513_v18, %v9512_v31  ;;  %v9516_v40 = vand.u32 4294901760, %v7422_v6  ;;  %v9520_v6 = vand.u32 4294901760, %v7443_v12  ;;  %v9524_v12 = vand.u32 4294901760, %v7556_v50 }
 0x2e7   : > { %5149 = vmatpush3.bf16.msra.mxu0 %v9510_v57  ;;  %3689 = vmatprep.mubr.f32.mxu1 %v3179_v0  ;;  %v9530_v50 = vand.u32 4294901760, %v9503_v5 }
 0x2e8   : > { %5221 = vmatpush3.bf16.msra.mxu1 %v7599_v47  ;;  %5151 = vmatprep.subr.bf16.mxu0 %v9511_v56  ;;  %v9515_v47 = vand.u32 4294901760, %v7417_v30  ;;  %v9519_v30 = vand.u32 4294901760, %v7438_v48  ;;  %v9523_v48 = vand.u32 4294901760, %v7551_v43  ;;  %v9529_v43 = vand.u32 4294901760, %v9502_v16 }
 0x2e9   : > { %5223 = vmatprep.subr.bf16.mxu1 %v7650_v45  ;;  %v5190_v45 = vpack.c.bf16 %v9518_v24, %v9517_v19  ;;  %v9537_v16 = vand.u32 4294901760, %v7832_v15  ;;  %v9543_v15 = vand.u32 4294901760, %v7874_v28 }
 0x2ea   : > { %3693 = vmatmul.mubr.f32.gmra.mrb[10].mxu1 %v3185_v39  ;;  %v5188_v0 = vpack.c.bf16 %v9516_v40, %v9515_v47  ;;  %v5192_v39 = vpack.c.bf16 %v9520_v6, %v9519_v30 }
 0x2eb   : > { %5153 = vmatpush3.bf16.msra.mxu0 %v9514_v38  ;;  %3970 = vmatprep.mubr.f32.mxu1 %v7947_v54 }
 0x2ec   : > { %5225 = vmatpush3.bf16.msra.mxu1 %v7656_v10  ;;  %5187 = vmatprep.subr.bf16.mxu0 %v5186_v32  ;;  %v5194_v10 = vpack.c.bf16 %v9522_v52, %v9521_v37 }
 0x2ed   : > { %5227 = vmatprep.subr.bf16.mxu1 %v7731_v51  ;;  %v5196_v51 = vpack.c.bf16 %v9524_v12, %v9523_v48 }
 0x2ee   : > { %3565 = vmatmul.mubr.f32.vlgmr.msra.gmra.mrb[8].mxu0 %v7950_v27  ;;  %v9528_v27 = vand.u32 4294901760, %v7643_v13  ;;  %v9534_v13 = vand.u32 4294901760, %v9507_v60 }
 0x2ef   : > { %3571 = vmatprep.mubr.f32.mxu0 %v7969_v11  ;;  %5189 = vmatpush3.bf16.msra.mxu0 %v5188_v0 }
 0x2f0   : > { %5229 = vmatpush3.bf16.msra.mxu1 %v7770_v62  ;;  %5191 = vmatprep.subr.bf16.mxu0 %v5190_v45  ;;  %v5198_v62 = vpack.c.bf16 %v9526_v63, %v9525_v49 }
 0x2f1   : > { %5231 = vmatprep.subr.bf16.mxu1 %v7778_v2  ;;  %v9527_v2 = vand.u32 4294901760, %v7638_v22  ;;  %v9533_v22 = vand.u32 4294901760, %v9506_v29 }
 0x2f2   : > { %3574 = vmatmul.mubr.f32.gmra.mrb[10].mxu0 %v7965_v7  ;;  %v9535_v7 = vand.u32 4294901760, %v9508_v33 }
 0x2f3   : > { %5193 = vmatpush3.bf16.msra.mxu0 %v5192_v39  ;;  %3859 = vmatprep.mubr.f32.mxu0 %v7947_v54  ;;  %v5200_v54 = vpack.c.bf16 %v9528_v27, %v9527_v2 }
 0x2f4   : > { %5233 = vmatpush3.bf16.msra.mxu1 %v7800_v26  ;;  %5195 = vmatprep.subr.bf16.mxu0 %v5194_v10  ;;  %v5202_v26 = vpack.c.bf16 %v9530_v50, %v9529_v43 }
 0x2f5   : > { %5235 = vmatprep.subr.bf16.mxu1 %v7886_v46  ;;  %v5204_v46 = vpack.c.bf16 %v9532_v8, %v9531_v1 }
 0x2f7   : > { %5197 = vmatpush3.bf16.msra.mxu0 %v5196_v51 }
 0x2f8   : > { %5237 = vmatpush3.bf16.msra.mxu1 %v7898_v55  ;;  %5199 = vmatprep.subr.bf16.mxu0 %v5198_v62  ;;  %v5206_v55 = vpack.c.bf16 %v9534_v13, %v9533_v22 }
 0x2f9   : > { %5239 = vmatprep.subr.bf16.mxu1 %v7912_v41  ;;  %v9536_v41 = vand.u32 4294901760, %v9509_v4  ;;  %v9541_v4 = vand.u32 4294901760, %v7864_v59 }
 0x2fb   : > { %5201 = vmatpush3.bf16.msra.mxu0 %v5200_v54  ;;  %v5208_v11 = vpack.c.bf16 %v9536_v41, %v9535_v7 }
 0x2fc   : > { %5241 = vmatpush3.bf16.msra.mxu1 %v7918_v21  ;;  %5203 = vmatprep.subr.bf16.mxu0 %v5202_v26  ;;  %v9538_v21 = vand.u32 4294901760, %v7835_v35  ;;  %v9544_v35 = vand.u32 4294901760, %v7876_v20 }
 0x2fd   : > { %5243 = vmatprep.subr.bf16.mxu1 %v7922_v36  ;;  %v9540_v36 = vand.u32 4294901760, %v7840_v17 }
 0x2fe   : > { %v5210_v5 = vpack.c.bf16 %v9538_v21, %v9537_v16 }
 0x2ff   : > { %5205 = vmatpush3.bf16.msra.mxu0 %v5204_v46  ;;  %v5212_v3 = vpack.c.bf16 %v9540_v36, %v9539_v53 }
 0x300   : > { %5245 = vmatpush3.bf16.msra.mxu1 %v7925_v44  ;;  %5207 = vmatprep.subr.bf16.mxu0 %v5206_v55  ;;  %v9542_v44 = vand.u32 4294901760, %v7866_v9 }
 0x301   : > { %5247 = vmatprep.subr.bf16.mxu1 %v7929_v25  ;;  %v5216_v25 = vpack.c.bf16 %v9544_v35, %v9543_v15 }
 0x302   : > { %v5214_v29 = vpack.c.bf16 %v9542_v44, %v9541_v4 }
 0x303   : > { %5209 = vmatpush3.bf16.msra.mxu0 %v5208_v11 }
 0x304   : > { %5249 = vmatpush3.bf16.msra.mxu1 %v7931_v58  ;;  %5211 = vmatprep.subr.bf16.mxu0 %v5210_v5 }
 0x307   : > { %3972 = vmatmul.mubr.f32.vlgmr.msra.gmra.mrb[12].mxu1 %v7945_v61  ;;  %5213 = vmatpush3.bf16.msra.mxu0 %v5212_v3 }
 0x308   : > { %3977 = vmatprep.mubr.f32.mxu1 %v7958_v14  ;;  %5215 = vmatprep.subr.bf16.mxu0 %v5214_v29 }
 0x30b   : > { %3979 = vmatmul.mubr.f32.gmra.mrb[14].mxu1 %v7955_v23  ;;  %5217 = vmatpush3.bf16.msra.mxu0 %v5216_v25 }
 0x30e   : > { %3861 = vmatmul.mubr.f32.vlgmr.msra.gmra.mrb[12].mxu0 %v7945_v61 }
 0x30f   : > { %3866 = vmatprep.mubr.f32.mxu0 %v7958_v14 }
 0x312   : > { %3868 = vmatmul.mubr.f32.gmra.mrb[14].mxu0 %v7955_v23 }
 0x399   : > { %v4132_v9 = vpop.f32.mrb[4].mxu1 }
 0x39a   : > { %v4133_v59 = vpop.f32.mrb[5].mxu1 }
 0x39b   : > { %v4134_v42 = vadd.f32 %v4133_v59, %v4132_v9 }
 0x39d   : > { %v4135_v17 = vpop.f32.mrb[6].mxu1 }
 0x39e   : > { %v4136_v28 = vpop.f32.mrb[7].mxu1 }
 0x39f   : > { %v4137_v58 = vadd.f32 %v4136_v28, %v4135_v17 }
 0x3a1   : > { %v4094_v20 = vpop.f32.mrb[4].mxu0 }
 0x3a2   : > { %v4095_v60 = vpop.f32.mrb[5].mxu0 }
 0x3a3   : > { %v4096_v34 = vadd.f32 %v4095_v60, %v4094_v20 }
 0x3a5   : > { %v3422_v33 = vadd.f32 %v4134_v42, %v4096_v34  ;;  %v4097_v57 = vpop.f32.mrb[6].mxu0 }
 0x3a6   : > { %v4098_v56 = vpop.f32.mrb[7].mxu0 }
 0x3a7   : > { %v4099_v31 = vadd.f32 %v4098_v56, %v4097_v57 }
 0x3a9   : > { %v3429_v18 = vadd.f32 %v4137_v58, %v4099_v31 }
 0x3b9   : > { %v4208_v32 = vpop.f32.mrb[8].mxu1 }
 0x3ba   : > { %v4209_v61 = vpop.f32.mrb[9].mxu1 }
 0x3bb   : > { %v4210_v38 = vadd.f32 %v4209_v61, %v4208_v32 }
 0x3bd   : > { %v4211_v14 = vpop.f32.mrb[10].mxu1 }
 0x3be   : > { %v4212_v47 = vpop.f32.mrb[11].mxu1 }
 0x3bf   : > { %v4213_v23 = vadd.f32 %v4212_v47, %v4211_v14 }
 0x3c1   : > { %v4170_v40 = vpop.f32.mrb[8].mxu0 }
 0x3c2   : > { %v4171_v0 = vpop.f32.mrb[9].mxu0 }
 0x3c3   : > { %v4172_v19 = vadd.f32 %v4171_v0, %v4170_v40 }
 0x3c5   : > { %v3567_v24 = vadd.f32 %v4172_v19, %v3422_v33  ;;  %v4173_v45 = vpop.f32.mrb[10].mxu0 }
 0x3c6   : > { %v4174_v30 = vpop.f32.mrb[11].mxu0 }
 0x3c7   : > { %v4175_v6 = vadd.f32 %v4174_v30, %v4173_v45  ;;  %v3684_v39 = vadd.f32 %v4210_v38, %v3567_v24 }
 0x3c9   : > { %v3576_v37 = vadd.f32 %v4175_v6, %v3429_v18 }
 0x3cb   : > { %v3695_v52 = vadd.f32 %v4213_v23, %v3576_v37 }
 0x3da   : > { %v4284_v10 = vpop.f32.mrb[12].mxu1 }
 0x3db   : > { %v4285_v48 = vpop.f32.mrb[13].mxu1 }
 0x3dc   : > { %v4286_v12 = vadd.f32 %v4285_v48, %v4284_v10 }
 0x3de   : > { %v4287_v51 = vpop.f32.mrb[14].mxu1 }
 0x3df   : > { %v4288_v49 = vpop.f32.mrb[15].mxu1 }
 0x3e0   : > { %v4289_v63 = vadd.f32 %v4288_v49, %v4287_v51 }
 0x3e1   : > { %v4246_v62 = vpop.f32.mrb[12].mxu0 }
 0x3e2   : > { %v4247_v2 = vpop.f32.mrb[13].mxu0 }
 0x3e3   : > { %v4248_v27 = vadd.f32 %v4247_v2, %v4246_v62 }
 0x3e5   : > { %v3863_v54 = vadd.f32 %v4248_v27, %v3684_v39  ;;  %v4249_v43 = vpop.f32.mrb[14].mxu0 }
 0x3e6   : > { %v4250_v50 = vpop.f32.mrb[15].mxu0 }
 0x3e7   : > { %v3974_v26 = vadd.f32 %v4286_v12, %v3863_v54  ;;  %v4251_v1 = vadd.f32 %v4250_v50, %v4249_v43 }
 0x3e9   : > { %v3984_v8 = vmax.f32 %v3974_v26, 1e-10  ;;  %v3870_v46 = vadd.f32 %v4251_v1, %v3695_v52 }
 0x3eb   : > { %5298 = vlog2.f32 %v3984_v8  ;;  %v3981_v22 = vadd.f32 %v4289_v63, %v3870_v46 }
 0x3ed   : > { %v3985_v13 = vmax.f32 %v3981_v22, 1e-10 }
 0x3ef   : > { %5300 = vlog2.f32 %v3985_v13 }
 0x3f5   : > { %v5299_v55 = vpop.eup %5298 }
 0x3f6   : > { %v3987_v7 = vmul.f32 0.6931472, %v5299_v55 }
 0x3f8   : > { %v3990_v41 = vmul.f32 4.3429446, %v3987_v7 }
 0x3f9   : > { %v5301_v11 = vpop.eup %5300 }
 0x3fa   : > { %3992 = vst [vmem:[%s197_s7] sm:$0xff] %v3990_v41  ;;  %v3989_v16 = vmul.f32 0.6931472, %v5301_v11 }
 0x3fc   : > { %v3991_v21 = vmul.f32 4.3429446, %v3989_v16 }
 0x3fe   : > { %3993 = vst [vmem:[%s197_s7 + $0x8] sm:$0xff] %v3991_v21 }
 0x3ff PF: > { %s14_s15 = sadd.s32 1, %s5308_s15  }
 0x400   : > { %p11_p4 = scmp.ge.s32.totalorder %s14_s15, 4  }
 0x402   :  { %13 = sbr.rel (!%p11_p4) target bundleno = 1 (0x1), region = 66 }

</bundles_post_ra>
